<compile_context>
chip_gen: v7x
topology: tpu7x:2x2x1
jax: 0.10.0
libtpu: 0.0.40
codegen_flags: <defaults>
</compile_context>

<pallas_src>
import jax
import jax.numpy as jnp
from jax import lax
from jax.experimental import pallas as pl
from jax.experimental.pallas import tpu as pltpu

LEAKY_SLOPE = 0.01   # nn.LeakyReLU default
LN_EPS = 1e-5        # nn.LayerNorm default


# ----------------------------- Fused kernel -----------------------------

def _make_fused_kernel(B, T, alphabet, d_latent, H):
    TB = T * B          # encoder rows (time-major: row = t*B + b)
    DB = (T - 1) * B    # decoder rows

    def conv1d_same_leaky(x2, w_ref, b_ref):
        """x2: (T*B, Cin) time-major value; w_ref: (k, Cin, Cout); b_ref: (1, Cout).
        Conv1d(padding='same') + LeakyReLU(0.01). Pad once, k static slices, k matmuls."""
        k = w_ref.shape[0]
        Cin = w_ref.shape[1]
        p = (k - 1) // 2
        zp = jnp.zeros((p * B, Cin), jnp.float32)
        xpad = jnp.concatenate([zp, x2, zp], axis=0)           # single pad along time
        acc = jnp.dot(xpad[0:TB, :], w_ref[0], preferred_element_type=jnp.float32)
        for dt in range(1, k):
            acc = acc + jnp.dot(xpad[dt * B:dt * B + TB, :], w_ref[dt],
                                preferred_element_type=jnp.float32)
        acc = acc + b_ref[...]
        return jnp.where(acc > 0, acc, LEAKY_SLOPE * acc)

    def kernel(idx_ref, eps_ref,
               w1, b1, w2, b2, w3, b3, wff, bff,
               cw, cb, pw1, pb1, pw2, pb2,
               wih, whh, bih, bhh, gamma, beta, wffd, bffd,
               logits_ref, ml_ref, props_ref,
               hs_scr):
        # ---- one-hot tokens, time-major: row (t*B + b) is the token idx[b, t] ----
        lanes = lax.broadcasted_iota(jnp.int32, (TB, alphabet), 1)
        tok = (idx_ref[...] == lanes).astype(jnp.float32)                    # (T*B, C)

        # ---- ConvEncoder: 3x (Conv1d 'same' + LeakyReLU) -> max over time -> Linear ----
        x = conv1d_same_leaky(tok, w1, b1)                                   # (T*B, 9)
        x = conv1d_same_leaky(x, w2, b2)                                     # (T*B, 9)
        x = conv1d_same_leaky(x, w3, b3)                                     # (T*B, 10)
        hmax = x[0:B, :]
        for t in range(1, T):                                                # max over time
            hmax = jnp.maximum(hmax, x[t * B:(t + 1) * B, :])                # (B, 10)
        ml = jnp.dot(hmax, wff[...], preferred_element_type=jnp.float32) + bff[...]
        ml_ref[...] = ml                                                     # (B, 2*d_latent)

        # ---- reparameterize + ff_context + property predictor ----
        mu = ml[:, :d_latent]
        logvar = ml[:, d_latent:]
        z = mu + eps_ref[...] * jnp.exp(0.5 * logvar)
        h = jnp.dot(z, cw[...], preferred_element_type=jnp.float32) + cb[...]        # (B, H)
        p1 = jnp.maximum(
            jnp.dot(mu, pw1[...], preferred_element_type=jnp.float32) + pb1[...], 0.0)
        props_ref[...] = jnp.dot(p1, pw2[...], preferred_element_type=jnp.float32) + pb2[...]

        # ---- GRU decoder: input projection hoisted out of the recurrence ----
        gi_all = jnp.dot(tok[:DB, :], wih[...],
                         preferred_element_type=jnp.float32) + bih[...]      # (DB, 3H)
        whh_m = whh[...]                                                     # hoisted reads
        bhh_v = bhh[...]
        for t in range(T - 1):                                               # sequential part
            gi = gi_all[t * B:(t + 1) * B, :]
            gh = jnp.dot(h, whh_m, preferred_element_type=jnp.float32) + bhh_v
            r = jax.nn.sigmoid(gi[:, :H] + gh[:, :H])
            zg = jax.nn.sigmoid(gi[:, H:2 * H] + gh[:, H:2 * H])
            n = jnp.tanh(gi[:, 2 * H:] + r * gh[:, 2 * H:])
            h = (1.0 - zg) * n + zg * h
            hs_scr[t * B:(t + 1) * B, :] = h

        # ---- LayerNorm + output projection over all time steps at once ----
        hs = hs_scr[...]                                                     # (DB, H)
        mean = jnp.mean(hs, axis=-1, keepdims=True)
        var = jnp.mean((hs - mean) ** 2, axis=-1, keepdims=True)
        hn = (hs - mean) * lax.rsqrt(var + LN_EPS) * gamma[...] + beta[...]
        logits_ref[...] = (jnp.dot(hn, wffd[...], preferred_element_type=jnp.float32)
                           + bffd[...])                                      # (DB, Dout)

    return kernel


def gomez_bombarelli_pallas(idx, eps, p, w):
    """Runs the fused encoder/latent/decoder kernel. Returns logits (B,T-1,Dout), mu, logvar, props."""
    B, T = idx.shape
    alphabet = p['d_input']
    dl = p['d_latent']
    H = p['d_rnn_hidden']
    Dout = p['d_output']
    Po = p['d_pp_output']

    # time-major token indices: row (t*B + b) -> idx[b, t]
    idx_tm = jnp.transpose(idx).reshape(T * B, 1).astype(jnp.int32)

    enc, lat, dec = w['enc'], w['latent'], w['dec']
    kernel = _make_fused_kernel(B, T, alphabet, dl, H)

    logits2d, ml, props = pl.pallas_call(
        kernel,
        out_shape=(jax.ShapeDtypeStruct(((T - 1) * B, Dout), jnp.float32),
                   jax.ShapeDtypeStruct((B, 2 * dl), jnp.float32),
                   jax.ShapeDtypeStruct((B, Po), jnp.float32)),
        scratch_shapes=[pltpu.VMEM(((T - 1) * B, H), jnp.float32)],
    )(idx_tm, eps,
      enc['w1'], enc['b1'], enc['w2'], enc['b2'], enc['w3'], enc['b3'],
      enc['wff'], enc['bff'],
      lat['ctx_w'], lat['ctx_b'], lat['pp_w1'], lat['pp_b1'], lat['pp_w2'], lat['pp_b2'],
      dec['wih'], dec['whh'], dec['bih'], dec['bhh'],
      dec['gamma'], dec['beta'], dec['wff'], dec['bff'])

    logits = logits2d.reshape(T - 1, B, Dout).transpose(1, 0, 2)   # back to batch-major
    mu, logvar = ml[:, :dl], ml[:, dl:]
    return logits, mu, logvar, props


# ----------------------------- Parameter init (deterministic, synthetic) -----------------------------

def init_weights(key, p):
    alphabet = p['d_input']
    d_latent = p['d_latent']
    d_hidden = 2 * d_latent
    H = p['d_rnn_hidden']
    conv_outs = [9, 9, 10]
    conv_ks = [9, 9, 11]

    keys = iter(jax.random.split(key, 32))

    def nrm(shape, scale=0.1):
        return (scale * jax.random.normal(next(keys), shape)).astype(jnp.float32)

    enc = {
        'w1': nrm((conv_ks[0], alphabet, conv_outs[0])), 'b1': nrm((1, conv_outs[0])),
        'w2': nrm((conv_ks[1], conv_outs[0], conv_outs[1])), 'b2': nrm((1, conv_outs[1])),
        'w3': nrm((conv_ks[2], conv_outs[1], conv_outs[2])), 'b3': nrm((1, conv_outs[2])),
        'wff': nrm((conv_outs[2], d_hidden)), 'bff': nrm((1, d_hidden)),
    }
    latent = {
        'ctx_w': nrm((d_latent, H)), 'ctx_b': nrm((1, H)),
        'pp_w1': nrm((d_latent, p['d_pp_hidden'])), 'pp_b1': nrm((1, p['d_pp_hidden'])),
        'pp_w2': nrm((p['d_pp_hidden'], p['d_pp_output'])), 'pp_b2': nrm((1, p['d_pp_output'])),
    }
    dec = {
        'wih': nrm((alphabet, 3 * H)), 'whh': nrm((H, 3 * H)),
        'bih': nrm((1, 3 * H)), 'bhh': nrm((1, 3 * H)),
        'gamma': jnp.ones((1, H), jnp.float32), 'beta': jnp.zeros((1, H), jnp.float32),
        'wff': nrm((H, p['d_output'])), 'bff': nrm((1, p['d_output'])),
    }
    return {'enc': enc, 'latent': latent, 'dec': dec}


# ----------------------------- Full forward -----------------------------

def gomez_bombarelli_forward(idx, target_props, p, w, eps_key):
    B, T = idx.shape
    alphabet = p['d_input']
    d_latent = p['d_latent']

    eps = jax.random.normal(eps_key, (B, d_latent), jnp.float32)
    logits, mu, logvar, props = gomez_bombarelli_pallas(idx, eps, p, w)

    # losses (plain JAX glue; see TODO(synk) at top about external loss_fn)
    targets = idx[:, 1:].reshape(-1)
    logits_flat = logits.reshape(-1, alphabet)
    logp = jax.nn.log_softmax(logits_flat, axis=-1)
    nll = -jnp.take_along_axis(logp, targets[:, None], axis=1)[:, 0]
    mask = (targets != p['padding_idx']).astype(jnp.float32)
    BCE = jnp.sum(nll * mask) / jnp.maximum(jnp.sum(mask), 1.0)
    KL = -0.5 * jnp.mean(jnp.sum(1.0 + logvar - mu ** 2 - jnp.exp(logvar), axis=1))
    valid = ~jnp.isnan(target_props)
    diff = jnp.where(valid, props - jnp.nan_to_num(target_props), 0.0)
    MSE = jnp.sum(diff ** 2) / jnp.maximum(jnp.sum(valid.astype(jnp.float32)), 1.0)

    return logits, mu, logvar, props, BCE, KL, MSE


# ----------------------------- Main -----------------------------

if __name__ == "__main__":
    params = {
        'd_input': 16,            # alphabet size (one-hot)
        'd_latent': 8,            # d_hidden = 16
        'd_rnn_hidden': 32,
        'num_gru_layers': 1,
        'd_output': 16,
        'dropout': 0.0,
        'max_length': 24,
        'padding_idx': 0,
        'masking_probability': 0.0,
        'use_pp': True,
        'd_pp_hidden': 32,
        'd_pp_output': 1,
    }

    key = jax.random.PRNGKey(0)
    k_w, k_idx, k_tp, k_eps = jax.random.split(key, 4)

    weights = init_weights(k_w, params)
    B, T = 2, params['max_length']
    idx = jax.random.randint(k_idx, (B, T), 0, params['d_input'], dtype=jnp.int32)
    target_props = jax.random.normal(k_tp, (B, params['d_pp_output']), jnp.float32)

    outs = gomez_bombarelli_forward(idx, target_props, params, weights, k_eps)
    outs = jax.block_until_ready(outs)

    logits, mu, logvar, props, BCE, KL, MSE = outs
    assert logits.shape == (B, T - 1, params['d_output'])
    assert mu.shape == (B, params['d_latent'])
    assert logvar.shape == (B, params['d_latent'])
    assert props.shape == (B, params['d_pp_output'])
    assert bool(jnp.isfinite(BCE)) and bool(jnp.isfinite(KL)) and bool(jnp.isfinite(MSE))
    print("KERNEL_OK")
</pallas_src>

<mosaic_0001>
module attributes {stable_mosaic.version = 11 : i64} {
  func.func @kernel(%arg0: memref<48x1xi32, #tpu.memory_space<vmem>>, %arg1: memref<2x8xf32, #tpu.memory_space<vmem>>, %arg2: memref<9x16x9xf32, #tpu.memory_space<vmem>>, %arg3: memref<1x9xf32, #tpu.memory_space<vmem>>, %arg4: memref<9x9x9xf32, #tpu.memory_space<vmem>>, %arg5: memref<1x9xf32, #tpu.memory_space<vmem>>, %arg6: memref<11x9x10xf32, #tpu.memory_space<vmem>>, %arg7: memref<1x10xf32, #tpu.memory_space<vmem>>, %arg8: memref<10x16xf32, #tpu.memory_space<vmem>>, %arg9: memref<1x16xf32, #tpu.memory_space<vmem>>, %arg10: memref<8x32xf32, #tpu.memory_space<vmem>>, %arg11: memref<1x32xf32, #tpu.memory_space<vmem>>, %arg12: memref<8x32xf32, #tpu.memory_space<vmem>>, %arg13: memref<1x32xf32, #tpu.memory_space<vmem>>, %arg14: memref<32x1xf32, #tpu.memory_space<vmem>>, %arg15: memref<1x1xf32, #tpu.memory_space<vmem>>, %arg16: memref<16x96xf32, #tpu.memory_space<vmem>>, %arg17: memref<32x96xf32, #tpu.memory_space<vmem>>, %arg18: memref<1x96xf32, #tpu.memory_space<vmem>>, %arg19: memref<1x96xf32, #tpu.memory_space<vmem>>, %arg20: memref<1x32xf32, #tpu.memory_space<vmem>>, %arg21: memref<1x32xf32, #tpu.memory_space<vmem>>, %arg22: memref<32x16xf32, #tpu.memory_space<vmem>>, %arg23: memref<1x16xf32, #tpu.memory_space<vmem>>, %arg24: memref<46x16xf32, #tpu.memory_space<vmem>>, %arg25: memref<2x16xf32, #tpu.memory_space<vmem>>, %arg26: memref<2x1xf32, #tpu.memory_space<vmem>>, %arg27: memref<46x32xf32, #tpu.memory_space<vmem>>) attributes {dimension_semantics = [], scalar_prefetch = 0 : i64, scratch_operands = 1 : i64, tpu.core_type = #tpu.core_type<tc>} {
    %0 = tpu.iota {dimensions = array<i32: 1>} : vector<48x16xi32>
    %c0 = arith.constant 0 : index
    %c0_0 = arith.constant 0 : index
    %1 = vector.load %arg0[%c0, %c0_0] : memref<48x1xi32, #tpu.memory_space<vmem>>, vector<48x1xi32>
    %2 = vector.broadcast %1 : vector<48x1xi32> to vector<48x16xi32>
    %3 = arith.cmpi eq, %2, %0 : vector<48x16xi32>
    %4 = arith.extui %3 : vector<48x16xi1> to vector<48x16xi32>
    %5 = arith.sitofp %4 : vector<48x16xi32> to vector<48x16xf32>
    %cst = arith.constant 0.000000e+00 : f32
    %6 = vector.broadcast %cst : f32 to vector<8x16xf32>
    %7 = tpu.concatenate %6, %5, %6 in 0 : vector<8x16xf32>, vector<48x16xf32>, vector<8x16xf32> -> vector<64x16xf32>
    %8 = vector.extract_strided_slice %7 {offsets = [0, 0], sizes = [48, 16], strides = [1, 1]} : vector<64x16xf32> to vector<48x16xf32>
    %c0_1 = arith.constant 0 : index
    %c0_2 = arith.constant 0 : index
    %c0_3 = arith.constant 0 : index
    %9 = vector.load %arg2[%c0_1, %c0_2, %c0_3] : memref<9x16x9xf32, #tpu.memory_space<vmem>>, vector<1x16x9xf32>
    %10 = vector.shape_cast %9 : vector<1x16x9xf32> to vector<16x9xf32>
    %cst_4 = arith.constant dense<0.000000e+00> : vector<48x9xf32>
    %11 = tpu.matmul %8, %10, %cst_4 {dimension_numbers = #tpu.dot_dimension_numbers<[1], [0], [0], [1], [0, 0, 1, 1], [], []>} : vector<48x16xf32>, vector<16x9xf32>, vector<48x9xf32> -> vector<48x9xf32>
    %12 = vector.extract_strided_slice %7 {offsets = [2, 0], sizes = [48, 16], strides = [1, 1]} : vector<64x16xf32> to vector<48x16xf32>
    %c1 = arith.constant 1 : index
    %c0_5 = arith.constant 0 : index
    %c0_6 = arith.constant 0 : index
    %13 = vector.load %arg2[%c1, %c0_5, %c0_6] : memref<9x16x9xf32, #tpu.memory_space<vmem>>, vector<1x16x9xf32>
    %14 = vector.shape_cast %13 : vector<1x16x9xf32> to vector<16x9xf32>
    %cst_7 = arith.constant dense<0.000000e+00> : vector<48x9xf32>
    %15 = tpu.matmul %12, %14, %cst_7 {dimension_numbers = #tpu.dot_dimension_numbers<[1], [0], [0], [1], [0, 0, 1, 1], [], []>} : vector<48x16xf32>, vector<16x9xf32>, vector<48x9xf32> -> vector<48x9xf32>
    %16 = arith.addf %11, %15 : vector<48x9xf32>
    %17 = vector.extract_strided_slice %7 {offsets = [4, 0], sizes = [48, 16], strides = [1, 1]} : vector<64x16xf32> to vector<48x16xf32>
    %c2 = arith.constant 2 : index
    %c0_8 = arith.constant 0 : index
    %c0_9 = arith.constant 0 : index
    %18 = vector.load %arg2[%c2, %c0_8, %c0_9] : memref<9x16x9xf32, #tpu.memory_space<vmem>>, vector<1x16x9xf32>
    %19 = vector.shape_cast %18 : vector<1x16x9xf32> to vector<16x9xf32>
    %cst_10 = arith.constant dense<0.000000e+00> : vector<48x9xf32>
    %20 = tpu.matmul %17, %19, %cst_10 {dimension_numbers = #tpu.dot_dimension_numbers<[1], [0], [0], [1], [0, 0, 1, 1], [], []>} : vector<48x16xf32>, vector<16x9xf32>, vector<48x9xf32> -> vector<48x9xf32>
    %21 = arith.addf %16, %20 : vector<48x9xf32>
    %22 = vector.extract_strided_slice %7 {offsets = [6, 0], sizes = [48, 16], strides = [1, 1]} : vector<64x16xf32> to vector<48x16xf32>
    %c3 = arith.constant 3 : index
    %c0_11 = arith.constant 0 : index
    %c0_12 = arith.constant 0 : index
    %23 = vector.load %arg2[%c3, %c0_11, %c0_12] : memref<9x16x9xf32, #tpu.memory_space<vmem>>, vector<1x16x9xf32>
    %24 = vector.shape_cast %23 : vector<1x16x9xf32> to vector<16x9xf32>
    %cst_13 = arith.constant dense<0.000000e+00> : vector<48x9xf32>
    %25 = tpu.matmul %22, %24, %cst_13 {dimension_numbers = #tpu.dot_dimension_numbers<[1], [0], [0], [1], [0, 0, 1, 1], [], []>} : vector<48x16xf32>, vector<16x9xf32>, vector<48x9xf32> -> vector<48x9xf32>
    %26 = arith.addf %21, %25 : vector<48x9xf32>
    %27 = vector.extract_strided_slice %7 {offsets = [8, 0], sizes = [48, 16], strides = [1, 1]} : vector<64x16xf32> to vector<48x16xf32>
    %c4 = arith.constant 4 : index
    %c0_14 = arith.constant 0 : index
    %c0_15 = arith.constant 0 : index
    %28 = vector.load %arg2[%c4, %c0_14, %c0_15] : memref<9x16x9xf32, #tpu.memory_space<vmem>>, vector<1x16x9xf32>
    %29 = vector.shape_cast %28 : vector<1x16x9xf32> to vector<16x9xf32>
    %cst_16 = arith.constant dense<0.000000e+00> : vector<48x9xf32>
    %30 = tpu.matmul %27, %29, %cst_16 {dimension_numbers = #tpu.dot_dimension_numbers<[1], [0], [0], [1], [0, 0, 1, 1], [], []>} : vector<48x16xf32>, vector<16x9xf32>, vector<48x9xf32> -> vector<48x9xf32>
    %31 = arith.addf %26, %30 : vector<48x9xf32>
    %32 = vector.extract_strided_slice %7 {offsets = [10, 0], sizes = [48, 16], strides = [1, 1]} : vector<64x16xf32> to vector<48x16xf32>
    %c5 = arith.constant 5 : index
    %c0_17 = arith.constant 0 : index
    %c0_18 = arith.constant 0 : index
    %33 = vector.load %arg2[%c5, %c0_17, %c0_18] : memref<9x16x9xf32, #tpu.memory_space<vmem>>, vector<1x16x9xf32>
    %34 = vector.shape_cast %33 : vector<1x16x9xf32> to vector<16x9xf32>
    %cst_19 = arith.constant dense<0.000000e+00> : vector<48x9xf32>
    %35 = tpu.matmul %32, %34, %cst_19 {dimension_numbers = #tpu.dot_dimension_numbers<[1], [0], [0], [1], [0, 0, 1, 1], [], []>} : vector<48x16xf32>, vector<16x9xf32>, vector<48x9xf32> -> vector<48x9xf32>
    %36 = arith.addf %31, %35 : vector<48x9xf32>
    %37 = vector.extract_strided_slice %7 {offsets = [12, 0], sizes = [48, 16], strides = [1, 1]} : vector<64x16xf32> to vector<48x16xf32>
    %c6 = arith.constant 6 : index
    %c0_20 = arith.constant 0 : index
    %c0_21 = arith.constant 0 : index
    %38 = vector.load %arg2[%c6, %c0_20, %c0_21] : memref<9x16x9xf32, #tpu.memory_space<vmem>>, vector<1x16x9xf32>
    %39 = vector.shape_cast %38 : vector<1x16x9xf32> to vector<16x9xf32>
    %cst_22 = arith.constant dense<0.000000e+00> : vector<48x9xf32>
    %40 = tpu.matmul %37, %39, %cst_22 {dimension_numbers = #tpu.dot_dimension_numbers<[1], [0], [0], [1], [0, 0, 1, 1], [], []>} : vector<48x16xf32>, vector<16x9xf32>, vector<48x9xf32> -> vector<48x9xf32>
    %41 = arith.addf %36, %40 : vector<48x9xf32>
    %42 = vector.extract_strided_slice %7 {offsets = [14, 0], sizes = [48, 16], strides = [1, 1]} : vector<64x16xf32> to vector<48x16xf32>
    %c7 = arith.constant 7 : index
    %c0_23 = arith.constant 0 : index
    %c0_24 = arith.constant 0 : index
    %43 = vector.load %arg2[%c7, %c0_23, %c0_24] : memref<9x16x9xf32, #tpu.memory_space<vmem>>, vector<1x16x9xf32>
    %44 = vector.shape_cast %43 : vector<1x16x9xf32> to vector<16x9xf32>
    %cst_25 = arith.constant dense<0.000000e+00> : vector<48x9xf32>
    %45 = tpu.matmul %42, %44, %cst_25 {dimension_numbers = #tpu.dot_dimension_numbers<[1], [0], [0], [1], [0, 0, 1, 1], [], []>} : vector<48x16xf32>, vector<16x9xf32>, vector<48x9xf32> -> vector<48x9xf32>
    %46 = arith.addf %41, %45 : vector<48x9xf32>
    %47 = vector.extract_strided_slice %7 {offsets = [16, 0], sizes = [48, 16], strides = [1, 1]} : vector<64x16xf32> to vector<48x16xf32>
    %c8 = arith.constant 8 : index
    %c0_26 = arith.constant 0 : index
    %c0_27 = arith.constant 0 : index
    %48 = vector.load %arg2[%c8, %c0_26, %c0_27] : memref<9x16x9xf32, #tpu.memory_space<vmem>>, vector<1x16x9xf32>
    %49 = vector.shape_cast %48 : vector<1x16x9xf32> to vector<16x9xf32>
    %cst_28 = arith.constant dense<0.000000e+00> : vector<48x9xf32>
    %50 = tpu.matmul %47, %49, %cst_28 {dimension_numbers = #tpu.dot_dimension_numbers<[1], [0], [0], [1], [0, 0, 1, 1], [], []>} : vector<48x16xf32>, vector<16x9xf32>, vector<48x9xf32> -> vector<48x9xf32>
    %51 = arith.addf %46, %50 : vector<48x9xf32>
    %c0_29 = arith.constant 0 : index
    %c0_30 = arith.constant 0 : index
    %52 = vector.load %arg3[%c0_29, %c0_30] : memref<1x9xf32, #tpu.memory_space<vmem>>, vector<1x9xf32>
    %53 = vector.broadcast %52 : vector<1x9xf32> to vector<48x9xf32>
    %54 = arith.addf %51, %53 : vector<48x9xf32>
    %cst_31 = arith.constant 0.000000e+00 : f32
    %55 = vector.broadcast %cst_31 : f32 to vector<48x9xf32>
    %56 = arith.cmpf ogt, %54, %55 : vector<48x9xf32>
    %cst_32 = arith.constant 0.00999999977 : f32
    %57 = vector.broadcast %cst_32 : f32 to vector<48x9xf32>
    %58 = arith.mulf %57, %54 : vector<48x9xf32>
    %59 = arith.select %56, %54, %58 : vector<48x9xi1>, vector<48x9xf32>
    %cst_33 = arith.constant 0.000000e+00 : f32
    %60 = vector.broadcast %cst_33 : f32 to vector<8x9xf32>
    %61 = tpu.concatenate %60, %59, %60 in 0 : vector<8x9xf32>, vector<48x9xf32>, vector<8x9xf32> -> vector<64x9xf32>
    %62 = vector.extract_strided_slice %61 {offsets = [0, 0], sizes = [48, 9], strides = [1, 1]} : vector<64x9xf32> to vector<48x9xf32>
    %c0_34 = arith.constant 0 : index
    %c0_35 = arith.constant 0 : index
    %c0_36 = arith.constant 0 : index
    %63 = vector.load %arg4[%c0_34, %c0_35, %c0_36] : memref<9x9x9xf32, #tpu.memory_space<vmem>>, vector<1x9x9xf32>
    %64 = vector.shape_cast %63 : vector<1x9x9xf32> to vector<9x9xf32>
    %cst_37 = arith.constant dense<0.000000e+00> : vector<48x9xf32>
    %65 = tpu.matmul %62, %64, %cst_37 {dimension_numbers = #tpu.dot_dimension_numbers<[1], [0], [0], [1], [0, 0, 1, 1], [], []>} : vector<48x9xf32>, vector<9x9xf32>, vector<48x9xf32> -> vector<48x9xf32>
    %66 = vector.extract_strided_slice %61 {offsets = [2, 0], sizes = [48, 9], strides = [1, 1]} : vector<64x9xf32> to vector<48x9xf32>
    %c1_38 = arith.constant 1 : index
    %c0_39 = arith.constant 0 : index
    %c0_40 = arith.constant 0 : index
    %67 = vector.load %arg4[%c1_38, %c0_39, %c0_40] : memref<9x9x9xf32, #tpu.memory_space<vmem>>, vector<1x9x9xf32>
    %68 = vector.shape_cast %67 : vector<1x9x9xf32> to vector<9x9xf32>
    %cst_41 = arith.constant dense<0.000000e+00> : vector<48x9xf32>
    %69 = tpu.matmul %66, %68, %cst_41 {dimension_numbers = #tpu.dot_dimension_numbers<[1], [0], [0], [1], [0, 0, 1, 1], [], []>} : vector<48x9xf32>, vector<9x9xf32>, vector<48x9xf32> -> vector<48x9xf32>
    %70 = arith.addf %65, %69 : vector<48x9xf32>
    %71 = vector.extract_strided_slice %61 {offsets = [4, 0], sizes = [48, 9], strides = [1, 1]} : vector<64x9xf32> to vector<48x9xf32>
    %c2_42 = arith.constant 2 : index
    %c0_43 = arith.constant 0 : index
    %c0_44 = arith.constant 0 : index
    %72 = vector.load %arg4[%c2_42, %c0_43, %c0_44] : memref<9x9x9xf32, #tpu.memory_space<vmem>>, vector<1x9x9xf32>
    %73 = vector.shape_cast %72 : vector<1x9x9xf32> to vector<9x9xf32>
    %cst_45 = arith.constant dense<0.000000e+00> : vector<48x9xf32>
    %74 = tpu.matmul %71, %73, %cst_45 {dimension_numbers = #tpu.dot_dimension_numbers<[1], [0], [0], [1], [0, 0, 1, 1], [], []>} : vector<48x9xf32>, vector<9x9xf32>, vector<48x9xf32> -> vector<48x9xf32>
    %75 = arith.addf %70, %74 : vector<48x9xf32>
    %76 = vector.extract_strided_slice %61 {offsets = [6, 0], sizes = [48, 9], strides = [1, 1]} : vector<64x9xf32> to vector<48x9xf32>
    %c3_46 = arith.constant 3 : index
    %c0_47 = arith.constant 0 : index
    %c0_48 = arith.constant 0 : index
    %77 = vector.load %arg4[%c3_46, %c0_47, %c0_48] : memref<9x9x9xf32, #tpu.memory_space<vmem>>, vector<1x9x9xf32>
    %78 = vector.shape_cast %77 : vector<1x9x9xf32> to vector<9x9xf32>
    %cst_49 = arith.constant dense<0.000000e+00> : vector<48x9xf32>
    %79 = tpu.matmul %76, %78, %cst_49 {dimension_numbers = #tpu.dot_dimension_numbers<[1], [0], [0], [1], [0, 0, 1, 1], [], []>} : vector<48x9xf32>, vector<9x9xf32>, vector<48x9xf32> -> vector<48x9xf32>
    %80 = arith.addf %75, %79 : vector<48x9xf32>
    %81 = vector.extract_strided_slice %61 {offsets = [8, 0], sizes = [48, 9], strides = [1, 1]} : vector<64x9xf32> to vector<48x9xf32>
    %c4_50 = arith.constant 4 : index
    %c0_51 = arith.constant 0 : index
    %c0_52 = arith.constant 0 : index
    %82 = vector.load %arg4[%c4_50, %c0_51, %c0_52] : memref<9x9x9xf32, #tpu.memory_space<vmem>>, vector<1x9x9xf32>
    %83 = vector.shape_cast %82 : vector<1x9x9xf32> to vector<9x9xf32>
    %cst_53 = arith.constant dense<0.000000e+00> : vector<48x9xf32>
    %84 = tpu.matmul %81, %83, %cst_53 {dimension_numbers = #tpu.dot_dimension_numbers<[1], [0], [0], [1], [0, 0, 1, 1], [], []>} : vector<48x9xf32>, vector<9x9xf32>, vector<48x9xf32> -> vector<48x9xf32>
    %85 = arith.addf %80, %84 : vector<48x9xf32>
    %86 = vector.extract_strided_slice %61 {offsets = [10, 0], sizes = [48, 9], strides = [1, 1]} : vector<64x9xf32> to vector<48x9xf32>
    %c5_54 = arith.constant 5 : index
    %c0_55 = arith.constant 0 : index
    %c0_56 = arith.constant 0 : index
    %87 = vector.load %arg4[%c5_54, %c0_55, %c0_56] : memref<9x9x9xf32, #tpu.memory_space<vmem>>, vector<1x9x9xf32>
    %88 = vector.shape_cast %87 : vector<1x9x9xf32> to vector<9x9xf32>
    %cst_57 = arith.constant dense<0.000000e+00> : vector<48x9xf32>
    %89 = tpu.matmul %86, %88, %cst_57 {dimension_numbers = #tpu.dot_dimension_numbers<[1], [0], [0], [1], [0, 0, 1, 1], [], []>} : vector<48x9xf32>, vector<9x9xf32>, vector<48x9xf32> -> vector<48x9xf32>
    %90 = arith.addf %85, %89 : vector<48x9xf32>
    %91 = vector.extract_strided_slice %61 {offsets = [12, 0], sizes = [48, 9], strides = [1, 1]} : vector<64x9xf32> to vector<48x9xf32>
    %c6_58 = arith.constant 6 : index
    %c0_59 = arith.constant 0 : index
    %c0_60 = arith.constant 0 : index
    %92 = vector.load %arg4[%c6_58, %c0_59, %c0_60] : memref<9x9x9xf32, #tpu.memory_space<vmem>>, vector<1x9x9xf32>
    %93 = vector.shape_cast %92 : vector<1x9x9xf32> to vector<9x9xf32>
    %cst_61 = arith.constant dense<0.000000e+00> : vector<48x9xf32>
    %94 = tpu.matmul %91, %93, %cst_61 {dimension_numbers = #tpu.dot_dimension_numbers<[1], [0], [0], [1], [0, 0, 1, 1], [], []>} : vector<48x9xf32>, vector<9x9xf32>, vector<48x9xf32> -> vector<48x9xf32>
    %95 = arith.addf %90, %94 : vector<48x9xf32>
    %96 = vector.extract_strided_slice %61 {offsets = [14, 0], sizes = [48, 9], strides = [1, 1]} : vector<64x9xf32> to vector<48x9xf32>
    %c7_62 = arith.constant 7 : index
    %c0_63 = arith.constant 0 : index
    %c0_64 = arith.constant 0 : index
    %97 = vector.load %arg4[%c7_62, %c0_63, %c0_64] : memref<9x9x9xf32, #tpu.memory_space<vmem>>, vector<1x9x9xf32>
    %98 = vector.shape_cast %97 : vector<1x9x9xf32> to vector<9x9xf32>
    %cst_65 = arith.constant dense<0.000000e+00> : vector<48x9xf32>
    %99 = tpu.matmul %96, %98, %cst_65 {dimension_numbers = #tpu.dot_dimension_numbers<[1], [0], [0], [1], [0, 0, 1, 1], [], []>} : vector<48x9xf32>, vector<9x9xf32>, vector<48x9xf32> -> vector<48x9xf32>
    %100 = arith.addf %95, %99 : vector<48x9xf32>
    %101 = vector.extract_strided_slice %61 {offsets = [16, 0], sizes = [48, 9], strides = [1, 1]} : vector<64x9xf32> to vector<48x9xf32>
    %c8_66 = arith.constant 8 : index
    %c0_67 = arith.constant 0 : index
    %c0_68 = arith.constant 0 : index
    %102 = vector.load %arg4[%c8_66, %c0_67, %c0_68] : memref<9x9x9xf32, #tpu.memory_space<vmem>>, vector<1x9x9xf32>
    %103 = vector.shape_cast %102 : vector<1x9x9xf32> to vector<9x9xf32>
    %cst_69 = arith.constant dense<0.000000e+00> : vector<48x9xf32>
    %104 = tpu.matmul %101, %103, %cst_69 {dimension_numbers = #tpu.dot_dimension_numbers<[1], [0], [0], [1], [0, 0, 1, 1], [], []>} : vector<48x9xf32>, vector<9x9xf32>, vector<48x9xf32> -> vector<48x9xf32>
    %105 = arith.addf %100, %104 : vector<48x9xf32>
    %c0_70 = arith.constant 0 : index
    %c0_71 = arith.constant 0 : index
    %106 = vector.load %arg5[%c0_70, %c0_71] : memref<1x9xf32, #tpu.memory_space<vmem>>, vector<1x9xf32>
    %107 = vector.broadcast %106 : vector<1x9xf32> to vector<48x9xf32>
    %108 = arith.addf %105, %107 : vector<48x9xf32>
    %cst_72 = arith.constant 0.000000e+00 : f32
    %109 = vector.broadcast %cst_72 : f32 to vector<48x9xf32>
    %110 = arith.cmpf ogt, %108, %109 : vector<48x9xf32>
    %cst_73 = arith.constant 0.00999999977 : f32
    %111 = vector.broadcast %cst_73 : f32 to vector<48x9xf32>
    %112 = arith.mulf %111, %108 : vector<48x9xf32>
    %113 = arith.select %110, %108, %112 : vector<48x9xi1>, vector<48x9xf32>
    %cst_74 = arith.constant 0.000000e+00 : f32
    %114 = vector.broadcast %cst_74 : f32 to vector<10x9xf32>
    %115 = tpu.concatenate %114, %113, %114 in 0 : vector<10x9xf32>, vector<48x9xf32>, vector<10x9xf32> -> vector<68x9xf32>
    %116 = vector.extract_strided_slice %115 {offsets = [0, 0], sizes = [48, 9], strides = [1, 1]} : vector<68x9xf32> to vector<48x9xf32>
    %c0_75 = arith.constant 0 : index
    %c0_76 = arith.constant 0 : index
    %c0_77 = arith.constant 0 : index
    %117 = vector.load %arg6[%c0_75, %c0_76, %c0_77] : memref<11x9x10xf32, #tpu.memory_space<vmem>>, vector<1x9x10xf32>
    %118 = vector.shape_cast %117 : vector<1x9x10xf32> to vector<9x10xf32>
    %cst_78 = arith.constant dense<0.000000e+00> : vector<48x10xf32>
    %119 = tpu.matmul %116, %118, %cst_78 {dimension_numbers = #tpu.dot_dimension_numbers<[1], [0], [0], [1], [0, 0, 1, 1], [], []>} : vector<48x9xf32>, vector<9x10xf32>, vector<48x10xf32> -> vector<48x10xf32>
    %120 = vector.extract_strided_slice %115 {offsets = [2, 0], sizes = [48, 9], strides = [1, 1]} : vector<68x9xf32> to vector<48x9xf32>
    %c1_79 = arith.constant 1 : index
    %c0_80 = arith.constant 0 : index
    %c0_81 = arith.constant 0 : index
    %121 = vector.load %arg6[%c1_79, %c0_80, %c0_81] : memref<11x9x10xf32, #tpu.memory_space<vmem>>, vector<1x9x10xf32>
    %122 = vector.shape_cast %121 : vector<1x9x10xf32> to vector<9x10xf32>
    %cst_82 = arith.constant dense<0.000000e+00> : vector<48x10xf32>
    %123 = tpu.matmul %120, %122, %cst_82 {dimension_numbers = #tpu.dot_dimension_numbers<[1], [0], [0], [1], [0, 0, 1, 1], [], []>} : vector<48x9xf32>, vector<9x10xf32>, vector<48x10xf32> -> vector<48x10xf32>
    %124 = arith.addf %119, %123 : vector<48x10xf32>
    %125 = vector.extract_strided_slice %115 {offsets = [4, 0], sizes = [48, 9], strides = [1, 1]} : vector<68x9xf32> to vector<48x9xf32>
    %c2_83 = arith.constant 2 : index
    %c0_84 = arith.constant 0 : index
    %c0_85 = arith.constant 0 : index
    %126 = vector.load %arg6[%c2_83, %c0_84, %c0_85] : memref<11x9x10xf32, #tpu.memory_space<vmem>>, vector<1x9x10xf32>
    %127 = vector.shape_cast %126 : vector<1x9x10xf32> to vector<9x10xf32>
    %cst_86 = arith.constant dense<0.000000e+00> : vector<48x10xf32>
    %128 = tpu.matmul %125, %127, %cst_86 {dimension_numbers = #tpu.dot_dimension_numbers<[1], [0], [0], [1], [0, 0, 1, 1], [], []>} : vector<48x9xf32>, vector<9x10xf32>, vector<48x10xf32> -> vector<48x10xf32>
    %129 = arith.addf %124, %128 : vector<48x10xf32>
    %130 = vector.extract_strided_slice %115 {offsets = [6, 0], sizes = [48, 9], strides = [1, 1]} : vector<68x9xf32> to vector<48x9xf32>
    %c3_87 = arith.constant 3 : index
    %c0_88 = arith.constant 0 : index
    %c0_89 = arith.constant 0 : index
    %131 = vector.load %arg6[%c3_87, %c0_88, %c0_89] : memref<11x9x10xf32, #tpu.memory_space<vmem>>, vector<1x9x10xf32>
    %132 = vector.shape_cast %131 : vector<1x9x10xf32> to vector<9x10xf32>
    %cst_90 = arith.constant dense<0.000000e+00> : vector<48x10xf32>
    %133 = tpu.matmul %130, %132, %cst_90 {dimension_numbers = #tpu.dot_dimension_numbers<[1], [0], [0], [1], [0, 0, 1, 1], [], []>} : vector<48x9xf32>, vector<9x10xf32>, vector<48x10xf32> -> vector<48x10xf32>
    %134 = arith.addf %129, %133 : vector<48x10xf32>
    %135 = vector.extract_strided_slice %115 {offsets = [8, 0], sizes = [48, 9], strides = [1, 1]} : vector<68x9xf32> to vector<48x9xf32>
    %c4_91 = arith.constant 4 : index
    %c0_92 = arith.constant 0 : index
    %c0_93 = arith.constant 0 : index
    %136 = vector.load %arg6[%c4_91, %c0_92, %c0_93] : memref<11x9x10xf32, #tpu.memory_space<vmem>>, vector<1x9x10xf32>
    %137 = vector.shape_cast %136 : vector<1x9x10xf32> to vector<9x10xf32>
    %cst_94 = arith.constant dense<0.000000e+00> : vector<48x10xf32>
    %138 = tpu.matmul %135, %137, %cst_94 {dimension_numbers = #tpu.dot_dimension_numbers<[1], [0], [0], [1], [0, 0, 1, 1], [], []>} : vector<48x9xf32>, vector<9x10xf32>, vector<48x10xf32> -> vector<48x10xf32>
    %139 = arith.addf %134, %138 : vector<48x10xf32>
    %140 = vector.extract_strided_slice %115 {offsets = [10, 0], sizes = [48, 9], strides = [1, 1]} : vector<68x9xf32> to vector<48x9xf32>
    %c5_95 = arith.constant 5 : index
    %c0_96 = arith.constant 0 : index
    %c0_97 = arith.constant 0 : index
    %141 = vector.load %arg6[%c5_95, %c0_96, %c0_97] : memref<11x9x10xf32, #tpu.memory_space<vmem>>, vector<1x9x10xf32>
    %142 = vector.shape_cast %141 : vector<1x9x10xf32> to vector<9x10xf32>
    %cst_98 = arith.constant dense<0.000000e+00> : vector<48x10xf32>
    %143 = tpu.matmul %140, %142, %cst_98 {dimension_numbers = #tpu.dot_dimension_numbers<[1], [0], [0], [1], [0, 0, 1, 1], [], []>} : vector<48x9xf32>, vector<9x10xf32>, vector<48x10xf32> -> vector<48x10xf32>
    %144 = arith.addf %139, %143 : vector<48x10xf32>
    %145 = vector.extract_strided_slice %115 {offsets = [12, 0], sizes = [48, 9], strides = [1, 1]} : vector<68x9xf32> to vector<48x9xf32>
    %c6_99 = arith.constant 6 : index
    %c0_100 = arith.constant 0 : index
    %c0_101 = arith.constant 0 : index
    %146 = vector.load %arg6[%c6_99, %c0_100, %c0_101] : memref<11x9x10xf32, #tpu.memory_space<vmem>>, vector<1x9x10xf32>
    %147 = vector.shape_cast %146 : vector<1x9x10xf32> to vector<9x10xf32>
    %cst_102 = arith.constant dense<0.000000e+00> : vector<48x10xf32>
    %148 = tpu.matmul %145, %147, %cst_102 {dimension_numbers = #tpu.dot_dimension_numbers<[1], [0], [0], [1], [0, 0, 1, 1], [], []>} : vector<48x9xf32>, vector<9x10xf32>, vector<48x10xf32> -> vector<48x10xf32>
    %149 = arith.addf %144, %148 : vector<48x10xf32>
    %150 = vector.extract_strided_slice %115 {offsets = [14, 0], sizes = [48, 9], strides = [1, 1]} : vector<68x9xf32> to vector<48x9xf32>
    %c7_103 = arith.constant 7 : index
    %c0_104 = arith.constant 0 : index
    %c0_105 = arith.constant 0 : index
    %151 = vector.load %arg6[%c7_103, %c0_104, %c0_105] : memref<11x9x10xf32, #tpu.memory_space<vmem>>, vector<1x9x10xf32>
    %152 = vector.shape_cast %151 : vector<1x9x10xf32> to vector<9x10xf32>
    %cst_106 = arith.constant dense<0.000000e+00> : vector<48x10xf32>
    %153 = tpu.matmul %150, %152, %cst_106 {dimension_numbers = #tpu.dot_dimension_numbers<[1], [0], [0], [1], [0, 0, 1, 1], [], []>} : vector<48x9xf32>, vector<9x10xf32>, vector<48x10xf32> -> vector<48x10xf32>
    %154 = arith.addf %149, %153 : vector<48x10xf32>
    %155 = vector.extract_strided_slice %115 {offsets = [16, 0], sizes = [48, 9], strides = [1, 1]} : vector<68x9xf32> to vector<48x9xf32>
    %c8_107 = arith.constant 8 : index
    %c0_108 = arith.constant 0 : index
    %c0_109 = arith.constant 0 : index
    %156 = vector.load %arg6[%c8_107, %c0_108, %c0_109] : memref<11x9x10xf32, #tpu.memory_space<vmem>>, vector<1x9x10xf32>
    %157 = vector.shape_cast %156 : vector<1x9x10xf32> to vector<9x10xf32>
    %cst_110 = arith.constant dense<0.000000e+00> : vector<48x10xf32>
    %158 = tpu.matmul %155, %157, %cst_110 {dimension_numbers = #tpu.dot_dimension_numbers<[1], [0], [0], [1], [0, 0, 1, 1], [], []>} : vector<48x9xf32>, vector<9x10xf32>, vector<48x10xf32> -> vector<48x10xf32>
    %159 = arith.addf %154, %158 : vector<48x10xf32>
    %160 = vector.extract_strided_slice %115 {offsets = [18, 0], sizes = [48, 9], strides = [1, 1]} : vector<68x9xf32> to vector<48x9xf32>
    %c9 = arith.constant 9 : index
    %c0_111 = arith.constant 0 : index
    %c0_112 = arith.constant 0 : index
    %161 = vector.load %arg6[%c9, %c0_111, %c0_112] : memref<11x9x10xf32, #tpu.memory_space<vmem>>, vector<1x9x10xf32>
    %162 = vector.shape_cast %161 : vector<1x9x10xf32> to vector<9x10xf32>
    %cst_113 = arith.constant dense<0.000000e+00> : vector<48x10xf32>
    %163 = tpu.matmul %160, %162, %cst_113 {dimension_numbers = #tpu.dot_dimension_numbers<[1], [0], [0], [1], [0, 0, 1, 1], [], []>} : vector<48x9xf32>, vector<9x10xf32>, vector<48x10xf32> -> vector<48x10xf32>
    %164 = arith.addf %159, %163 : vector<48x10xf32>
    %165 = vector.extract_strided_slice %115 {offsets = [20, 0], sizes = [48, 9], strides = [1, 1]} : vector<68x9xf32> to vector<48x9xf32>
    %c10 = arith.constant 10 : index
    %c0_114 = arith.constant 0 : index
    %c0_115 = arith.constant 0 : index
    %166 = vector.load %arg6[%c10, %c0_114, %c0_115] : memref<11x9x10xf32, #tpu.memory_space<vmem>>, vector<1x9x10xf32>
    %167 = vector.shape_cast %166 : vector<1x9x10xf32> to vector<9x10xf32>
    %cst_116 = arith.constant dense<0.000000e+00> : vector<48x10xf32>
    %168 = tpu.matmul %165, %167, %cst_116 {dimension_numbers = #tpu.dot_dimension_numbers<[1], [0], [0], [1], [0, 0, 1, 1], [], []>} : vector<48x9xf32>, vector<9x10xf32>, vector<48x10xf32> -> vector<48x10xf32>
    %169 = arith.addf %164, %168 : vector<48x10xf32>
    %c0_117 = arith.constant 0 : index
    %c0_118 = arith.constant 0 : index
    %170 = vector.load %arg7[%c0_117, %c0_118] : memref<1x10xf32, #tpu.memory_space<vmem>>, vector<1x10xf32>
    %171 = vector.broadcast %170 : vector<1x10xf32> to vector<48x10xf32>
    %172 = arith.addf %169, %171 : vector<48x10xf32>
    %cst_119 = arith.constant 0.000000e+00 : f32
    %173 = vector.broadcast %cst_119 : f32 to vector<48x10xf32>
    %174 = arith.cmpf ogt, %172, %173 : vector<48x10xf32>
    %cst_120 = arith.constant 0.00999999977 : f32
    %175 = vector.broadcast %cst_120 : f32 to vector<48x10xf32>
    %176 = arith.mulf %175, %172 : vector<48x10xf32>
    %177 = arith.select %174, %172, %176 : vector<48x10xi1>, vector<48x10xf32>
    %178 = vector.extract_strided_slice %177 {offsets = [0, 0], sizes = [2, 10], strides = [1, 1]} : vector<48x10xf32> to vector<2x10xf32>
    %179 = vector.extract_strided_slice %177 {offsets = [2, 0], sizes = [2, 10], strides = [1, 1]} : vector<48x10xf32> to vector<2x10xf32>
    %180 = arith.maximumf %178, %179 : vector<2x10xf32>
    %181 = vector.extract_strided_slice %177 {offsets = [4, 0], sizes = [2, 10], strides = [1, 1]} : vector<48x10xf32> to vector<2x10xf32>
    %182 = arith.maximumf %180, %181 : vector<2x10xf32>
    %183 = vector.extract_strided_slice %177 {offsets = [6, 0], sizes = [2, 10], strides = [1, 1]} : vector<48x10xf32> to vector<2x10xf32>
    %184 = arith.maximumf %182, %183 : vector<2x10xf32>
    %185 = vector.extract_strided_slice %177 {offsets = [8, 0], sizes = [2, 10], strides = [1, 1]} : vector<48x10xf32> to vector<2x10xf32>
    %186 = arith.maximumf %184, %185 : vector<2x10xf32>
    %187 = vector.extract_strided_slice %177 {offsets = [10, 0], sizes = [2, 10], strides = [1, 1]} : vector<48x10xf32> to vector<2x10xf32>
    %188 = arith.maximumf %186, %187 : vector<2x10xf32>
    %189 = vector.extract_strided_slice %177 {offsets = [12, 0], sizes = [2, 10], strides = [1, 1]} : vector<48x10xf32> to vector<2x10xf32>
    %190 = arith.maximumf %188, %189 : vector<2x10xf32>
    %191 = vector.extract_strided_slice %177 {offsets = [14, 0], sizes = [2, 10], strides = [1, 1]} : vector<48x10xf32> to vector<2x10xf32>
    %192 = arith.maximumf %190, %191 : vector<2x10xf32>
    %193 = vector.extract_strided_slice %177 {offsets = [16, 0], sizes = [2, 10], strides = [1, 1]} : vector<48x10xf32> to vector<2x10xf32>
    %194 = arith.maximumf %192, %193 : vector<2x10xf32>
    %195 = vector.extract_strided_slice %177 {offsets = [18, 0], sizes = [2, 10], strides = [1, 1]} : vector<48x10xf32> to vector<2x10xf32>
    %196 = arith.maximumf %194, %195 : vector<2x10xf32>
    %197 = vector.extract_strided_slice %177 {offsets = [20, 0], sizes = [2, 10], strides = [1, 1]} : vector<48x10xf32> to vector<2x10xf32>
    %198 = arith.maximumf %196, %197 : vector<2x10xf32>
    %199 = vector.extract_strided_slice %177 {offsets = [22, 0], sizes = [2, 10], strides = [1, 1]} : vector<48x10xf32> to vector<2x10xf32>
    %200 = arith.maximumf %198, %199 : vector<2x10xf32>
    %201 = vector.extract_strided_slice %177 {offsets = [24, 0], sizes = [2, 10], strides = [1, 1]} : vector<48x10xf32> to vector<2x10xf32>
    %202 = arith.maximumf %200, %201 : vector<2x10xf32>
    %203 = vector.extract_strided_slice %177 {offsets = [26, 0], sizes = [2, 10], strides = [1, 1]} : vector<48x10xf32> to vector<2x10xf32>
    %204 = arith.maximumf %202, %203 : vector<2x10xf32>
    %205 = vector.extract_strided_slice %177 {offsets = [28, 0], sizes = [2, 10], strides = [1, 1]} : vector<48x10xf32> to vector<2x10xf32>
    %206 = arith.maximumf %204, %205 : vector<2x10xf32>
    %207 = vector.extract_strided_slice %177 {offsets = [30, 0], sizes = [2, 10], strides = [1, 1]} : vector<48x10xf32> to vector<2x10xf32>
    %208 = arith.maximumf %206, %207 : vector<2x10xf32>
    %209 = vector.extract_strided_slice %177 {offsets = [32, 0], sizes = [2, 10], strides = [1, 1]} : vector<48x10xf32> to vector<2x10xf32>
    %210 = arith.maximumf %208, %209 : vector<2x10xf32>
    %211 = vector.extract_strided_slice %177 {offsets = [34, 0], sizes = [2, 10], strides = [1, 1]} : vector<48x10xf32> to vector<2x10xf32>
    %212 = arith.maximumf %210, %211 : vector<2x10xf32>
    %213 = vector.extract_strided_slice %177 {offsets = [36, 0], sizes = [2, 10], strides = [1, 1]} : vector<48x10xf32> to vector<2x10xf32>
    %214 = arith.maximumf %212, %213 : vector<2x10xf32>
    %215 = vector.extract_strided_slice %177 {offsets = [38, 0], sizes = [2, 10], strides = [1, 1]} : vector<48x10xf32> to vector<2x10xf32>
    %216 = arith.maximumf %214, %215 : vector<2x10xf32>
    %217 = vector.extract_strided_slice %177 {offsets = [40, 0], sizes = [2, 10], strides = [1, 1]} : vector<48x10xf32> to vector<2x10xf32>
    %218 = arith.maximumf %216, %217 : vector<2x10xf32>
    %219 = vector.extract_strided_slice %177 {offsets = [42, 0], sizes = [2, 10], strides = [1, 1]} : vector<48x10xf32> to vector<2x10xf32>
    %220 = arith.maximumf %218, %219 : vector<2x10xf32>
    %221 = vector.extract_strided_slice %177 {offsets = [44, 0], sizes = [2, 10], strides = [1, 1]} : vector<48x10xf32> to vector<2x10xf32>
    %222 = arith.maximumf %220, %221 : vector<2x10xf32>
    %223 = vector.extract_strided_slice %177 {offsets = [46, 0], sizes = [2, 10], strides = [1, 1]} : vector<48x10xf32> to vector<2x10xf32>
    %224 = arith.maximumf %222, %223 : vector<2x10xf32>
    %c0_121 = arith.constant 0 : index
    %c0_122 = arith.constant 0 : index
    %225 = vector.load %arg8[%c0_121, %c0_122] : memref<10x16xf32, #tpu.memory_space<vmem>>, vector<10x16xf32>
    %cst_123 = arith.constant dense<0.000000e+00> : vector<2x16xf32>
    %226 = tpu.matmul %224, %225, %cst_123 {dimension_numbers = #tpu.dot_dimension_numbers<[1], [0], [0], [1], [0, 0, 1, 1], [], []>} : vector<2x10xf32>, vector<10x16xf32>, vector<2x16xf32> -> vector<2x16xf32>
    %c0_124 = arith.constant 0 : index
    %c0_125 = arith.constant 0 : index
    %227 = vector.load %arg9[%c0_124, %c0_125] : memref<1x16xf32, #tpu.memory_space<vmem>>, vector<1x16xf32>
    %228 = vector.broadcast %227 : vector<1x16xf32> to vector<2x16xf32>
    %229 = arith.addf %226, %228 : vector<2x16xf32>
    %c0_126 = arith.constant 0 : index
    %c0_127 = arith.constant 0 : index
    %230 = vector.load %arg25[%c0_126, %c0_127] : memref<2x16xf32, #tpu.memory_space<vmem>>, vector<2x16xf32>
    tpu.vector_store %arg25[%c0_126, %c0_127], %229 {strides = array<i32>} : memref<2x16xf32, #tpu.memory_space<vmem>>, vector<2x16xf32>,
    %231 = vector.extract_strided_slice %229 {offsets = [0, 0], sizes = [2, 8], strides = [1, 1]} : vector<2x16xf32> to vector<2x8xf32>
    %232 = vector.extract_strided_slice %229 {offsets = [0, 8], sizes = [2, 8], strides = [1, 1]} : vector<2x16xf32> to vector<2x8xf32>
    %c0_128 = arith.constant 0 : index
    %c0_129 = arith.constant 0 : index
    %233 = vector.load %arg1[%c0_128, %c0_129] : memref<2x8xf32, #tpu.memory_space<vmem>>, vector<2x8xf32>
    %cst_130 = arith.constant 5.000000e-01 : f32
    %234 = vector.broadcast %cst_130 : f32 to vector<2x8xf32>
    %235 = arith.mulf %234, %232 : vector<2x8xf32>
    %236 = math.exp %235 : vector<2x8xf32>
    %237 = arith.mulf %233, %236 : vector<2x8xf32>
    %238 = arith.addf %231, %237 : vector<2x8xf32>
    %c0_131 = arith.constant 0 : index
    %c0_132 = arith.constant 0 : index
    %239 = vector.load %arg10[%c0_131, %c0_132] : memref<8x32xf32, #tpu.memory_space<vmem>>, vector<8x32xf32>
    %cst_133 = arith.constant dense<0.000000e+00> : vector<2x32xf32>
    %240 = tpu.matmul %238, %239, %cst_133 {dimension_numbers = #tpu.dot_dimension_numbers<[1], [0], [0], [1], [0, 0, 1, 1], [], []>} : vector<2x8xf32>, vector<8x32xf32>, vector<2x32xf32> -> vector<2x32xf32>
    %c0_134 = arith.constant 0 : index
    %c0_135 = arith.constant 0 : index
    %241 = vector.load %arg11[%c0_134, %c0_135] : memref<1x32xf32, #tpu.memory_space<vmem>>, vector<1x32xf32>
    %242 = vector.broadcast %241 : vector<1x32xf32> to vector<2x32xf32>
    %243 = arith.addf %240, %242 : vector<2x32xf32>
    %c0_136 = arith.constant 0 : index
    %c0_137 = arith.constant 0 : index
    %244 = vector.load %arg12[%c0_136, %c0_137] : memref<8x32xf32, #tpu.memory_space<vmem>>, vector<8x32xf32>
    %cst_138 = arith.constant dense<0.000000e+00> : vector<2x32xf32>
    %245 = tpu.matmul %231, %244, %cst_138 {dimension_numbers = #tpu.dot_dimension_numbers<[1], [0], [0], [1], [0, 0, 1, 1], [], []>} : vector<2x8xf32>, vector<8x32xf32>, vector<2x32xf32> -> vector<2x32xf32>
    %c0_139 = arith.constant 0 : index
    %c0_140 = arith.constant 0 : index
    %246 = vector.load %arg13[%c0_139, %c0_140] : memref<1x32xf32, #tpu.memory_space<vmem>>, vector<1x32xf32>
    %247 = vector.broadcast %246 : vector<1x32xf32> to vector<2x32xf32>
    %248 = arith.addf %245, %247 : vector<2x32xf32>
    %cst_141 = arith.constant 0.000000e+00 : f32
    %249 = vector.broadcast %cst_141 : f32 to vector<2x32xf32>
    %250 = arith.maximumf %248, %249 : vector<2x32xf32>
    %c0_142 = arith.constant 0 : index
    %c0_143 = arith.constant 0 : index
    %251 = vector.load %arg14[%c0_142, %c0_143] : memref<32x1xf32, #tpu.memory_space<vmem>>, vector<32x1xf32>
    %cst_144 = arith.constant dense<0.000000e+00> : vector<2x1xf32>
    %252 = tpu.matmul %250, %251, %cst_144 {dimension_numbers = #tpu.dot_dimension_numbers<[1], [0], [0], [1], [0, 0, 1, 1], [], []>} : vector<2x32xf32>, vector<32x1xf32>, vector<2x1xf32> -> vector<2x1xf32>
    %c0_145 = arith.constant 0 : index
    %c0_146 = arith.constant 0 : index
    %253 = vector.load %arg15[%c0_145, %c0_146] : memref<1x1xf32, #tpu.memory_space<vmem>>, vector<1x1xf32>
    %254 = vector.broadcast %253 : vector<1x1xf32> to vector<2x1xf32>
    %255 = arith.addf %252, %254 : vector<2x1xf32>
    %c0_147 = arith.constant 0 : index
    %c0_148 = arith.constant 0 : index
    %256 = vector.load %arg26[%c0_147, %c0_148] : memref<2x1xf32, #tpu.memory_space<vmem>>, vector<2x1xf32>
    tpu.vector_store %arg26[%c0_147, %c0_148], %255 {strides = array<i32>} : memref<2x1xf32, #tpu.memory_space<vmem>>, vector<2x1xf32>,
    %257 = vector.extract_strided_slice %5 {offsets = [0, 0], sizes = [46, 16], strides = [1, 1]} : vector<48x16xf32> to vector<46x16xf32>
    %c0_149 = arith.constant 0 : index
    %c0_150 = arith.constant 0 : index
    %258 = vector.load %arg16[%c0_149, %c0_150] : memref<16x96xf32, #tpu.memory_space<vmem>>, vector<16x96xf32>
    %cst_151 = arith.constant dense<0.000000e+00> : vector<46x96xf32>
    %259 = tpu.matmul %257, %258, %cst_151 {dimension_numbers = #tpu.dot_dimension_numbers<[1], [0], [0], [1], [0, 0, 1, 1], [], []>} : vector<46x16xf32>, vector<16x96xf32>, vector<46x96xf32> -> vector<46x96xf32>
    %c0_152 = arith.constant 0 : index
    %c0_153 = arith.constant 0 : index
    %260 = vector.load %arg18[%c0_152, %c0_153] : memref<1x96xf32, #tpu.memory_space<vmem>>, vector<1x96xf32>
    %261 = vector.broadcast %260 : vector<1x96xf32> to vector<46x96xf32>
    %262 = arith.addf %259, %261 : vector<46x96xf32>
    %c0_154 = arith.constant 0 : index
    %c0_155 = arith.constant 0 : index
    %263 = vector.load %arg17[%c0_154, %c0_155] : memref<32x96xf32, #tpu.memory_space<vmem>>, vector<32x96xf32>
    %c0_156 = arith.constant 0 : index
    %c0_157 = arith.constant 0 : index
    %264 = vector.load %arg19[%c0_156, %c0_157] : memref<1x96xf32, #tpu.memory_space<vmem>>, vector<1x96xf32>
    %265 = vector.extract_strided_slice %262 {offsets = [0, 0], sizes = [2, 96], strides = [1, 1]} : vector<46x96xf32> to vector<2x96xf32>
    %cst_158 = arith.constant dense<0.000000e+00> : vector<2x96xf32>
    %266 = tpu.matmul %243, %263, %cst_158 {dimension_numbers = #tpu.dot_dimension_numbers<[1], [0], [0], [1], [0, 0, 1, 1], [], []>} : vector<2x32xf32>, vector<32x96xf32>, vector<2x96xf32> -> vector<2x96xf32>
    %267 = vector.broadcast %264 : vector<1x96xf32> to vector<2x96xf32>
    %268 = arith.addf %266, %267 : vector<2x96xf32>
    %269 = vector.extract_strided_slice %265 {offsets = [0, 0], sizes = [2, 32], strides = [1, 1]} : vector<2x96xf32> to vector<2x32xf32>
    %270 = vector.extract_strided_slice %268 {offsets = [0, 0], sizes = [2, 32], strides = [1, 1]} : vector<2x96xf32> to vector<2x32xf32>
    %271 = arith.addf %269, %270 : vector<2x32xf32>
    %272 = arith.negf %271 : vector<2x32xf32>
    %273 = math.exp %272 : vector<2x32xf32>
    %cst_159 = arith.constant 1.000000e+00 : f32
    %274 = vector.broadcast %cst_159 : f32 to vector<2x32xf32>
    %275 = arith.addf %274, %273 : vector<2x32xf32>
    %276 = arith.divf %274, %275 : vector<2x32xf32>
    %277 = vector.extract_strided_slice %265 {offsets = [0, 32], sizes = [2, 32], strides = [1, 1]} : vector<2x96xf32> to vector<2x32xf32>
    %278 = vector.extract_strided_slice %268 {offsets = [0, 32], sizes = [2, 32], strides = [1, 1]} : vector<2x96xf32> to vector<2x32xf32>
    %279 = arith.addf %277, %278 : vector<2x32xf32>
    %280 = arith.negf %279 : vector<2x32xf32>
    %281 = math.exp %280 : vector<2x32xf32>
    %cst_160 = arith.constant 1.000000e+00 : f32
    %282 = vector.broadcast %cst_160 : f32 to vector<2x32xf32>
    %283 = arith.addf %282, %281 : vector<2x32xf32>
    %284 = arith.divf %282, %283 : vector<2x32xf32>
    %285 = vector.extract_strided_slice %265 {offsets = [0, 64], sizes = [2, 32], strides = [1, 1]} : vector<2x96xf32> to vector<2x32xf32>
    %286 = vector.extract_strided_slice %268 {offsets = [0, 64], sizes = [2, 32], strides = [1, 1]} : vector<2x96xf32> to vector<2x32xf32>
    %287 = arith.mulf %276, %286 : vector<2x32xf32>
    %288 = arith.addf %285, %287 : vector<2x32xf32>
    %289 = math.tanh %288 : vector<2x32xf32>
    %cst_161 = arith.constant 1.000000e+00 : f32
    %290 = vector.broadcast %cst_161 : f32 to vector<2x32xf32>
    %291 = arith.subf %290, %284 : vector<2x32xf32>
    %292 = arith.mulf %291, %289 : vector<2x32xf32>
    %293 = arith.mulf %284, %243 : vector<2x32xf32>
    %294 = arith.addf %292, %293 : vector<2x32xf32>
    %c0_162 = arith.constant 0 : index
    %c0_163 = arith.constant 0 : index
    %295 = vector.load %arg27[%c0_162, %c0_163] : memref<46x32xf32, #tpu.memory_space<vmem>>, vector<2x32xf32>
    tpu.vector_store %arg27[%c0_162, %c0_163], %294 {strides = array<i32>} : memref<46x32xf32, #tpu.memory_space<vmem>>, vector<2x32xf32>,
    %296 = vector.extract_strided_slice %262 {offsets = [2, 0], sizes = [2, 96], strides = [1, 1]} : vector<46x96xf32> to vector<2x96xf32>
    %cst_164 = arith.constant dense<0.000000e+00> : vector<2x96xf32>
    %297 = tpu.matmul %294, %263, %cst_164 {dimension_numbers = #tpu.dot_dimension_numbers<[1], [0], [0], [1], [0, 0, 1, 1], [], []>} : vector<2x32xf32>, vector<32x96xf32>, vector<2x96xf32> -> vector<2x96xf32>
    %298 = vector.broadcast %264 : vector<1x96xf32> to vector<2x96xf32>
    %299 = arith.addf %297, %298 : vector<2x96xf32>
    %300 = vector.extract_strided_slice %296 {offsets = [0, 0], sizes = [2, 32], strides = [1, 1]} : vector<2x96xf32> to vector<2x32xf32>
    %301 = vector.extract_strided_slice %299 {offsets = [0, 0], sizes = [2, 32], strides = [1, 1]} : vector<2x96xf32> to vector<2x32xf32>
    %302 = arith.addf %300, %301 : vector<2x32xf32>
    %303 = arith.negf %302 : vector<2x32xf32>
    %304 = math.exp %303 : vector<2x32xf32>
    %cst_165 = arith.constant 1.000000e+00 : f32
    %305 = vector.broadcast %cst_165 : f32 to vector<2x32xf32>
    %306 = arith.addf %305, %304 : vector<2x32xf32>
    %307 = arith.divf %305, %306 : vector<2x32xf32>
    %308 = vector.extract_strided_slice %296 {offsets = [0, 32], sizes = [2, 32], strides = [1, 1]} : vector<2x96xf32> to vector<2x32xf32>
    %309 = vector.extract_strided_slice %299 {offsets = [0, 32], sizes = [2, 32], strides = [1, 1]} : vector<2x96xf32> to vector<2x32xf32>
    %310 = arith.addf %308, %309 : vector<2x32xf32>
    %311 = arith.negf %310 : vector<2x32xf32>
    %312 = math.exp %311 : vector<2x32xf32>
    %cst_166 = arith.constant 1.000000e+00 : f32
    %313 = vector.broadcast %cst_166 : f32 to vector<2x32xf32>
    %314 = arith.addf %313, %312 : vector<2x32xf32>
    %315 = arith.divf %313, %314 : vector<2x32xf32>
    %316 = vector.extract_strided_slice %296 {offsets = [0, 64], sizes = [2, 32], strides = [1, 1]} : vector<2x96xf32> to vector<2x32xf32>
    %317 = vector.extract_strided_slice %299 {offsets = [0, 64], sizes = [2, 32], strides = [1, 1]} : vector<2x96xf32> to vector<2x32xf32>
    %318 = arith.mulf %307, %317 : vector<2x32xf32>
    %319 = arith.addf %316, %318 : vector<2x32xf32>
    %320 = math.tanh %319 : vector<2x32xf32>
    %cst_167 = arith.constant 1.000000e+00 : f32
    %321 = vector.broadcast %cst_167 : f32 to vector<2x32xf32>
    %322 = arith.subf %321, %315 : vector<2x32xf32>
    %323 = arith.mulf %322, %320 : vector<2x32xf32>
    %324 = arith.mulf %315, %294 : vector<2x32xf32>
    %325 = arith.addf %323, %324 : vector<2x32xf32>
    %c2_168 = arith.constant 2 : index
    %c0_169 = arith.constant 0 : index
    %326 = vector.load %arg27[%c2_168, %c0_169] : memref<46x32xf32, #tpu.memory_space<vmem>>, vector<2x32xf32>
    tpu.vector_store %arg27[%c2_168, %c0_169], %325 {strides = array<i32>} : memref<46x32xf32, #tpu.memory_space<vmem>>, vector<2x32xf32>,
    %327 = vector.extract_strided_slice %262 {offsets = [4, 0], sizes = [2, 96], strides = [1, 1]} : vector<46x96xf32> to vector<2x96xf32>
    %cst_170 = arith.constant dense<0.000000e+00> : vector<2x96xf32>
    %328 = tpu.matmul %325, %263, %cst_170 {dimension_numbers = #tpu.dot_dimension_numbers<[1], [0], [0], [1], [0, 0, 1, 1], [], []>} : vector<2x32xf32>, vector<32x96xf32>, vector<2x96xf32> -> vector<2x96xf32>
    %329 = vector.broadcast %264 : vector<1x96xf32> to vector<2x96xf32>
    %330 = arith.addf %328, %329 : vector<2x96xf32>
    %331 = vector.extract_strided_slice %327 {offsets = [0, 0], sizes = [2, 32], strides = [1, 1]} : vector<2x96xf32> to vector<2x32xf32>
    %332 = vector.extract_strided_slice %330 {offsets = [0, 0], sizes = [2, 32], strides = [1, 1]} : vector<2x96xf32> to vector<2x32xf32>
    %333 = arith.addf %331, %332 : vector<2x32xf32>
    %334 = arith.negf %333 : vector<2x32xf32>
    %335 = math.exp %334 : vector<2x32xf32>
    %cst_171 = arith.constant 1.000000e+00 : f32
    %336 = vector.broadcast %cst_171 : f32 to vector<2x32xf32>
    %337 = arith.addf %336, %335 : vector<2x32xf32>
    %338 = arith.divf %336, %337 : vector<2x32xf32>
    %339 = vector.extract_strided_slice %327 {offsets = [0, 32], sizes = [2, 32], strides = [1, 1]} : vector<2x96xf32> to vector<2x32xf32>
    %340 = vector.extract_strided_slice %330 {offsets = [0, 32], sizes = [2, 32], strides = [1, 1]} : vector<2x96xf32> to vector<2x32xf32>
    %341 = arith.addf %339, %340 : vector<2x32xf32>
    %342 = arith.negf %341 : vector<2x32xf32>
    %343 = math.exp %342 : vector<2x32xf32>
    %cst_172 = arith.constant 1.000000e+00 : f32
    %344 = vector.broadcast %cst_172 : f32 to vector<2x32xf32>
    %345 = arith.addf %344, %343 : vector<2x32xf32>
    %346 = arith.divf %344, %345 : vector<2x32xf32>
    %347 = vector.extract_strided_slice %327 {offsets = [0, 64], sizes = [2, 32], strides = [1, 1]} : vector<2x96xf32> to vector<2x32xf32>
    %348 = vector.extract_strided_slice %330 {offsets = [0, 64], sizes = [2, 32], strides = [1, 1]} : vector<2x96xf32> to vector<2x32xf32>
    %349 = arith.mulf %338, %348 : vector<2x32xf32>
    %350 = arith.addf %347, %349 : vector<2x32xf32>
    %351 = math.tanh %350 : vector<2x32xf32>
    %cst_173 = arith.constant 1.000000e+00 : f32
    %352 = vector.broadcast %cst_173 : f32 to vector<2x32xf32>
    %353 = arith.subf %352, %346 : vector<2x32xf32>
    %354 = arith.mulf %353, %351 : vector<2x32xf32>
    %355 = arith.mulf %346, %325 : vector<2x32xf32>
    %356 = arith.addf %354, %355 : vector<2x32xf32>
    %c4_174 = arith.constant 4 : index
    %c0_175 = arith.constant 0 : index
    %357 = vector.load %arg27[%c4_174, %c0_175] : memref<46x32xf32, #tpu.memory_space<vmem>>, vector<2x32xf32>
    tpu.vector_store %arg27[%c4_174, %c0_175], %356 {strides = array<i32>} : memref<46x32xf32, #tpu.memory_space<vmem>>, vector<2x32xf32>,
    %358 = vector.extract_strided_slice %262 {offsets = [6, 0], sizes = [2, 96], strides = [1, 1]} : vector<46x96xf32> to vector<2x96xf32>
    %cst_176 = arith.constant dense<0.000000e+00> : vector<2x96xf32>
    %359 = tpu.matmul %356, %263, %cst_176 {dimension_numbers = #tpu.dot_dimension_numbers<[1], [0], [0], [1], [0, 0, 1, 1], [], []>} : vector<2x32xf32>, vector<32x96xf32>, vector<2x96xf32> -> vector<2x96xf32>
    %360 = vector.broadcast %264 : vector<1x96xf32> to vector<2x96xf32>
    %361 = arith.addf %359, %360 : vector<2x96xf32>
    %362 = vector.extract_strided_slice %358 {offsets = [0, 0], sizes = [2, 32], strides = [1, 1]} : vector<2x96xf32> to vector<2x32xf32>
    %363 = vector.extract_strided_slice %361 {offsets = [0, 0], sizes = [2, 32], strides = [1, 1]} : vector<2x96xf32> to vector<2x32xf32>
    %364 = arith.addf %362, %363 : vector<2x32xf32>
    %365 = arith.negf %364 : vector<2x32xf32>
    %366 = math.exp %365 : vector<2x32xf32>
    %cst_177 = arith.constant 1.000000e+00 : f32
    %367 = vector.broadcast %cst_177 : f32 to vector<2x32xf32>
    %368 = arith.addf %367, %366 : vector<2x32xf32>
    %369 = arith.divf %367, %368 : vector<2x32xf32>
    %370 = vector.extract_strided_slice %358 {offsets = [0, 32], sizes = [2, 32], strides = [1, 1]} : vector<2x96xf32> to vector<2x32xf32>
    %371 = vector.extract_strided_slice %361 {offsets = [0, 32], sizes = [2, 32], strides = [1, 1]} : vector<2x96xf32> to vector<2x32xf32>
    %372 = arith.addf %370, %371 : vector<2x32xf32>
    %373 = arith.negf %372 : vector<2x32xf32>
    %374 = math.exp %373 : vector<2x32xf32>
    %cst_178 = arith.constant 1.000000e+00 : f32
    %375 = vector.broadcast %cst_178 : f32 to vector<2x32xf32>
    %376 = arith.addf %375, %374 : vector<2x32xf32>
    %377 = arith.divf %375, %376 : vector<2x32xf32>
    %378 = vector.extract_strided_slice %358 {offsets = [0, 64], sizes = [2, 32], strides = [1, 1]} : vector<2x96xf32> to vector<2x32xf32>
    %379 = vector.extract_strided_slice %361 {offsets = [0, 64], sizes = [2, 32], strides = [1, 1]} : vector<2x96xf32> to vector<2x32xf32>
    %380 = arith.mulf %369, %379 : vector<2x32xf32>
    %381 = arith.addf %378, %380 : vector<2x32xf32>
    %382 = math.tanh %381 : vector<2x32xf32>
    %cst_179 = arith.constant 1.000000e+00 : f32
    %383 = vector.broadcast %cst_179 : f32 to vector<2x32xf32>
    %384 = arith.subf %383, %377 : vector<2x32xf32>
    %385 = arith.mulf %384, %382 : vector<2x32xf32>
    %386 = arith.mulf %377, %356 : vector<2x32xf32>
    %387 = arith.addf %385, %386 : vector<2x32xf32>
    %c6_180 = arith.constant 6 : index
    %c0_181 = arith.constant 0 : index
    %388 = vector.load %arg27[%c6_180, %c0_181] : memref<46x32xf32, #tpu.memory_space<vmem>>, vector<2x32xf32>
    tpu.vector_store %arg27[%c6_180, %c0_181], %387 {strides = array<i32>} : memref<46x32xf32, #tpu.memory_space<vmem>>, vector<2x32xf32>,
    %389 = vector.extract_strided_slice %262 {offsets = [8, 0], sizes = [2, 96], strides = [1, 1]} : vector<46x96xf32> to vector<2x96xf32>
    %cst_182 = arith.constant dense<0.000000e+00> : vector<2x96xf32>
    %390 = tpu.matmul %387, %263, %cst_182 {dimension_numbers = #tpu.dot_dimension_numbers<[1], [0], [0], [1], [0, 0, 1, 1], [], []>} : vector<2x32xf32>, vector<32x96xf32>, vector<2x96xf32> -> vector<2x96xf32>
    %391 = vector.broadcast %264 : vector<1x96xf32> to vector<2x96xf32>
    %392 = arith.addf %390, %391 : vector<2x96xf32>
    %393 = vector.extract_strided_slice %389 {offsets = [0, 0], sizes = [2, 32], strides = [1, 1]} : vector<2x96xf32> to vector<2x32xf32>
    %394 = vector.extract_strided_slice %392 {offsets = [0, 0], sizes = [2, 32], strides = [1, 1]} : vector<2x96xf32> to vector<2x32xf32>
    %395 = arith.addf %393, %394 : vector<2x32xf32>
    %396 = arith.negf %395 : vector<2x32xf32>
    %397 = math.exp %396 : vector<2x32xf32>
    %cst_183 = arith.constant 1.000000e+00 : f32
    %398 = vector.broadcast %cst_183 : f32 to vector<2x32xf32>
    %399 = arith.addf %398, %397 : vector<2x32xf32>
    %400 = arith.divf %398, %399 : vector<2x32xf32>
    %401 = vector.extract_strided_slice %389 {offsets = [0, 32], sizes = [2, 32], strides = [1, 1]} : vector<2x96xf32> to vector<2x32xf32>
    %402 = vector.extract_strided_slice %392 {offsets = [0, 32], sizes = [2, 32], strides = [1, 1]} : vector<2x96xf32> to vector<2x32xf32>
    %403 = arith.addf %401, %402 : vector<2x32xf32>
    %404 = arith.negf %403 : vector<2x32xf32>
    %405 = math.exp %404 : vector<2x32xf32>
    %cst_184 = arith.constant 1.000000e+00 : f32
    %406 = vector.broadcast %cst_184 : f32 to vector<2x32xf32>
    %407 = arith.addf %406, %405 : vector<2x32xf32>
    %408 = arith.divf %406, %407 : vector<2x32xf32>
    %409 = vector.extract_strided_slice %389 {offsets = [0, 64], sizes = [2, 32], strides = [1, 1]} : vector<2x96xf32> to vector<2x32xf32>
    %410 = vector.extract_strided_slice %392 {offsets = [0, 64], sizes = [2, 32], strides = [1, 1]} : vector<2x96xf32> to vector<2x32xf32>
    %411 = arith.mulf %400, %410 : vector<2x32xf32>
    %412 = arith.addf %409, %411 : vector<2x32xf32>
    %413 = math.tanh %412 : vector<2x32xf32>
    %cst_185 = arith.constant 1.000000e+00 : f32
    %414 = vector.broadcast %cst_185 : f32 to vector<2x32xf32>
    %415 = arith.subf %414, %408 : vector<2x32xf32>
    %416 = arith.mulf %415, %413 : vector<2x32xf32>
    %417 = arith.mulf %408, %387 : vector<2x32xf32>
    %418 = arith.addf %416, %417 : vector<2x32xf32>
    %c8_186 = arith.constant 8 : index
    %c0_187 = arith.constant 0 : index
    %419 = vector.load %arg27[%c8_186, %c0_187] : memref<46x32xf32, #tpu.memory_space<vmem>>, vector<2x32xf32>
    tpu.vector_store %arg27[%c8_186, %c0_187], %418 {strides = array<i32>} : memref<46x32xf32, #tpu.memory_space<vmem>>, vector<2x32xf32>,
    %420 = vector.extract_strided_slice %262 {offsets = [10, 0], sizes = [2, 96], strides = [1, 1]} : vector<46x96xf32> to vector<2x96xf32>
    %cst_188 = arith.constant dense<0.000000e+00> : vector<2x96xf32>
    %421 = tpu.matmul %418, %263, %cst_188 {dimension_numbers = #tpu.dot_dimension_numbers<[1], [0], [0], [1], [0, 0, 1, 1], [], []>} : vector<2x32xf32>, vector<32x96xf32>, vector<2x96xf32> -> vector<2x96xf32>
    %422 = vector.broadcast %264 : vector<1x96xf32> to vector<2x96xf32>
    %423 = arith.addf %421, %422 : vector<2x96xf32>
    %424 = vector.extract_strided_slice %420 {offsets = [0, 0], sizes = [2, 32], strides = [1, 1]} : vector<2x96xf32> to vector<2x32xf32>
    %425 = vector.extract_strided_slice %423 {offsets = [0, 0], sizes = [2, 32], strides = [1, 1]} : vector<2x96xf32> to vector<2x32xf32>
    %426 = arith.addf %424, %425 : vector<2x32xf32>
    %427 = arith.negf %426 : vector<2x32xf32>
    %428 = math.exp %427 : vector<2x32xf32>
    %cst_189 = arith.constant 1.000000e+00 : f32
    %429 = vector.broadcast %cst_189 : f32 to vector<2x32xf32>
    %430 = arith.addf %429, %428 : vector<2x32xf32>
    %431 = arith.divf %429, %430 : vector<2x32xf32>
    %432 = vector.extract_strided_slice %420 {offsets = [0, 32], sizes = [2, 32], strides = [1, 1]} : vector<2x96xf32> to vector<2x32xf32>
    %433 = vector.extract_strided_slice %423 {offsets = [0, 32], sizes = [2, 32], strides = [1, 1]} : vector<2x96xf32> to vector<2x32xf32>
    %434 = arith.addf %432, %433 : vector<2x32xf32>
    %435 = arith.negf %434 : vector<2x32xf32>
    %436 = math.exp %435 : vector<2x32xf32>
    %cst_190 = arith.constant 1.000000e+00 : f32
    %437 = vector.broadcast %cst_190 : f32 to vector<2x32xf32>
    %438 = arith.addf %437, %436 : vector<2x32xf32>
    %439 = arith.divf %437, %438 : vector<2x32xf32>
    %440 = vector.extract_strided_slice %420 {offsets = [0, 64], sizes = [2, 32], strides = [1, 1]} : vector<2x96xf32> to vector<2x32xf32>
    %441 = vector.extract_strided_slice %423 {offsets = [0, 64], sizes = [2, 32], strides = [1, 1]} : vector<2x96xf32> to vector<2x32xf32>
    %442 = arith.mulf %431, %441 : vector<2x32xf32>
    %443 = arith.addf %440, %442 : vector<2x32xf32>
    %444 = math.tanh %443 : vector<2x32xf32>
    %cst_191 = arith.constant 1.000000e+00 : f32
    %445 = vector.broadcast %cst_191 : f32 to vector<2x32xf32>
    %446 = arith.subf %445, %439 : vector<2x32xf32>
    %447 = arith.mulf %446, %444 : vector<2x32xf32>
    %448 = arith.mulf %439, %418 : vector<2x32xf32>
    %449 = arith.addf %447, %448 : vector<2x32xf32>
    %c10_192 = arith.constant 10 : index
    %c0_193 = arith.constant 0 : index
    %450 = vector.load %arg27[%c10_192, %c0_193] : memref<46x32xf32, #tpu.memory_space<vmem>>, vector<2x32xf32>
    tpu.vector_store %arg27[%c10_192, %c0_193], %449 {strides = array<i32>} : memref<46x32xf32, #tpu.memory_space<vmem>>, vector<2x32xf32>,
    %451 = vector.extract_strided_slice %262 {offsets = [12, 0], sizes = [2, 96], strides = [1, 1]} : vector<46x96xf32> to vector<2x96xf32>
    %cst_194 = arith.constant dense<0.000000e+00> : vector<2x96xf32>
    %452 = tpu.matmul %449, %263, %cst_194 {dimension_numbers = #tpu.dot_dimension_numbers<[1], [0], [0], [1], [0, 0, 1, 1], [], []>} : vector<2x32xf32>, vector<32x96xf32>, vector<2x96xf32> -> vector<2x96xf32>
    %453 = vector.broadcast %264 : vector<1x96xf32> to vector<2x96xf32>
    %454 = arith.addf %452, %453 : vector<2x96xf32>
    %455 = vector.extract_strided_slice %451 {offsets = [0, 0], sizes = [2, 32], strides = [1, 1]} : vector<2x96xf32> to vector<2x32xf32>
    %456 = vector.extract_strided_slice %454 {offsets = [0, 0], sizes = [2, 32], strides = [1, 1]} : vector<2x96xf32> to vector<2x32xf32>
    %457 = arith.addf %455, %456 : vector<2x32xf32>
    %458 = arith.negf %457 : vector<2x32xf32>
    %459 = math.exp %458 : vector<2x32xf32>
    %cst_195 = arith.constant 1.000000e+00 : f32
    %460 = vector.broadcast %cst_195 : f32 to vector<2x32xf32>
    %461 = arith.addf %460, %459 : vector<2x32xf32>
    %462 = arith.divf %460, %461 : vector<2x32xf32>
    %463 = vector.extract_strided_slice %451 {offsets = [0, 32], sizes = [2, 32], strides = [1, 1]} : vector<2x96xf32> to vector<2x32xf32>
    %464 = vector.extract_strided_slice %454 {offsets = [0, 32], sizes = [2, 32], strides = [1, 1]} : vector<2x96xf32> to vector<2x32xf32>
    %465 = arith.addf %463, %464 : vector<2x32xf32>
    %466 = arith.negf %465 : vector<2x32xf32>
    %467 = math.exp %466 : vector<2x32xf32>
    %cst_196 = arith.constant 1.000000e+00 : f32
    %468 = vector.broadcast %cst_196 : f32 to vector<2x32xf32>
    %469 = arith.addf %468, %467 : vector<2x32xf32>
    %470 = arith.divf %468, %469 : vector<2x32xf32>
    %471 = vector.extract_strided_slice %451 {offsets = [0, 64], sizes = [2, 32], strides = [1, 1]} : vector<2x96xf32> to vector<2x32xf32>
    %472 = vector.extract_strided_slice %454 {offsets = [0, 64], sizes = [2, 32], strides = [1, 1]} : vector<2x96xf32> to vector<2x32xf32>
    %473 = arith.mulf %462, %472 : vector<2x32xf32>
    %474 = arith.addf %471, %473 : vector<2x32xf32>
    %475 = math.tanh %474 : vector<2x32xf32>
    %cst_197 = arith.constant 1.000000e+00 : f32
    %476 = vector.broadcast %cst_197 : f32 to vector<2x32xf32>
    %477 = arith.subf %476, %470 : vector<2x32xf32>
    %478 = arith.mulf %477, %475 : vector<2x32xf32>
    %479 = arith.mulf %470, %449 : vector<2x32xf32>
    %480 = arith.addf %478, %479 : vector<2x32xf32>
    %c12 = arith.constant 12 : index
    %c0_198 = arith.constant 0 : index
    %481 = vector.load %arg27[%c12, %c0_198] : memref<46x32xf32, #tpu.memory_space<vmem>>, vector<2x32xf32>
    tpu.vector_store %arg27[%c12, %c0_198], %480 {strides = array<i32>} : memref<46x32xf32, #tpu.memory_space<vmem>>, vector<2x32xf32>,
    %482 = vector.extract_strided_slice %262 {offsets = [14, 0], sizes = [2, 96], strides = [1, 1]} : vector<46x96xf32> to vector<2x96xf32>
    %cst_199 = arith.constant dense<0.000000e+00> : vector<2x96xf32>
    %483 = tpu.matmul %480, %263, %cst_199 {dimension_numbers = #tpu.dot_dimension_numbers<[1], [0], [0], [1], [0, 0, 1, 1], [], []>} : vector<2x32xf32>, vector<32x96xf32>, vector<2x96xf32> -> vector<2x96xf32>
    %484 = vector.broadcast %264 : vector<1x96xf32> to vector<2x96xf32>
    %485 = arith.addf %483, %484 : vector<2x96xf32>
    %486 = vector.extract_strided_slice %482 {offsets = [0, 0], sizes = [2, 32], strides = [1, 1]} : vector<2x96xf32> to vector<2x32xf32>
    %487 = vector.extract_strided_slice %485 {offsets = [0, 0], sizes = [2, 32], strides = [1, 1]} : vector<2x96xf32> to vector<2x32xf32>
    %488 = arith.addf %486, %487 : vector<2x32xf32>
    %489 = arith.negf %488 : vector<2x32xf32>
    %490 = math.exp %489 : vector<2x32xf32>
    %cst_200 = arith.constant 1.000000e+00 : f32
    %491 = vector.broadcast %cst_200 : f32 to vector<2x32xf32>
    %492 = arith.addf %491, %490 : vector<2x32xf32>
    %493 = arith.divf %491, %492 : vector<2x32xf32>
    %494 = vector.extract_strided_slice %482 {offsets = [0, 32], sizes = [2, 32], strides = [1, 1]} : vector<2x96xf32> to vector<2x32xf32>
    %495 = vector.extract_strided_slice %485 {offsets = [0, 32], sizes = [2, 32], strides = [1, 1]} : vector<2x96xf32> to vector<2x32xf32>
    %496 = arith.addf %494, %495 : vector<2x32xf32>
    %497 = arith.negf %496 : vector<2x32xf32>
    %498 = math.exp %497 : vector<2x32xf32>
    %cst_201 = arith.constant 1.000000e+00 : f32
    %499 = vector.broadcast %cst_201 : f32 to vector<2x32xf32>
    %500 = arith.addf %499, %498 : vector<2x32xf32>
    %501 = arith.divf %499, %500 : vector<2x32xf32>
    %502 = vector.extract_strided_slice %482 {offsets = [0, 64], sizes = [2, 32], strides = [1, 1]} : vector<2x96xf32> to vector<2x32xf32>
    %503 = vector.extract_strided_slice %485 {offsets = [0, 64], sizes = [2, 32], strides = [1, 1]} : vector<2x96xf32> to vector<2x32xf32>
    %504 = arith.mulf %493, %503 : vector<2x32xf32>
    %505 = arith.addf %502, %504 : vector<2x32xf32>
    %506 = math.tanh %505 : vector<2x32xf32>
    %cst_202 = arith.constant 1.000000e+00 : f32
    %507 = vector.broadcast %cst_202 : f32 to vector<2x32xf32>
    %508 = arith.subf %507, %501 : vector<2x32xf32>
    %509 = arith.mulf %508, %506 : vector<2x32xf32>
    %510 = arith.mulf %501, %480 : vector<2x32xf32>
    %511 = arith.addf %509, %510 : vector<2x32xf32>
    %c14 = arith.constant 14 : index
    %c0_203 = arith.constant 0 : index
    %512 = vector.load %arg27[%c14, %c0_203] : memref<46x32xf32, #tpu.memory_space<vmem>>, vector<2x32xf32>
    tpu.vector_store %arg27[%c14, %c0_203], %511 {strides = array<i32>} : memref<46x32xf32, #tpu.memory_space<vmem>>, vector<2x32xf32>,
    %513 = vector.extract_strided_slice %262 {offsets = [16, 0], sizes = [2, 96], strides = [1, 1]} : vector<46x96xf32> to vector<2x96xf32>
    %cst_204 = arith.constant dense<0.000000e+00> : vector<2x96xf32>
    %514 = tpu.matmul %511, %263, %cst_204 {dimension_numbers = #tpu.dot_dimension_numbers<[1], [0], [0], [1], [0, 0, 1, 1], [], []>} : vector<2x32xf32>, vector<32x96xf32>, vector<2x96xf32> -> vector<2x96xf32>
    %515 = vector.broadcast %264 : vector<1x96xf32> to vector<2x96xf32>
    %516 = arith.addf %514, %515 : vector<2x96xf32>
    %517 = vector.extract_strided_slice %513 {offsets = [0, 0], sizes = [2, 32], strides = [1, 1]} : vector<2x96xf32> to vector<2x32xf32>
    %518 = vector.extract_strided_slice %516 {offsets = [0, 0], sizes = [2, 32], strides = [1, 1]} : vector<2x96xf32> to vector<2x32xf32>
    %519 = arith.addf %517, %518 : vector<2x32xf32>
    %520 = arith.negf %519 : vector<2x32xf32>
    %521 = math.exp %520 : vector<2x32xf32>
    %cst_205 = arith.constant 1.000000e+00 : f32
    %522 = vector.broadcast %cst_205 : f32 to vector<2x32xf32>
    %523 = arith.addf %522, %521 : vector<2x32xf32>
    %524 = arith.divf %522, %523 : vector<2x32xf32>
    %525 = vector.extract_strided_slice %513 {offsets = [0, 32], sizes = [2, 32], strides = [1, 1]} : vector<2x96xf32> to vector<2x32xf32>
    %526 = vector.extract_strided_slice %516 {offsets = [0, 32], sizes = [2, 32], strides = [1, 1]} : vector<2x96xf32> to vector<2x32xf32>
    %527 = arith.addf %525, %526 : vector<2x32xf32>
    %528 = arith.negf %527 : vector<2x32xf32>
    %529 = math.exp %528 : vector<2x32xf32>
    %cst_206 = arith.constant 1.000000e+00 : f32
    %530 = vector.broadcast %cst_206 : f32 to vector<2x32xf32>
    %531 = arith.addf %530, %529 : vector<2x32xf32>
    %532 = arith.divf %530, %531 : vector<2x32xf32>
    %533 = vector.extract_strided_slice %513 {offsets = [0, 64], sizes = [2, 32], strides = [1, 1]} : vector<2x96xf32> to vector<2x32xf32>
    %534 = vector.extract_strided_slice %516 {offsets = [0, 64], sizes = [2, 32], strides = [1, 1]} : vector<2x96xf32> to vector<2x32xf32>
    %535 = arith.mulf %524, %534 : vector<2x32xf32>
    %536 = arith.addf %533, %535 : vector<2x32xf32>
    %537 = math.tanh %536 : vector<2x32xf32>
    %cst_207 = arith.constant 1.000000e+00 : f32
    %538 = vector.broadcast %cst_207 : f32 to vector<2x32xf32>
    %539 = arith.subf %538, %532 : vector<2x32xf32>
    %540 = arith.mulf %539, %537 : vector<2x32xf32>
    %541 = arith.mulf %532, %511 : vector<2x32xf32>
    %542 = arith.addf %540, %541 : vector<2x32xf32>
    %c16 = arith.constant 16 : index
    %c0_208 = arith.constant 0 : index
    %543 = vector.load %arg27[%c16, %c0_208] : memref<46x32xf32, #tpu.memory_space<vmem>>, vector<2x32xf32>
    tpu.vector_store %arg27[%c16, %c0_208], %542 {strides = array<i32>} : memref<46x32xf32, #tpu.memory_space<vmem>>, vector<2x32xf32>,
    %544 = vector.extract_strided_slice %262 {offsets = [18, 0], sizes = [2, 96], strides = [1, 1]} : vector<46x96xf32> to vector<2x96xf32>
    %cst_209 = arith.constant dense<0.000000e+00> : vector<2x96xf32>
    %545 = tpu.matmul %542, %263, %cst_209 {dimension_numbers = #tpu.dot_dimension_numbers<[1], [0], [0], [1], [0, 0, 1, 1], [], []>} : vector<2x32xf32>, vector<32x96xf32>, vector<2x96xf32> -> vector<2x96xf32>
    %546 = vector.broadcast %264 : vector<1x96xf32> to vector<2x96xf32>
    %547 = arith.addf %545, %546 : vector<2x96xf32>
    %548 = vector.extract_strided_slice %544 {offsets = [0, 0], sizes = [2, 32], strides = [1, 1]} : vector<2x96xf32> to vector<2x32xf32>
    %549 = vector.extract_strided_slice %547 {offsets = [0, 0], sizes = [2, 32], strides = [1, 1]} : vector<2x96xf32> to vector<2x32xf32>
    %550 = arith.addf %548, %549 : vector<2x32xf32>
    %551 = arith.negf %550 : vector<2x32xf32>
    %552 = math.exp %551 : vector<2x32xf32>
    %cst_210 = arith.constant 1.000000e+00 : f32
    %553 = vector.broadcast %cst_210 : f32 to vector<2x32xf32>
    %554 = arith.addf %553, %552 : vector<2x32xf32>
    %555 = arith.divf %553, %554 : vector<2x32xf32>
    %556 = vector.extract_strided_slice %544 {offsets = [0, 32], sizes = [2, 32], strides = [1, 1]} : vector<2x96xf32> to vector<2x32xf32>
    %557 = vector.extract_strided_slice %547 {offsets = [0, 32], sizes = [2, 32], strides = [1, 1]} : vector<2x96xf32> to vector<2x32xf32>
    %558 = arith.addf %556, %557 : vector<2x32xf32>
    %559 = arith.negf %558 : vector<2x32xf32>
    %560 = math.exp %559 : vector<2x32xf32>
    %cst_211 = arith.constant 1.000000e+00 : f32
    %561 = vector.broadcast %cst_211 : f32 to vector<2x32xf32>
    %562 = arith.addf %561, %560 : vector<2x32xf32>
    %563 = arith.divf %561, %562 : vector<2x32xf32>
    %564 = vector.extract_strided_slice %544 {offsets = [0, 64], sizes = [2, 32], strides = [1, 1]} : vector<2x96xf32> to vector<2x32xf32>
    %565 = vector.extract_strided_slice %547 {offsets = [0, 64], sizes = [2, 32], strides = [1, 1]} : vector<2x96xf32> to vector<2x32xf32>
    %566 = arith.mulf %555, %565 : vector<2x32xf32>
    %567 = arith.addf %564, %566 : vector<2x32xf32>
    %568 = math.tanh %567 : vector<2x32xf32>
    %cst_212 = arith.constant 1.000000e+00 : f32
    %569 = vector.broadcast %cst_212 : f32 to vector<2x32xf32>
    %570 = arith.subf %569, %563 : vector<2x32xf32>
    %571 = arith.mulf %570, %568 : vector<2x32xf32>
    %572 = arith.mulf %563, %542 : vector<2x32xf32>
    %573 = arith.addf %571, %572 : vector<2x32xf32>
    %c18 = arith.constant 18 : index
    %c0_213 = arith.constant 0 : index
    %574 = vector.load %arg27[%c18, %c0_213] : memref<46x32xf32, #tpu.memory_space<vmem>>, vector<2x32xf32>
    tpu.vector_store %arg27[%c18, %c0_213], %573 {strides = array<i32>} : memref<46x32xf32, #tpu.memory_space<vmem>>, vector<2x32xf32>,
    %575 = vector.extract_strided_slice %262 {offsets = [20, 0], sizes = [2, 96], strides = [1, 1]} : vector<46x96xf32> to vector<2x96xf32>
    %cst_214 = arith.constant dense<0.000000e+00> : vector<2x96xf32>
    %576 = tpu.matmul %573, %263, %cst_214 {dimension_numbers = #tpu.dot_dimension_numbers<[1], [0], [0], [1], [0, 0, 1, 1], [], []>} : vector<2x32xf32>, vector<32x96xf32>, vector<2x96xf32> -> vector<2x96xf32>
    %577 = vector.broadcast %264 : vector<1x96xf32> to vector<2x96xf32>
    %578 = arith.addf %576, %577 : vector<2x96xf32>
    %579 = vector.extract_strided_slice %575 {offsets = [0, 0], sizes = [2, 32], strides = [1, 1]} : vector<2x96xf32> to vector<2x32xf32>
    %580 = vector.extract_strided_slice %578 {offsets = [0, 0], sizes = [2, 32], strides = [1, 1]} : vector<2x96xf32> to vector<2x32xf32>
    %581 = arith.addf %579, %580 : vector<2x32xf32>
    %582 = arith.negf %581 : vector<2x32xf32>
    %583 = math.exp %582 : vector<2x32xf32>
    %cst_215 = arith.constant 1.000000e+00 : f32
    %584 = vector.broadcast %cst_215 : f32 to vector<2x32xf32>
    %585 = arith.addf %584, %583 : vector<2x32xf32>
    %586 = arith.divf %584, %585 : vector<2x32xf32>
    %587 = vector.extract_strided_slice %575 {offsets = [0, 32], sizes = [2, 32], strides = [1, 1]} : vector<2x96xf32> to vector<2x32xf32>
    %588 = vector.extract_strided_slice %578 {offsets = [0, 32], sizes = [2, 32], strides = [1, 1]} : vector<2x96xf32> to vector<2x32xf32>
    %589 = arith.addf %587, %588 : vector<2x32xf32>
    %590 = arith.negf %589 : vector<2x32xf32>
    %591 = math.exp %590 : vector<2x32xf32>
    %cst_216 = arith.constant 1.000000e+00 : f32
    %592 = vector.broadcast %cst_216 : f32 to vector<2x32xf32>
    %593 = arith.addf %592, %591 : vector<2x32xf32>
    %594 = arith.divf %592, %593 : vector<2x32xf32>
    %595 = vector.extract_strided_slice %575 {offsets = [0, 64], sizes = [2, 32], strides = [1, 1]} : vector<2x96xf32> to vector<2x32xf32>
    %596 = vector.extract_strided_slice %578 {offsets = [0, 64], sizes = [2, 32], strides = [1, 1]} : vector<2x96xf32> to vector<2x32xf32>
    %597 = arith.mulf %586, %596 : vector<2x32xf32>
    %598 = arith.addf %595, %597 : vector<2x32xf32>
    %599 = math.tanh %598 : vector<2x32xf32>
    %cst_217 = arith.constant 1.000000e+00 : f32
    %600 = vector.broadcast %cst_217 : f32 to vector<2x32xf32>
    %601 = arith.subf %600, %594 : vector<2x32xf32>
    %602 = arith.mulf %601, %599 : vector<2x32xf32>
    %603 = arith.mulf %594, %573 : vector<2x32xf32>
    %604 = arith.addf %602, %603 : vector<2x32xf32>
    %c20 = arith.constant 20 : index
    %c0_218 = arith.constant 0 : index
    %605 = vector.load %arg27[%c20, %c0_218] : memref<46x32xf32, #tpu.memory_space<vmem>>, vector<2x32xf32>
    tpu.vector_store %arg27[%c20, %c0_218], %604 {strides = array<i32>} : memref<46x32xf32, #tpu.memory_space<vmem>>, vector<2x32xf32>,
    %606 = vector.extract_strided_slice %262 {offsets = [22, 0], sizes = [2, 96], strides = [1, 1]} : vector<46x96xf32> to vector<2x96xf32>
    %cst_219 = arith.constant dense<0.000000e+00> : vector<2x96xf32>
    %607 = tpu.matmul %604, %263, %cst_219 {dimension_numbers = #tpu.dot_dimension_numbers<[1], [0], [0], [1], [0, 0, 1, 1], [], []>} : vector<2x32xf32>, vector<32x96xf32>, vector<2x96xf32> -> vector<2x96xf32>
    %608 = vector.broadcast %264 : vector<1x96xf32> to vector<2x96xf32>
    %609 = arith.addf %607, %608 : vector<2x96xf32>
    %610 = vector.extract_strided_slice %606 {offsets = [0, 0], sizes = [2, 32], strides = [1, 1]} : vector<2x96xf32> to vector<2x32xf32>
    %611 = vector.extract_strided_slice %609 {offsets = [0, 0], sizes = [2, 32], strides = [1, 1]} : vector<2x96xf32> to vector<2x32xf32>
    %612 = arith.addf %610, %611 : vector<2x32xf32>
    %613 = arith.negf %612 : vector<2x32xf32>
    %614 = math.exp %613 : vector<2x32xf32>
    %cst_220 = arith.constant 1.000000e+00 : f32
    %615 = vector.broadcast %cst_220 : f32 to vector<2x32xf32>
    %616 = arith.addf %615, %614 : vector<2x32xf32>
    %617 = arith.divf %615, %616 : vector<2x32xf32>
    %618 = vector.extract_strided_slice %606 {offsets = [0, 32], sizes = [2, 32], strides = [1, 1]} : vector<2x96xf32> to vector<2x32xf32>
    %619 = vector.extract_strided_slice %609 {offsets = [0, 32], sizes = [2, 32], strides = [1, 1]} : vector<2x96xf32> to vector<2x32xf32>
    %620 = arith.addf %618, %619 : vector<2x32xf32>
    %621 = arith.negf %620 : vector<2x32xf32>
    %622 = math.exp %621 : vector<2x32xf32>
    %cst_221 = arith.constant 1.000000e+00 : f32
    %623 = vector.broadcast %cst_221 : f32 to vector<2x32xf32>
    %624 = arith.addf %623, %622 : vector<2x32xf32>
    %625 = arith.divf %623, %624 : vector<2x32xf32>
    %626 = vector.extract_strided_slice %606 {offsets = [0, 64], sizes = [2, 32], strides = [1, 1]} : vector<2x96xf32> to vector<2x32xf32>
    %627 = vector.extract_strided_slice %609 {offsets = [0, 64], sizes = [2, 32], strides = [1, 1]} : vector<2x96xf32> to vector<2x32xf32>
    %628 = arith.mulf %617, %627 : vector<2x32xf32>
    %629 = arith.addf %626, %628 : vector<2x32xf32>
    %630 = math.tanh %629 : vector<2x32xf32>
    %cst_222 = arith.constant 1.000000e+00 : f32
    %631 = vector.broadcast %cst_222 : f32 to vector<2x32xf32>
    %632 = arith.subf %631, %625 : vector<2x32xf32>
    %633 = arith.mulf %632, %630 : vector<2x32xf32>
    %634 = arith.mulf %625, %604 : vector<2x32xf32>
    %635 = arith.addf %633, %634 : vector<2x32xf32>
    %c22 = arith.constant 22 : index
    %c0_223 = arith.constant 0 : index
    %636 = vector.load %arg27[%c22, %c0_223] : memref<46x32xf32, #tpu.memory_space<vmem>>, vector<2x32xf32>
    tpu.vector_store %arg27[%c22, %c0_223], %635 {strides = array<i32>} : memref<46x32xf32, #tpu.memory_space<vmem>>, vector<2x32xf32>,
    %637 = vector.extract_strided_slice %262 {offsets = [24, 0], sizes = [2, 96], strides = [1, 1]} : vector<46x96xf32> to vector<2x96xf32>
    %cst_224 = arith.constant dense<0.000000e+00> : vector<2x96xf32>
    %638 = tpu.matmul %635, %263, %cst_224 {dimension_numbers = #tpu.dot_dimension_numbers<[1], [0], [0], [1], [0, 0, 1, 1], [], []>} : vector<2x32xf32>, vector<32x96xf32>, vector<2x96xf32> -> vector<2x96xf32>
    %639 = vector.broadcast %264 : vector<1x96xf32> to vector<2x96xf32>
    %640 = arith.addf %638, %639 : vector<2x96xf32>
    %641 = vector.extract_strided_slice %637 {offsets = [0, 0], sizes = [2, 32], strides = [1, 1]} : vector<2x96xf32> to vector<2x32xf32>
    %642 = vector.extract_strided_slice %640 {offsets = [0, 0], sizes = [2, 32], strides = [1, 1]} : vector<2x96xf32> to vector<2x32xf32>
    %643 = arith.addf %641, %642 : vector<2x32xf32>
    %644 = arith.negf %643 : vector<2x32xf32>
    %645 = math.exp %644 : vector<2x32xf32>
    %cst_225 = arith.constant 1.000000e+00 : f32
    %646 = vector.broadcast %cst_225 : f32 to vector<2x32xf32>
    %647 = arith.addf %646, %645 : vector<2x32xf32>
    %648 = arith.divf %646, %647 : vector<2x32xf32>
    %649 = vector.extract_strided_slice %637 {offsets = [0, 32], sizes = [2, 32], strides = [1, 1]} : vector<2x96xf32> to vector<2x32xf32>
    %650 = vector.extract_strided_slice %640 {offsets = [0, 32], sizes = [2, 32], strides = [1, 1]} : vector<2x96xf32> to vector<2x32xf32>
    %651 = arith.addf %649, %650 : vector<2x32xf32>
    %652 = arith.negf %651 : vector<2x32xf32>
    %653 = math.exp %652 : vector<2x32xf32>
    %cst_226 = arith.constant 1.000000e+00 : f32
    %654 = vector.broadcast %cst_226 : f32 to vector<2x32xf32>
    %655 = arith.addf %654, %653 : vector<2x32xf32>
    %656 = arith.divf %654, %655 : vector<2x32xf32>
    %657 = vector.extract_strided_slice %637 {offsets = [0, 64], sizes = [2, 32], strides = [1, 1]} : vector<2x96xf32> to vector<2x32xf32>
    %658 = vector.extract_strided_slice %640 {offsets = [0, 64], sizes = [2, 32], strides = [1, 1]} : vector<2x96xf32> to vector<2x32xf32>
    %659 = arith.mulf %648, %658 : vector<2x32xf32>
    %660 = arith.addf %657, %659 : vector<2x32xf32>
    %661 = math.tanh %660 : vector<2x32xf32>
    %cst_227 = arith.constant 1.000000e+00 : f32
    %662 = vector.broadcast %cst_227 : f32 to vector<2x32xf32>
    %663 = arith.subf %662, %656 : vector<2x32xf32>
    %664 = arith.mulf %663, %661 : vector<2x32xf32>
    %665 = arith.mulf %656, %635 : vector<2x32xf32>
    %666 = arith.addf %664, %665 : vector<2x32xf32>
    %c24 = arith.constant 24 : index
    %c0_228 = arith.constant 0 : index
    %667 = vector.load %arg27[%c24, %c0_228] : memref<46x32xf32, #tpu.memory_space<vmem>>, vector<2x32xf32>
    tpu.vector_store %arg27[%c24, %c0_228], %666 {strides = array<i32>} : memref<46x32xf32, #tpu.memory_space<vmem>>, vector<2x32xf32>,
    %668 = vector.extract_strided_slice %262 {offsets = [26, 0], sizes = [2, 96], strides = [1, 1]} : vector<46x96xf32> to vector<2x96xf32>
    %cst_229 = arith.constant dense<0.000000e+00> : vector<2x96xf32>
    %669 = tpu.matmul %666, %263, %cst_229 {dimension_numbers = #tpu.dot_dimension_numbers<[1], [0], [0], [1], [0, 0, 1, 1], [], []>} : vector<2x32xf32>, vector<32x96xf32>, vector<2x96xf32> -> vector<2x96xf32>
    %670 = vector.broadcast %264 : vector<1x96xf32> to vector<2x96xf32>
    %671 = arith.addf %669, %670 : vector<2x96xf32>
    %672 = vector.extract_strided_slice %668 {offsets = [0, 0], sizes = [2, 32], strides = [1, 1]} : vector<2x96xf32> to vector<2x32xf32>
    %673 = vector.extract_strided_slice %671 {offsets = [0, 0], sizes = [2, 32], strides = [1, 1]} : vector<2x96xf32> to vector<2x32xf32>
    %674 = arith.addf %672, %673 : vector<2x32xf32>
    %675 = arith.negf %674 : vector<2x32xf32>
    %676 = math.exp %675 : vector<2x32xf32>
    %cst_230 = arith.constant 1.000000e+00 : f32
    %677 = vector.broadcast %cst_230 : f32 to vector<2x32xf32>
    %678 = arith.addf %677, %676 : vector<2x32xf32>
    %679 = arith.divf %677, %678 : vector<2x32xf32>
    %680 = vector.extract_strided_slice %668 {offsets = [0, 32], sizes = [2, 32], strides = [1, 1]} : vector<2x96xf32> to vector<2x32xf32>
    %681 = vector.extract_strided_slice %671 {offsets = [0, 32], sizes = [2, 32], strides = [1, 1]} : vector<2x96xf32> to vector<2x32xf32>
    %682 = arith.addf %680, %681 : vector<2x32xf32>
    %683 = arith.negf %682 : vector<2x32xf32>
    %684 = math.exp %683 : vector<2x32xf32>
    %cst_231 = arith.constant 1.000000e+00 : f32
    %685 = vector.broadcast %cst_231 : f32 to vector<2x32xf32>
    %686 = arith.addf %685, %684 : vector<2x32xf32>
    %687 = arith.divf %685, %686 : vector<2x32xf32>
    %688 = vector.extract_strided_slice %668 {offsets = [0, 64], sizes = [2, 32], strides = [1, 1]} : vector<2x96xf32> to vector<2x32xf32>
    %689 = vector.extract_strided_slice %671 {offsets = [0, 64], sizes = [2, 32], strides = [1, 1]} : vector<2x96xf32> to vector<2x32xf32>
    %690 = arith.mulf %679, %689 : vector<2x32xf32>
    %691 = arith.addf %688, %690 : vector<2x32xf32>
    %692 = math.tanh %691 : vector<2x32xf32>
    %cst_232 = arith.constant 1.000000e+00 : f32
    %693 = vector.broadcast %cst_232 : f32 to vector<2x32xf32>
    %694 = arith.subf %693, %687 : vector<2x32xf32>
    %695 = arith.mulf %694, %692 : vector<2x32xf32>
    %696 = arith.mulf %687, %666 : vector<2x32xf32>
    %697 = arith.addf %695, %696 : vector<2x32xf32>
    %c26 = arith.constant 26 : index
    %c0_233 = arith.constant 0 : index
    %698 = vector.load %arg27[%c26, %c0_233] : memref<46x32xf32, #tpu.memory_space<vmem>>, vector<2x32xf32>
    tpu.vector_store %arg27[%c26, %c0_233], %697 {strides = array<i32>} : memref<46x32xf32, #tpu.memory_space<vmem>>, vector<2x32xf32>,
    %699 = vector.extract_strided_slice %262 {offsets = [28, 0], sizes = [2, 96], strides = [1, 1]} : vector<46x96xf32> to vector<2x96xf32>
    %cst_234 = arith.constant dense<0.000000e+00> : vector<2x96xf32>
    %700 = tpu.matmul %697, %263, %cst_234 {dimension_numbers = #tpu.dot_dimension_numbers<[1], [0], [0], [1], [0, 0, 1, 1], [], []>} : vector<2x32xf32>, vector<32x96xf32>, vector<2x96xf32> -> vector<2x96xf32>
    %701 = vector.broadcast %264 : vector<1x96xf32> to vector<2x96xf32>
    %702 = arith.addf %700, %701 : vector<2x96xf32>
    %703 = vector.extract_strided_slice %699 {offsets = [0, 0], sizes = [2, 32], strides = [1, 1]} : vector<2x96xf32> to vector<2x32xf32>
    %704 = vector.extract_strided_slice %702 {offsets = [0, 0], sizes = [2, 32], strides = [1, 1]} : vector<2x96xf32> to vector<2x32xf32>
    %705 = arith.addf %703, %704 : vector<2x32xf32>
    %706 = arith.negf %705 : vector<2x32xf32>
    %707 = math.exp %706 : vector<2x32xf32>
    %cst_235 = arith.constant 1.000000e+00 : f32
    %708 = vector.broadcast %cst_235 : f32 to vector<2x32xf32>
    %709 = arith.addf %708, %707 : vector<2x32xf32>
    %710 = arith.divf %708, %709 : vector<2x32xf32>
    %711 = vector.extract_strided_slice %699 {offsets = [0, 32], sizes = [2, 32], strides = [1, 1]} : vector<2x96xf32> to vector<2x32xf32>
    %712 = vector.extract_strided_slice %702 {offsets = [0, 32], sizes = [2, 32], strides = [1, 1]} : vector<2x96xf32> to vector<2x32xf32>
    %713 = arith.addf %711, %712 : vector<2x32xf32>
    %714 = arith.negf %713 : vector<2x32xf32>
    %715 = math.exp %714 : vector<2x32xf32>
    %cst_236 = arith.constant 1.000000e+00 : f32
    %716 = vector.broadcast %cst_236 : f32 to vector<2x32xf32>
    %717 = arith.addf %716, %715 : vector<2x32xf32>
    %718 = arith.divf %716, %717 : vector<2x32xf32>
    %719 = vector.extract_strided_slice %699 {offsets = [0, 64], sizes = [2, 32], strides = [1, 1]} : vector<2x96xf32> to vector<2x32xf32>
    %720 = vector.extract_strided_slice %702 {offsets = [0, 64], sizes = [2, 32], strides = [1, 1]} : vector<2x96xf32> to vector<2x32xf32>
    %721 = arith.mulf %710, %720 : vector<2x32xf32>
    %722 = arith.addf %719, %721 : vector<2x32xf32>
    %723 = math.tanh %722 : vector<2x32xf32>
    %cst_237 = arith.constant 1.000000e+00 : f32
    %724 = vector.broadcast %cst_237 : f32 to vector<2x32xf32>
    %725 = arith.subf %724, %718 : vector<2x32xf32>
    %726 = arith.mulf %725, %723 : vector<2x32xf32>
    %727 = arith.mulf %718, %697 : vector<2x32xf32>
    %728 = arith.addf %726, %727 : vector<2x32xf32>
    %c28 = arith.constant 28 : index
    %c0_238 = arith.constant 0 : index
    %729 = vector.load %arg27[%c28, %c0_238] : memref<46x32xf32, #tpu.memory_space<vmem>>, vector<2x32xf32>
    tpu.vector_store %arg27[%c28, %c0_238], %728 {strides = array<i32>} : memref<46x32xf32, #tpu.memory_space<vmem>>, vector<2x32xf32>,
    %730 = vector.extract_strided_slice %262 {offsets = [30, 0], sizes = [2, 96], strides = [1, 1]} : vector<46x96xf32> to vector<2x96xf32>
    %cst_239 = arith.constant dense<0.000000e+00> : vector<2x96xf32>
    %731 = tpu.matmul %728, %263, %cst_239 {dimension_numbers = #tpu.dot_dimension_numbers<[1], [0], [0], [1], [0, 0, 1, 1], [], []>} : vector<2x32xf32>, vector<32x96xf32>, vector<2x96xf32> -> vector<2x96xf32>
    %732 = vector.broadcast %264 : vector<1x96xf32> to vector<2x96xf32>
    %733 = arith.addf %731, %732 : vector<2x96xf32>
    %734 = vector.extract_strided_slice %730 {offsets = [0, 0], sizes = [2, 32], strides = [1, 1]} : vector<2x96xf32> to vector<2x32xf32>
    %735 = vector.extract_strided_slice %733 {offsets = [0, 0], sizes = [2, 32], strides = [1, 1]} : vector<2x96xf32> to vector<2x32xf32>
    %736 = arith.addf %734, %735 : vector<2x32xf32>
    %737 = arith.negf %736 : vector<2x32xf32>
    %738 = math.exp %737 : vector<2x32xf32>
    %cst_240 = arith.constant 1.000000e+00 : f32
    %739 = vector.broadcast %cst_240 : f32 to vector<2x32xf32>
    %740 = arith.addf %739, %738 : vector<2x32xf32>
    %741 = arith.divf %739, %740 : vector<2x32xf32>
    %742 = vector.extract_strided_slice %730 {offsets = [0, 32], sizes = [2, 32], strides = [1, 1]} : vector<2x96xf32> to vector<2x32xf32>
    %743 = vector.extract_strided_slice %733 {offsets = [0, 32], sizes = [2, 32], strides = [1, 1]} : vector<2x96xf32> to vector<2x32xf32>
    %744 = arith.addf %742, %743 : vector<2x32xf32>
    %745 = arith.negf %744 : vector<2x32xf32>
    %746 = math.exp %745 : vector<2x32xf32>
    %cst_241 = arith.constant 1.000000e+00 : f32
    %747 = vector.broadcast %cst_241 : f32 to vector<2x32xf32>
    %748 = arith.addf %747, %746 : vector<2x32xf32>
    %749 = arith.divf %747, %748 : vector<2x32xf32>
    %750 = vector.extract_strided_slice %730 {offsets = [0, 64], sizes = [2, 32], strides = [1, 1]} : vector<2x96xf32> to vector<2x32xf32>
    %751 = vector.extract_strided_slice %733 {offsets = [0, 64], sizes = [2, 32], strides = [1, 1]} : vector<2x96xf32> to vector<2x32xf32>
    %752 = arith.mulf %741, %751 : vector<2x32xf32>
    %753 = arith.addf %750, %752 : vector<2x32xf32>
    %754 = math.tanh %753 : vector<2x32xf32>
    %cst_242 = arith.constant 1.000000e+00 : f32
    %755 = vector.broadcast %cst_242 : f32 to vector<2x32xf32>
    %756 = arith.subf %755, %749 : vector<2x32xf32>
    %757 = arith.mulf %756, %754 : vector<2x32xf32>
    %758 = arith.mulf %749, %728 : vector<2x32xf32>
    %759 = arith.addf %757, %758 : vector<2x32xf32>
    %c30 = arith.constant 30 : index
    %c0_243 = arith.constant 0 : index
    %760 = vector.load %arg27[%c30, %c0_243] : memref<46x32xf32, #tpu.memory_space<vmem>>, vector<2x32xf32>
    tpu.vector_store %arg27[%c30, %c0_243], %759 {strides = array<i32>} : memref<46x32xf32, #tpu.memory_space<vmem>>, vector<2x32xf32>,
    %761 = vector.extract_strided_slice %262 {offsets = [32, 0], sizes = [2, 96], strides = [1, 1]} : vector<46x96xf32> to vector<2x96xf32>
    %cst_244 = arith.constant dense<0.000000e+00> : vector<2x96xf32>
    %762 = tpu.matmul %759, %263, %cst_244 {dimension_numbers = #tpu.dot_dimension_numbers<[1], [0], [0], [1], [0, 0, 1, 1], [], []>} : vector<2x32xf32>, vector<32x96xf32>, vector<2x96xf32> -> vector<2x96xf32>
    %763 = vector.broadcast %264 : vector<1x96xf32> to vector<2x96xf32>
    %764 = arith.addf %762, %763 : vector<2x96xf32>
    %765 = vector.extract_strided_slice %761 {offsets = [0, 0], sizes = [2, 32], strides = [1, 1]} : vector<2x96xf32> to vector<2x32xf32>
    %766 = vector.extract_strided_slice %764 {offsets = [0, 0], sizes = [2, 32], strides = [1, 1]} : vector<2x96xf32> to vector<2x32xf32>
    %767 = arith.addf %765, %766 : vector<2x32xf32>
    %768 = arith.negf %767 : vector<2x32xf32>
    %769 = math.exp %768 : vector<2x32xf32>
    %cst_245 = arith.constant 1.000000e+00 : f32
    %770 = vector.broadcast %cst_245 : f32 to vector<2x32xf32>
    %771 = arith.addf %770, %769 : vector<2x32xf32>
    %772 = arith.divf %770, %771 : vector<2x32xf32>
    %773 = vector.extract_strided_slice %761 {offsets = [0, 32], sizes = [2, 32], strides = [1, 1]} : vector<2x96xf32> to vector<2x32xf32>
    %774 = vector.extract_strided_slice %764 {offsets = [0, 32], sizes = [2, 32], strides = [1, 1]} : vector<2x96xf32> to vector<2x32xf32>
    %775 = arith.addf %773, %774 : vector<2x32xf32>
    %776 = arith.negf %775 : vector<2x32xf32>
    %777 = math.exp %776 : vector<2x32xf32>
    %cst_246 = arith.constant 1.000000e+00 : f32
    %778 = vector.broadcast %cst_246 : f32 to vector<2x32xf32>
    %779 = arith.addf %778, %777 : vector<2x32xf32>
    %780 = arith.divf %778, %779 : vector<2x32xf32>
    %781 = vector.extract_strided_slice %761 {offsets = [0, 64], sizes = [2, 32], strides = [1, 1]} : vector<2x96xf32> to vector<2x32xf32>
    %782 = vector.extract_strided_slice %764 {offsets = [0, 64], sizes = [2, 32], strides = [1, 1]} : vector<2x96xf32> to vector<2x32xf32>
    %783 = arith.mulf %772, %782 : vector<2x32xf32>
    %784 = arith.addf %781, %783 : vector<2x32xf32>
    %785 = math.tanh %784 : vector<2x32xf32>
    %cst_247 = arith.constant 1.000000e+00 : f32
    %786 = vector.broadcast %cst_247 : f32 to vector<2x32xf32>
    %787 = arith.subf %786, %780 : vector<2x32xf32>
    %788 = arith.mulf %787, %785 : vector<2x32xf32>
    %789 = arith.mulf %780, %759 : vector<2x32xf32>
    %790 = arith.addf %788, %789 : vector<2x32xf32>
    %c32 = arith.constant 32 : index
    %c0_248 = arith.constant 0 : index
    %791 = vector.load %arg27[%c32, %c0_248] : memref<46x32xf32, #tpu.memory_space<vmem>>, vector<2x32xf32>
    tpu.vector_store %arg27[%c32, %c0_248], %790 {strides = array<i32>} : memref<46x32xf32, #tpu.memory_space<vmem>>, vector<2x32xf32>,
    %792 = vector.extract_strided_slice %262 {offsets = [34, 0], sizes = [2, 96], strides = [1, 1]} : vector<46x96xf32> to vector<2x96xf32>
    %cst_249 = arith.constant dense<0.000000e+00> : vector<2x96xf32>
    %793 = tpu.matmul %790, %263, %cst_249 {dimension_numbers = #tpu.dot_dimension_numbers<[1], [0], [0], [1], [0, 0, 1, 1], [], []>} : vector<2x32xf32>, vector<32x96xf32>, vector<2x96xf32> -> vector<2x96xf32>
    %794 = vector.broadcast %264 : vector<1x96xf32> to vector<2x96xf32>
    %795 = arith.addf %793, %794 : vector<2x96xf32>
    %796 = vector.extract_strided_slice %792 {offsets = [0, 0], sizes = [2, 32], strides = [1, 1]} : vector<2x96xf32> to vector<2x32xf32>
    %797 = vector.extract_strided_slice %795 {offsets = [0, 0], sizes = [2, 32], strides = [1, 1]} : vector<2x96xf32> to vector<2x32xf32>
    %798 = arith.addf %796, %797 : vector<2x32xf32>
    %799 = arith.negf %798 : vector<2x32xf32>
    %800 = math.exp %799 : vector<2x32xf32>
    %cst_250 = arith.constant 1.000000e+00 : f32
    %801 = vector.broadcast %cst_250 : f32 to vector<2x32xf32>
    %802 = arith.addf %801, %800 : vector<2x32xf32>
    %803 = arith.divf %801, %802 : vector<2x32xf32>
    %804 = vector.extract_strided_slice %792 {offsets = [0, 32], sizes = [2, 32], strides = [1, 1]} : vector<2x96xf32> to vector<2x32xf32>
    %805 = vector.extract_strided_slice %795 {offsets = [0, 32], sizes = [2, 32], strides = [1, 1]} : vector<2x96xf32> to vector<2x32xf32>
    %806 = arith.addf %804, %805 : vector<2x32xf32>
    %807 = arith.negf %806 : vector<2x32xf32>
    %808 = math.exp %807 : vector<2x32xf32>
    %cst_251 = arith.constant 1.000000e+00 : f32
    %809 = vector.broadcast %cst_251 : f32 to vector<2x32xf32>
    %810 = arith.addf %809, %808 : vector<2x32xf32>
    %811 = arith.divf %809, %810 : vector<2x32xf32>
    %812 = vector.extract_strided_slice %792 {offsets = [0, 64], sizes = [2, 32], strides = [1, 1]} : vector<2x96xf32> to vector<2x32xf32>
    %813 = vector.extract_strided_slice %795 {offsets = [0, 64], sizes = [2, 32], strides = [1, 1]} : vector<2x96xf32> to vector<2x32xf32>
    %814 = arith.mulf %803, %813 : vector<2x32xf32>
    %815 = arith.addf %812, %814 : vector<2x32xf32>
    %816 = math.tanh %815 : vector<2x32xf32>
    %cst_252 = arith.constant 1.000000e+00 : f32
    %817 = vector.broadcast %cst_252 : f32 to vector<2x32xf32>
    %818 = arith.subf %817, %811 : vector<2x32xf32>
    %819 = arith.mulf %818, %816 : vector<2x32xf32>
    %820 = arith.mulf %811, %790 : vector<2x32xf32>
    %821 = arith.addf %819, %820 : vector<2x32xf32>
    %c34 = arith.constant 34 : index
    %c0_253 = arith.constant 0 : index
    %822 = vector.load %arg27[%c34, %c0_253] : memref<46x32xf32, #tpu.memory_space<vmem>>, vector<2x32xf32>
    tpu.vector_store %arg27[%c34, %c0_253], %821 {strides = array<i32>} : memref<46x32xf32, #tpu.memory_space<vmem>>, vector<2x32xf32>,
    %823 = vector.extract_strided_slice %262 {offsets = [36, 0], sizes = [2, 96], strides = [1, 1]} : vector<46x96xf32> to vector<2x96xf32>
    %cst_254 = arith.constant dense<0.000000e+00> : vector<2x96xf32>
    %824 = tpu.matmul %821, %263, %cst_254 {dimension_numbers = #tpu.dot_dimension_numbers<[1], [0], [0], [1], [0, 0, 1, 1], [], []>} : vector<2x32xf32>, vector<32x96xf32>, vector<2x96xf32> -> vector<2x96xf32>
    %825 = vector.broadcast %264 : vector<1x96xf32> to vector<2x96xf32>
    %826 = arith.addf %824, %825 : vector<2x96xf32>
    %827 = vector.extract_strided_slice %823 {offsets = [0, 0], sizes = [2, 32], strides = [1, 1]} : vector<2x96xf32> to vector<2x32xf32>
    %828 = vector.extract_strided_slice %826 {offsets = [0, 0], sizes = [2, 32], strides = [1, 1]} : vector<2x96xf32> to vector<2x32xf32>
    %829 = arith.addf %827, %828 : vector<2x32xf32>
    %830 = arith.negf %829 : vector<2x32xf32>
    %831 = math.exp %830 : vector<2x32xf32>
    %cst_255 = arith.constant 1.000000e+00 : f32
    %832 = vector.broadcast %cst_255 : f32 to vector<2x32xf32>
    %833 = arith.addf %832, %831 : vector<2x32xf32>
    %834 = arith.divf %832, %833 : vector<2x32xf32>
    %835 = vector.extract_strided_slice %823 {offsets = [0, 32], sizes = [2, 32], strides = [1, 1]} : vector<2x96xf32> to vector<2x32xf32>
    %836 = vector.extract_strided_slice %826 {offsets = [0, 32], sizes = [2, 32], strides = [1, 1]} : vector<2x96xf32> to vector<2x32xf32>
    %837 = arith.addf %835, %836 : vector<2x32xf32>
    %838 = arith.negf %837 : vector<2x32xf32>
    %839 = math.exp %838 : vector<2x32xf32>
    %cst_256 = arith.constant 1.000000e+00 : f32
    %840 = vector.broadcast %cst_256 : f32 to vector<2x32xf32>
    %841 = arith.addf %840, %839 : vector<2x32xf32>
    %842 = arith.divf %840, %841 : vector<2x32xf32>
    %843 = vector.extract_strided_slice %823 {offsets = [0, 64], sizes = [2, 32], strides = [1, 1]} : vector<2x96xf32> to vector<2x32xf32>
    %844 = vector.extract_strided_slice %826 {offsets = [0, 64], sizes = [2, 32], strides = [1, 1]} : vector<2x96xf32> to vector<2x32xf32>
    %845 = arith.mulf %834, %844 : vector<2x32xf32>
    %846 = arith.addf %843, %845 : vector<2x32xf32>
    %847 = math.tanh %846 : vector<2x32xf32>
    %cst_257 = arith.constant 1.000000e+00 : f32
    %848 = vector.broadcast %cst_257 : f32 to vector<2x32xf32>
    %849 = arith.subf %848, %842 : vector<2x32xf32>
    %850 = arith.mulf %849, %847 : vector<2x32xf32>
    %851 = arith.mulf %842, %821 : vector<2x32xf32>
    %852 = arith.addf %850, %851 : vector<2x32xf32>
    %c36 = arith.constant 36 : index
    %c0_258 = arith.constant 0 : index
    %853 = vector.load %arg27[%c36, %c0_258] : memref<46x32xf32, #tpu.memory_space<vmem>>, vector<2x32xf32>
    tpu.vector_store %arg27[%c36, %c0_258], %852 {strides = array<i32>} : memref<46x32xf32, #tpu.memory_space<vmem>>, vector<2x32xf32>,
    %854 = vector.extract_strided_slice %262 {offsets = [38, 0], sizes = [2, 96], strides = [1, 1]} : vector<46x96xf32> to vector<2x96xf32>
    %cst_259 = arith.constant dense<0.000000e+00> : vector<2x96xf32>
    %855 = tpu.matmul %852, %263, %cst_259 {dimension_numbers = #tpu.dot_dimension_numbers<[1], [0], [0], [1], [0, 0, 1, 1], [], []>} : vector<2x32xf32>, vector<32x96xf32>, vector<2x96xf32> -> vector<2x96xf32>
    %856 = vector.broadcast %264 : vector<1x96xf32> to vector<2x96xf32>
    %857 = arith.addf %855, %856 : vector<2x96xf32>
    %858 = vector.extract_strided_slice %854 {offsets = [0, 0], sizes = [2, 32], strides = [1, 1]} : vector<2x96xf32> to vector<2x32xf32>
    %859 = vector.extract_strided_slice %857 {offsets = [0, 0], sizes = [2, 32], strides = [1, 1]} : vector<2x96xf32> to vector<2x32xf32>
    %860 = arith.addf %858, %859 : vector<2x32xf32>
    %861 = arith.negf %860 : vector<2x32xf32>
    %862 = math.exp %861 : vector<2x32xf32>
    %cst_260 = arith.constant 1.000000e+00 : f32
    %863 = vector.broadcast %cst_260 : f32 to vector<2x32xf32>
    %864 = arith.addf %863, %862 : vector<2x32xf32>
    %865 = arith.divf %863, %864 : vector<2x32xf32>
    %866 = vector.extract_strided_slice %854 {offsets = [0, 32], sizes = [2, 32], strides = [1, 1]} : vector<2x96xf32> to vector<2x32xf32>
    %867 = vector.extract_strided_slice %857 {offsets = [0, 32], sizes = [2, 32], strides = [1, 1]} : vector<2x96xf32> to vector<2x32xf32>
    %868 = arith.addf %866, %867 : vector<2x32xf32>
    %869 = arith.negf %868 : vector<2x32xf32>
    %870 = math.exp %869 : vector<2x32xf32>
    %cst_261 = arith.constant 1.000000e+00 : f32
    %871 = vector.broadcast %cst_261 : f32 to vector<2x32xf32>
    %872 = arith.addf %871, %870 : vector<2x32xf32>
    %873 = arith.divf %871, %872 : vector<2x32xf32>
    %874 = vector.extract_strided_slice %854 {offsets = [0, 64], sizes = [2, 32], strides = [1, 1]} : vector<2x96xf32> to vector<2x32xf32>
    %875 = vector.extract_strided_slice %857 {offsets = [0, 64], sizes = [2, 32], strides = [1, 1]} : vector<2x96xf32> to vector<2x32xf32>
    %876 = arith.mulf %865, %875 : vector<2x32xf32>
    %877 = arith.addf %874, %876 : vector<2x32xf32>
    %878 = math.tanh %877 : vector<2x32xf32>
    %cst_262 = arith.constant 1.000000e+00 : f32
    %879 = vector.broadcast %cst_262 : f32 to vector<2x32xf32>
    %880 = arith.subf %879, %873 : vector<2x32xf32>
    %881 = arith.mulf %880, %878 : vector<2x32xf32>
    %882 = arith.mulf %873, %852 : vector<2x32xf32>
    %883 = arith.addf %881, %882 : vector<2x32xf32>
    %c38 = arith.constant 38 : index
    %c0_263 = arith.constant 0 : index
    %884 = vector.load %arg27[%c38, %c0_263] : memref<46x32xf32, #tpu.memory_space<vmem>>, vector<2x32xf32>
    tpu.vector_store %arg27[%c38, %c0_263], %883 {strides = array<i32>} : memref<46x32xf32, #tpu.memory_space<vmem>>, vector<2x32xf32>,
    %885 = vector.extract_strided_slice %262 {offsets = [40, 0], sizes = [2, 96], strides = [1, 1]} : vector<46x96xf32> to vector<2x96xf32>
    %cst_264 = arith.constant dense<0.000000e+00> : vector<2x96xf32>
    %886 = tpu.matmul %883, %263, %cst_264 {dimension_numbers = #tpu.dot_dimension_numbers<[1], [0], [0], [1], [0, 0, 1, 1], [], []>} : vector<2x32xf32>, vector<32x96xf32>, vector<2x96xf32> -> vector<2x96xf32>
    %887 = vector.broadcast %264 : vector<1x96xf32> to vector<2x96xf32>
    %888 = arith.addf %886, %887 : vector<2x96xf32>
    %889 = vector.extract_strided_slice %885 {offsets = [0, 0], sizes = [2, 32], strides = [1, 1]} : vector<2x96xf32> to vector<2x32xf32>
    %890 = vector.extract_strided_slice %888 {offsets = [0, 0], sizes = [2, 32], strides = [1, 1]} : vector<2x96xf32> to vector<2x32xf32>
    %891 = arith.addf %889, %890 : vector<2x32xf32>
    %892 = arith.negf %891 : vector<2x32xf32>
    %893 = math.exp %892 : vector<2x32xf32>
    %cst_265 = arith.constant 1.000000e+00 : f32
    %894 = vector.broadcast %cst_265 : f32 to vector<2x32xf32>
    %895 = arith.addf %894, %893 : vector<2x32xf32>
    %896 = arith.divf %894, %895 : vector<2x32xf32>
    %897 = vector.extract_strided_slice %885 {offsets = [0, 32], sizes = [2, 32], strides = [1, 1]} : vector<2x96xf32> to vector<2x32xf32>
    %898 = vector.extract_strided_slice %888 {offsets = [0, 32], sizes = [2, 32], strides = [1, 1]} : vector<2x96xf32> to vector<2x32xf32>
    %899 = arith.addf %897, %898 : vector<2x32xf32>
    %900 = arith.negf %899 : vector<2x32xf32>
    %901 = math.exp %900 : vector<2x32xf32>
    %cst_266 = arith.constant 1.000000e+00 : f32
    %902 = vector.broadcast %cst_266 : f32 to vector<2x32xf32>
    %903 = arith.addf %902, %901 : vector<2x32xf32>
    %904 = arith.divf %902, %903 : vector<2x32xf32>
    %905 = vector.extract_strided_slice %885 {offsets = [0, 64], sizes = [2, 32], strides = [1, 1]} : vector<2x96xf32> to vector<2x32xf32>
    %906 = vector.extract_strided_slice %888 {offsets = [0, 64], sizes = [2, 32], strides = [1, 1]} : vector<2x96xf32> to vector<2x32xf32>
    %907 = arith.mulf %896, %906 : vector<2x32xf32>
    %908 = arith.addf %905, %907 : vector<2x32xf32>
    %909 = math.tanh %908 : vector<2x32xf32>
    %cst_267 = arith.constant 1.000000e+00 : f32
    %910 = vector.broadcast %cst_267 : f32 to vector<2x32xf32>
    %911 = arith.subf %910, %904 : vector<2x32xf32>
    %912 = arith.mulf %911, %909 : vector<2x32xf32>
    %913 = arith.mulf %904, %883 : vector<2x32xf32>
    %914 = arith.addf %912, %913 : vector<2x32xf32>
    %c40 = arith.constant 40 : index
    %c0_268 = arith.constant 0 : index
    %915 = vector.load %arg27[%c40, %c0_268] : memref<46x32xf32, #tpu.memory_space<vmem>>, vector<2x32xf32>
    tpu.vector_store %arg27[%c40, %c0_268], %914 {strides = array<i32>} : memref<46x32xf32, #tpu.memory_space<vmem>>, vector<2x32xf32>,
    %916 = vector.extract_strided_slice %262 {offsets = [42, 0], sizes = [2, 96], strides = [1, 1]} : vector<46x96xf32> to vector<2x96xf32>
    %cst_269 = arith.constant dense<0.000000e+00> : vector<2x96xf32>
    %917 = tpu.matmul %914, %263, %cst_269 {dimension_numbers = #tpu.dot_dimension_numbers<[1], [0], [0], [1], [0, 0, 1, 1], [], []>} : vector<2x32xf32>, vector<32x96xf32>, vector<2x96xf32> -> vector<2x96xf32>
    %918 = vector.broadcast %264 : vector<1x96xf32> to vector<2x96xf32>
    %919 = arith.addf %917, %918 : vector<2x96xf32>
    %920 = vector.extract_strided_slice %916 {offsets = [0, 0], sizes = [2, 32], strides = [1, 1]} : vector<2x96xf32> to vector<2x32xf32>
    %921 = vector.extract_strided_slice %919 {offsets = [0, 0], sizes = [2, 32], strides = [1, 1]} : vector<2x96xf32> to vector<2x32xf32>
    %922 = arith.addf %920, %921 : vector<2x32xf32>
    %923 = arith.negf %922 : vector<2x32xf32>
    %924 = math.exp %923 : vector<2x32xf32>
    %cst_270 = arith.constant 1.000000e+00 : f32
    %925 = vector.broadcast %cst_270 : f32 to vector<2x32xf32>
    %926 = arith.addf %925, %924 : vector<2x32xf32>
    %927 = arith.divf %925, %926 : vector<2x32xf32>
    %928 = vector.extract_strided_slice %916 {offsets = [0, 32], sizes = [2, 32], strides = [1, 1]} : vector<2x96xf32> to vector<2x32xf32>
    %929 = vector.extract_strided_slice %919 {offsets = [0, 32], sizes = [2, 32], strides = [1, 1]} : vector<2x96xf32> to vector<2x32xf32>
    %930 = arith.addf %928, %929 : vector<2x32xf32>
    %931 = arith.negf %930 : vector<2x32xf32>
    %932 = math.exp %931 : vector<2x32xf32>
    %cst_271 = arith.constant 1.000000e+00 : f32
    %933 = vector.broadcast %cst_271 : f32 to vector<2x32xf32>
    %934 = arith.addf %933, %932 : vector<2x32xf32>
    %935 = arith.divf %933, %934 : vector<2x32xf32>
    %936 = vector.extract_strided_slice %916 {offsets = [0, 64], sizes = [2, 32], strides = [1, 1]} : vector<2x96xf32> to vector<2x32xf32>
    %937 = vector.extract_strided_slice %919 {offsets = [0, 64], sizes = [2, 32], strides = [1, 1]} : vector<2x96xf32> to vector<2x32xf32>
    %938 = arith.mulf %927, %937 : vector<2x32xf32>
    %939 = arith.addf %936, %938 : vector<2x32xf32>
    %940 = math.tanh %939 : vector<2x32xf32>
    %cst_272 = arith.constant 1.000000e+00 : f32
    %941 = vector.broadcast %cst_272 : f32 to vector<2x32xf32>
    %942 = arith.subf %941, %935 : vector<2x32xf32>
    %943 = arith.mulf %942, %940 : vector<2x32xf32>
    %944 = arith.mulf %935, %914 : vector<2x32xf32>
    %945 = arith.addf %943, %944 : vector<2x32xf32>
    %c42 = arith.constant 42 : index
    %c0_273 = arith.constant 0 : index
    %946 = vector.load %arg27[%c42, %c0_273] : memref<46x32xf32, #tpu.memory_space<vmem>>, vector<2x32xf32>
    tpu.vector_store %arg27[%c42, %c0_273], %945 {strides = array<i32>} : memref<46x32xf32, #tpu.memory_space<vmem>>, vector<2x32xf32>,
    %947 = vector.extract_strided_slice %262 {offsets = [44, 0], sizes = [2, 96], strides = [1, 1]} : vector<46x96xf32> to vector<2x96xf32>
    %cst_274 = arith.constant dense<0.000000e+00> : vector<2x96xf32>
    %948 = tpu.matmul %945, %263, %cst_274 {dimension_numbers = #tpu.dot_dimension_numbers<[1], [0], [0], [1], [0, 0, 1, 1], [], []>} : vector<2x32xf32>, vector<32x96xf32>, vector<2x96xf32> -> vector<2x96xf32>
    %949 = vector.broadcast %264 : vector<1x96xf32> to vector<2x96xf32>
    %950 = arith.addf %948, %949 : vector<2x96xf32>
    %951 = vector.extract_strided_slice %947 {offsets = [0, 0], sizes = [2, 32], strides = [1, 1]} : vector<2x96xf32> to vector<2x32xf32>
    %952 = vector.extract_strided_slice %950 {offsets = [0, 0], sizes = [2, 32], strides = [1, 1]} : vector<2x96xf32> to vector<2x32xf32>
    %953 = arith.addf %951, %952 : vector<2x32xf32>
    %954 = arith.negf %953 : vector<2x32xf32>
    %955 = math.exp %954 : vector<2x32xf32>
    %cst_275 = arith.constant 1.000000e+00 : f32
    %956 = vector.broadcast %cst_275 : f32 to vector<2x32xf32>
    %957 = arith.addf %956, %955 : vector<2x32xf32>
    %958 = arith.divf %956, %957 : vector<2x32xf32>
    %959 = vector.extract_strided_slice %947 {offsets = [0, 32], sizes = [2, 32], strides = [1, 1]} : vector<2x96xf32> to vector<2x32xf32>
    %960 = vector.extract_strided_slice %950 {offsets = [0, 32], sizes = [2, 32], strides = [1, 1]} : vector<2x96xf32> to vector<2x32xf32>
    %961 = arith.addf %959, %960 : vector<2x32xf32>
    %962 = arith.negf %961 : vector<2x32xf32>
    %963 = math.exp %962 : vector<2x32xf32>
    %cst_276 = arith.constant 1.000000e+00 : f32
    %964 = vector.broadcast %cst_276 : f32 to vector<2x32xf32>
    %965 = arith.addf %964, %963 : vector<2x32xf32>
    %966 = arith.divf %964, %965 : vector<2x32xf32>
    %967 = vector.extract_strided_slice %947 {offsets = [0, 64], sizes = [2, 32], strides = [1, 1]} : vector<2x96xf32> to vector<2x32xf32>
    %968 = vector.extract_strided_slice %950 {offsets = [0, 64], sizes = [2, 32], strides = [1, 1]} : vector<2x96xf32> to vector<2x32xf32>
    %969 = arith.mulf %958, %968 : vector<2x32xf32>
    %970 = arith.addf %967, %969 : vector<2x32xf32>
    %971 = math.tanh %970 : vector<2x32xf32>
    %cst_277 = arith.constant 1.000000e+00 : f32
    %972 = vector.broadcast %cst_277 : f32 to vector<2x32xf32>
    %973 = arith.subf %972, %966 : vector<2x32xf32>
    %974 = arith.mulf %973, %971 : vector<2x32xf32>
    %975 = arith.mulf %966, %945 : vector<2x32xf32>
    %976 = arith.addf %974, %975 : vector<2x32xf32>
    %c44 = arith.constant 44 : index
    %c0_278 = arith.constant 0 : index
    %977 = vector.load %arg27[%c44, %c0_278] : memref<46x32xf32, #tpu.memory_space<vmem>>, vector<2x32xf32>
    tpu.vector_store %arg27[%c44, %c0_278], %976 {strides = array<i32>} : memref<46x32xf32, #tpu.memory_space<vmem>>, vector<2x32xf32>,
    %c0_279 = arith.constant 0 : index
    %c0_280 = arith.constant 0 : index
    %978 = vector.load %arg27[%c0_279, %c0_280] : memref<46x32xf32, #tpu.memory_space<vmem>>, vector<46x32xf32>
    %cst_281 = arith.constant dense<0.000000e+00> : vector<46xf32>
    %979 = vector.multi_reduction <add>, %978, %cst_281 [1] : vector<46x32xf32> to vector<46xf32>
    %980 = vector.shape_cast %979 : vector<46xf32> to vector<46x1xf32>
    %cst_282 = arith.constant 3.200000e+01 : f32
    %981 = vector.broadcast %cst_282 : f32 to vector<46x1xf32>
    %982 = arith.divf %980, %981 : vector<46x1xf32>
    %983 = vector.broadcast %982 : vector<46x1xf32> to vector<46x32xf32>
    %984 = arith.subf %978, %983 : vector<46x32xf32>
    %985 = arith.mulf %984, %984 : vector<46x32xf32>
    %cst_283 = arith.constant dense<0.000000e+00> : vector<46xf32>
    %986 = vector.multi_reduction <add>, %985, %cst_283 [1] : vector<46x32xf32> to vector<46xf32>
    %987 = vector.shape_cast %986 : vector<46xf32> to vector<46x1xf32>
    %cst_284 = arith.constant 3.200000e+01 : f32
    %988 = vector.broadcast %cst_284 : f32 to vector<46x1xf32>
    %989 = arith.divf %987, %988 : vector<46x1xf32>
    %990 = vector.broadcast %982 : vector<46x1xf32> to vector<46x32xf32>
    %991 = arith.subf %978, %990 : vector<46x32xf32>
    %cst_285 = arith.constant 9.99999974E-6 : f32
    %992 = vector.broadcast %cst_285 : f32 to vector<46x1xf32>
    %993 = arith.addf %989, %992 : vector<46x1xf32>
    %994 = math.rsqrt %993 : vector<46x1xf32>
    %995 = vector.broadcast %994 : vector<46x1xf32> to vector<46x32xf32>
    %996 = arith.mulf %991, %995 : vector<46x32xf32>
    %c0_286 = arith.constant 0 : index
    %c0_287 = arith.constant 0 : index
    %997 = vector.load %arg20[%c0_286, %c0_287] : memref<1x32xf32, #tpu.memory_space<vmem>>, vector<1x32xf32>
    %998 = vector.broadcast %997 : vector<1x32xf32> to vector<46x32xf32>
    %999 = arith.mulf %996, %998 : vector<46x32xf32>
    %c0_288 = arith.constant 0 : index
    %c0_289 = arith.constant 0 : index
    %1000 = vector.load %arg21[%c0_288, %c0_289] : memref<1x32xf32, #tpu.memory_space<vmem>>, vector<1x32xf32>
    %1001 = vector.broadcast %1000 : vector<1x32xf32> to vector<46x32xf32>
    %1002 = arith.addf %999, %1001 : vector<46x32xf32>
    %c0_290 = arith.constant 0 : index
    %c0_291 = arith.constant 0 : index
    %1003 = vector.load %arg22[%c0_290, %c0_291] : memref<32x16xf32, #tpu.memory_space<vmem>>, vector<32x16xf32>
    %cst_292 = arith.constant dense<0.000000e+00> : vector<46x16xf32>
    %1004 = tpu.matmul %1002, %1003, %cst_292 {dimension_numbers = #tpu.dot_dimension_numbers<[1], [0], [0], [1], [0, 0, 1, 1], [], []>} : vector<46x32xf32>, vector<32x16xf32>, vector<46x16xf32> -> vector<46x16xf32>
    %c0_293 = arith.constant 0 : index
    %c0_294 = arith.constant 0 : index
    %1005 = vector.load %arg23[%c0_293, %c0_294] : memref<1x16xf32, #tpu.memory_space<vmem>>, vector<1x16xf32>
    %1006 = vector.broadcast %1005 : vector<1x16xf32> to vector<46x16xf32>
    %1007 = arith.addf %1004, %1006 : vector<46x16xf32>
    %c0_295 = arith.constant 0 : index
    %c0_296 = arith.constant 0 : index
    %1008 = vector.load %arg24[%c0_295, %c0_296] : memref<46x16xf32, #tpu.memory_space<vmem>>, vector<46x16xf32>
    tpu.vector_store %arg24[%c0_295, %c0_296], %1007 {strides = array<i32>} : memref<46x16xf32, #tpu.memory_space<vmem>>, vector<46x16xf32>,
    return
  }
}

</mosaic_0001>

<bundles_post_ra>
// kernel: tpu_custom_call.1
= control target key start
LH: loop header
LB: loop body
LE: loop exit
PB: predicated region body
PF: predicated region fallthrough
CT: control target
= control target key end

     0   :  { %s10892_s0 = inlined_call_operand.vmem [shape: s32[48,1], index: 0, kind: input, shape index: {}]   ;;  %s10893_s1 = inlined_call_operand.hbm [shape: f32[2,8], index: 1, kind: input, shape index: {}]   ;;  %s10894_s2 = inlined_call_operand.vmem [shape: f32[9,16,9], index: 2, kind: input, shape index: {}]   ;;  %s10895_s3 = inlined_call_operand.hbm [shape: f32[1,9], index: 3, kind: input, shape index: {}]   ;;  %s10896_s4 = inlined_call_operand.vmem [shape: f32[9,9,9], index: 4, kind: input, shape index: {}]   ;;  %s10897_s5 = inlined_call_operand.hbm [shape: f32[1,9], index: 5, kind: input, shape index: {}]   ;;  %s10898_s6 = inlined_call_operand.vmem [shape: f32[11,9,10], index: 6, kind: input, shape index: {}]   ;;  %s10899_s7 = inlined_call_operand.hbm [shape: f32[1,10], index: 7, kind: input, shape index: {}]   ;;  %s10900_s8 = inlined_call_operand.hbm [shape: f32[10,16], index: 8, kind: input, shape index: {}]   ;;  %s10901_s9 = inlined_call_operand.vmem [shape: f32[1,16], index: 9, kind: input, shape index: {}]   ;;  %s10902_s10 = inlined_call_operand.hbm [shape: f32[8,32], index: 10, kind: input, shape index: {}]   ;;  %s10903_s11 = inlined_call_operand.vmem [shape: f32[1,32], index: 11, kind: input, shape index: {}]   ;;  %s10904_s12 = inlined_call_operand.hbm [shape: f32[8,32], index: 12, kind: input, shape index: {}]   ;;  %s10905_s13 = inlined_call_operand.vmem [shape: f32[1,32], index: 13, kind: input, shape index: {}]   ;;  %s10906_s14 = inlined_call_operand.vmem [shape: f32[32,1], index: 14, kind: input, shape index: {}]   ;;  %s10907_s15 = inlined_call_operand.<no memory space> [shape: f32[1,1], index: 15, kind: input, shape index: {}]   ;;  %s10908_s16 = inlined_call_operand.vmem [shape: f32[16,96], index: 16, kind: input, shape index: {}]   ;;  %s10909_s17 = inlined_call_operand.vmem [shape: f32[32,96], index: 17, kind: input, shape index: {}]   ;;  %s10910_s18 = inlined_call_operand.vmem [shape: f32[1,96], index: 18, kind: input, shape index: {}]   ;;  %s10911_s19 = inlined_call_operand.vmem [shape: f32[1,96], index: 19, kind: input, shape index: {}]   ;;  %s10912_s20 = inlined_call_operand.vmem [shape: f32[1,32], index: 20, kind: input, shape index: {}]   ;;  %s10913_s21 = inlined_call_operand.vmem [shape: f32[1,32], index: 21, kind: input, shape index: {}]   ;;  %s10914_s22 = inlined_call_operand.vmem [shape: f32[32,16], index: 22, kind: input, shape index: {}]   ;;  %s10915_s23 = inlined_call_operand.vmem [shape: f32[1,16], index: 23, kind: input, shape index: {}]   ;;  %s10916_s24 = inlined_call_operand.vmem [shape: f32[46,16], index: 24, kind: output, shape index: {0}]   ;;  %s10917_s25 = inlined_call_operand.hbm [shape: f32[2,16], index: 25, kind: output, shape index: {1}]   ;;  %s10918_s26 = inlined_call_operand.vmem [shape: f32[2,1], index: 26, kind: output, shape index: {2}]  }
   0x1   :  { %10929 = sst [smem:[#allocation22_spill]] %s10892_s0  ;;  %v32_v0 = vstv %s10907_s15 }
   0x2   :  { %10930 = sst [smem:[#allocation23_spill]] %s10893_s1  ;;  %33 = vst [vmem:[#allocation3] sm:$0x1] %v32_v0 }
   0x3   :  { %10931 = sst [smem:[#allocation24_spill]] %s10894_s2 }
   0x4   :  { %10932 = sst [smem:[#allocation25_spill]] %s10895_s3 }
   0x5   :  { %10933 = sst [smem:[#allocation26_spill]] %s10896_s4 }
   0x6   :  { %10934 = sst [smem:[#allocation27_spill]] %s10897_s5 }
   0x7   :  { %10935 = sst [smem:[#allocation28_spill]] %s10898_s6 }
   0x8   :  { %10936 = sst [smem:[#allocation29_spill]] %s10899_s7 }
   0x9   :  { %10937 = sst [smem:[#allocation30_spill]] %s10900_s8 }
   0xa   :  { %10938 = sst [smem:[#allocation31_spill]] %s10901_s9 }
   0xb   :  { %10939 = sst [smem:[#allocation32_spill]] %s10902_s10 }
   0xc   :  { %34 = vsyncpa [#allocation5], 0 }
   0xd   :  { %35 = vsyncpa [#allocation8], 0 }
   0xe   :  { %36 = vsyncpa [#allocation11], 0 }
   0xf   :  { %37 = vsyncpa [#allocation14], 0 }
  0x10   :  { %38 = vsyncpa [#allocation6], 0  ;;  %s9196_s7 = smov [#allocation7]   ;;  %s9197_s8 = smov [#allocation10]  }
  0x11   :  { %s59_s28 = sshll.u32 %s9196_s7, 4  ;;  %s83_s4 = sshll.u32 %s9197_s8, 4  ;;  %s60_s28 = int_to_ptr.vmem [resolvable:$true] %s59_s28  ;;  %s84_s4 = int_to_ptr.vmem [resolvable:$true] %s83_s4 }
  0x12   :  { %s10940_s9 = sld [smem:[#allocation25_spill]] }
  0x18   :  { %s9010_s30 = scalar_lea.hbm %s10940_s9, 16 }
  0x19   :  { %p9011_p0 = scmp.ne.s32.totalorder %s10940_s9, %s9010_s30  ;;  %p9014_p1 = scmp.lt.u32.totalorder %s9010_s30, %s10940_s9 }
  0x1b   :  { %p9016_p2 = pnand %p9014_p1, %p9011_p0 }
  0x1d   :  { %9019 = shalt.err (!%p9016_p2)
}
  0x1e   :  { %s9020_s6 = scalar_lea.vmem %s60_s28, 16  ;;  %s9024_s1 = scalar_lea.vmem %s60_s28, 32 }
  0x1f   :  { %p9021_p3 = scmp.ne.s32.totalorder %s60_s28, %s9020_s6  ;;  %p9025_p4 = scmp.lt.s32.totalorder %s60_s28, %s60_s28 }
  0x20   :  { %p9026_p5 = scmp.lt.s32.totalorder %s9024_s1, %s9020_s6 }
  0x22   :  { %p9027_p6 = por %p9026_p5, %p9025_p4 }
  0x24   :  { %p9028_p7 = pnand %p9027_p6, %p9021_p3 }
  0x26   :  { %9031 = shalt.err (!%p9028_p7)
}
  0x27   :  { %62 = dma.hbm_to_vmem [thread:$0]  %s10940_s9, 16, %s60_s28, [#allocation8]  }
  0x28   :  { %s10941_s29 = sld [smem:[#allocation29_spill]] }
  0x2e   :  { %s9032_s0 = scalar_lea.hbm %s10941_s29, 16 }
  0x2f   :  { %p9033_p8 = scmp.ne.s32.totalorder %s10941_s29, %s9032_s0  ;;  %p9036_p9 = scmp.lt.u32.totalorder %s9032_s0, %s10941_s29 }
  0x31   :  { %p9038_p10 = pnand %p9036_p9, %p9033_p8 }
  0x33   :  { %9041 = shalt.err (!%p9038_p10)
}
  0x34   :  { %s9042_s10 = scalar_lea.vmem %s84_s4, 16  ;;  %s9046_s6 = scalar_lea.vmem %s84_s4, 32 }
  0x35   :  { %p9043_p11 = scmp.ne.s32.totalorder %s84_s4, %s9042_s10  ;;  %p9047_p12 = scmp.lt.s32.totalorder %s84_s4, %s84_s4 }
  0x36   :  { %p9048_p13 = scmp.lt.s32.totalorder %s9046_s6, %s9042_s10 }
  0x38   :  { %p9049_p0 = por %p9048_p13, %p9047_p12 }
  0x3a   :  { %p9050_p1 = pnand %p9049_p0, %p9043_p11 }
  0x3c   :  { %9053 = shalt.err (!%p9050_p1)
}
  0x3d   :  { %86 = dma.hbm_to_vmem [thread:$0]  %s10941_s29, 16, %s84_s4, [#allocation11]  }
  0x3e   :  { %s9198_s1 = smov [#allocation13]   ;;  %s9199_s3 = smov [#allocation4]  }
  0x3f   :  { %s107_s27 = sshll.u32 %s9198_s1, 4  ;;  %s47_s7 = sshll.u32 %s9199_s3, 4  ;;  %s108_s27 = int_to_ptr.vmem [resolvable:$true] %s107_s27  ;;  %s48_s7 = int_to_ptr.vmem [resolvable:$true] %s47_s7 }
  0x40   :  { %s10942_s2 = sld [smem:[#allocation32_spill]] }
  0x46   :  { %s9054_s30 = scalar_lea.hbm %s10942_s2, 128 }
  0x47   :  { %p9055_p2 = scmp.ne.s32.totalorder %s10942_s2, %s9054_s30  ;;  %p9058_p3 = scmp.lt.u32.totalorder %s9054_s30, %s10942_s2 }
  0x49   :  { %p9060_p4 = pnand %p9058_p3, %p9055_p2 }
  0x4b   :  { %9063 = shalt.err (!%p9060_p4)
}
  0x4c   :  { %s9064_s4 = scalar_lea.vmem %s108_s27, 128  ;;  %p9069_p6 = scmp.lt.s32.totalorder %s108_s27, %s108_s27 }
  0x4d   :  { %p9065_p5 = scmp.ne.s32.totalorder %s108_s27, %s9064_s4  ;;  %p9070_p7 = scmp.lt.s32.totalorder %s9064_s4, %s9064_s4 }
  0x4f   :  { %p9071_p8 = por %p9070_p7, %p9069_p6 }
  0x51   :  { %p9072_p9 = pnand %p9071_p8, %p9065_p5 }
  0x53   :  { %9075 = shalt.err (!%p9072_p9)
}
  0x54   :  { %110 = dma.hbm_to_vmem [thread:$0]  %s10942_s2, 128, %s108_s27, [#allocation14]  }
  0x55   :  { %s10943_s3 = sld [smem:[#allocation23_spill]] }
  0x5b   :  { %s9076_s8 = scalar_lea.hbm %s10943_s3, 32 }
  0x5c   :  { %p9077_p10 = scmp.ne.s32.totalorder %s10943_s3, %s9076_s8  ;;  %p9080_p11 = scmp.lt.u32.totalorder %s9076_s8, %s10943_s3 }
  0x5e   :  { %p9082_p12 = pnand %p9080_p11, %p9077_p10 }
  0x60   :  { %9085 = shalt.err (!%p9082_p12)
}
  0x61   :  { %s9086_s10 = scalar_lea.vmem %s48_s7, 32  ;;  %p9091_p0 = scmp.lt.s32.totalorder %s48_s7, %s48_s7 }
  0x62   :  { %p9087_p13 = scmp.ne.s32.totalorder %s48_s7, %s9086_s10  ;;  %p9092_p1 = scmp.lt.s32.totalorder %s9086_s10, %s9086_s10 }
  0x64   :  { %p9093_p2 = por %p9092_p1, %p9091_p0 }
  0x66   :  { %p9094_p3 = pnand %p9093_p2, %p9087_p13 }
  0x68   :  { %9097 = shalt.err (!%p9094_p3)
}
  0x69   :  { %50 = dma.hbm_to_vmem [thread:$0]  %s10943_s3, 32, %s48_s7, [#allocation5]  }
  0x6a   :  { %s9200_s6 = smov [#allocation9]   ;;  %s9201_s29 = smov [#allocation12]  }
  0x6b   :  { %s71_s4 = sshll.u32 %s9200_s6, 4  ;;  %s92_s28 = sshll.u32 %s9201_s29, 4  ;;  %s72_s4 = int_to_ptr.vmem [resolvable:$true] %s71_s4  ;;  %s9401_s28 = int_to_ptr.vmem [resolvable:$true] %s92_s28 }
  0x6c   :  { %s10944_s8 = sld [smem:[#allocation27_spill]] }
  0x72   :  { %s9098_s0 = scalar_lea.hbm %s10944_s8, 16 }
  0x73   :  { %p9099_p4 = scmp.ne.s32.totalorder %s10944_s8, %s9098_s0  ;;  %p9102_p5 = scmp.lt.u32.totalorder %s9098_s0, %s10944_s8 }
  0x75   :  { %p9104_p6 = pnand %p9102_p5, %p9099_p4 }
  0x77   :  { %9107 = shalt.err (!%p9104_p6)
}
  0x78   :  { %s9108_s7 = scalar_lea.vmem %s72_s4, 16  ;;  %s9112_s3 = scalar_lea.vmem %s72_s4, 32 }
  0x79   :  { %p9109_p7 = scmp.ne.s32.totalorder %s72_s4, %s9108_s7  ;;  %p9113_p8 = scmp.lt.s32.totalorder %s72_s4, %s72_s4 }
  0x7a   :  { %p9114_p9 = scmp.lt.s32.totalorder %s9112_s3, %s9108_s7 }
  0x7c   :  { %p9115_p10 = por %p9114_p9, %p9113_p8 }
  0x7e   :  { %p9116_p11 = pnand %p9115_p10, %p9109_p7 }
  0x80   :  { %9119 = shalt.err (!%p9116_p11)
}
  0x81   :  { %74 = dma.hbm_to_vmem [thread:$0]  %s10944_s8, 16, %s72_s4, [#allocation8]  }
  0x82   :  { %s10945_s9 = sld [smem:[#allocation30_spill]] }
  0x88   :  { %s9120_s1 = scalar_lea.hbm %s10945_s9, 256 }
  0x89   :  { %p9121_p12 = scmp.ne.s32.totalorder %s10945_s9, %s9120_s1  ;;  %p9124_p13 = scmp.lt.u32.totalorder %s9120_s1, %s10945_s9 }
  0x8b   :  { %p9126_p0 = pnand %p9124_p13, %p9121_p12 }
  0x8d   :  { %9129 = shalt.err (!%p9126_p0)
}
  0x8e   :  { %s9130_s10 = scalar_lea.vmem %s9401_s28, 256  ;;  %p9135_p2 = scmp.lt.s32.totalorder %s9401_s28, %s9401_s28 }
  0x8f   :  { %p9131_p1 = scmp.ne.s32.totalorder %s9401_s28, %s9130_s10  ;;  %p9136_p3 = scmp.lt.s32.totalorder %s9130_s10, %s9130_s10 }
  0x91   :  { %p9137_p4 = por %p9136_p3, %p9135_p2 }
  0x93   :  { %p9138_p5 = pnand %p9137_p4, %p9131_p1 }
  0x95   :  { %9141 = shalt.err (!%p9138_p5)
}
  0x96   :  { %s9202_s4 = smov 128   ;;  %s9203_s8 = smov 8  }
  0x97   :  { %98 = dma.hbm_to_vmem [thread:$0]  %s10945_s9, 256, %s9401_s28, [#allocation11], %s9202_s4, %s9202_s4, %s9203_s8  }
  0x98   :  { %s9204_s27 = smov [#allocation15]   ;;  %s9142_s1 = scalar_lea.hbm %s10904_s12, 128 }
  0x99   :  { %s119_s2 = sshll.u32 %s9204_s27, 4  ;;  %p9143_p6 = scmp.ne.s32.totalorder %s10904_s12, %s9142_s1  ;;  %s120_s2 = int_to_ptr.vmem [resolvable:$true] %s119_s2 }
  0x9a   :  { %p9146_p7 = scmp.lt.u32.totalorder %s9142_s1, %s10904_s12 }
  0x9c   :  { %p9148_p8 = pnand %p9146_p7, %p9143_p6 }
  0x9e   :  { %9151 = shalt.err (!%p9148_p8)
}
  0x9f   :  { %s9152_s10 = scalar_lea.vmem %s120_s2, 128  ;;  %p9157_p10 = scmp.lt.s32.totalorder %s120_s2, %s120_s2 }
  0xa0   :  { %p9153_p9 = scmp.ne.s32.totalorder %s120_s2, %s9152_s10  ;;  %p9158_p11 = scmp.lt.s32.totalorder %s9152_s10, %s9152_s10 }
  0xa2   :  { %p9159_p12 = por %p9158_p11, %p9157_p10 }
  0xa4   :  { %p9160_p13 = pnand %p9159_p12, %p9153_p9 }
  0xa6   :  { %9163 = shalt.err (!%p9160_p13)
}
  0xa7   :  { %122 = dma.hbm_to_vmem [thread:$0]  %s10904_s12, 128, %s120_s2, [#allocation14]  }
  0xa8   :  { %9186 = dma.done.wait [#allocation5], 32  }
  0xa9   :  { %9187 = vsyncadd [#allocation5], 4294967264 }
  0xaa   :  { %9188 = dma.done.wait [#allocation8], 32  }
  0xab   :  { %9189 = vsyncadd [#allocation8], 4294967264 }
  0xac   :  { %9190 = dma.done.wait [#allocation11], 272  }
  0xad   :  { %9191 = vsyncadd [#allocation11], 4294967024 }
  0xae   :  { %9192 = dma.done.wait [#allocation14], 256  }
  0xaf   :  { %9193 = vsyncadd [#allocation14], 4294967040  ;;  %v9205_v1 = vmov 0   ;;  %s10946_s7 = sld [smem:[#allocation22_spill]]  ;;  %s10947_s0 = sld [smem:[#allocation24_spill]]  ;;  %v166_v14 = vlaneseq  ;;  %v9206_v18 = vmov 0.0  }
  0xb0   :  { %8856 = vset.pattern.permute.xlu1 %v9205_v1  ;;  %8855 = vset.pattern.permute.xlu0 %v9205_v1  ;;  %v9475_v19 = vrot.slane %v9206_v18, 2  ;;  %vm222_vm2 = vcmask 1045504   ;;  %vm236_vm3 = vcmask 130048   ;;  %v9551_v48 = vrot.slane %v9206_v18, 4  ;;  %s10948_s3 = sld [smem:[#allocation26_spill]]  ;;  %s10951_s2 = sld [smem:[#allocation28_spill]] }
  0xb1   :  { %v167_v15 = vand.u32 127, %v166_v14  ;;  %vm454_vm8 = vcmask 1043456   ;;  %v9586_v63 = vrot.slane %v9206_v18, 6  ;;  %vm584_vm9 = vcmask 1041408   ;;  %s10952_s8 = sld [smem:[#allocation31_spill]]  ;;  %s9210_s27 = smov 120  }
  0xb2   :  { %vm1309_vm10 = vcmask 1040384   ;;  %vm9207_vm11 = vmmov 1   ;;  %vm1296_vm15 = vcmask 72704   ;;  %s9212_s30 = smov 32   ;;  %s9213_s15 = smov 96  }
  0xb3   :  { %vm9701_vm12 = vmpackc.low %vm1309_vm10, %vm9207_vm11 }
  0xb5   :  { %v170_v2 = vld [vmem:[%s10946_s7 + $0x10] sm:$0xff]  ;;  %v168_v3 = vld [vmem:[%s10946_s7] sm:$0xff]  ;;  %v171_v4 = vld [vmem:[%s10946_s7 + $0x18] sm:$0xff] }
  0xb6   :  { %181 = vperm.xlu1 %8856, %v170_v2   ;;  %175 = vperm.xlu0 %8855, %v168_v3   ;;  %v169_v5 = vld [vmem:[%s10946_s7 + $0x8] sm:$0xff]  ;;  %v6981_v6 = vld [vmem:[%s10947_s0 + $0x10] sm:$0xff]  ;;  %v6982_v7 = vld [vmem:[%s10947_s0 + $0x18] sm:$0xff] }
  0xb7   :  { %v8362_v8 = vpack.c.bf16 %v6982_v7, %v6981_v6  ;;  %v173_v9 = vld [vmem:[%s10946_s7 + $0x28] sm:$0xff]  ;;  %v172_v10 = vld [vmem:[%s10946_s7 + $0x20] sm:$0xff]  ;;  %v7002_v45 = vld [vmem:[%s10947_s0 + $0x30] sm:$0xff] }
  0xb8   :  { %v210_v11 = vld [vmem:[%s10947_s0] sm:$0xff]  ;;  %v211_v12 = vld [vmem:[%s10947_s0 + $0x8] sm:$0xff]  ;;  %v7003_v46 = vld [vmem:[%s10947_s0 + $0x38] sm:$0xff] }
  0xb9   :  { %8363 = vmatprep.subr.bf16.mxu0 %v8362_v8  ;;  %8678 = vmatprep.subr.bf16.mxu1 %v8362_v8  ;;  %v8366_v13 = vpack.c.bf16 %v211_v12, %v210_v11  ;;  %v6994_v27 = vld [vmem:[%s10947_s0 + $0x20] sm:$0xff]  ;;  %v6995_v28 = vld [vmem:[%s10947_s0 + $0x28] sm:$0xff]  ;;  %v8374_v47 = vpack.c.bf16 %v7003_v46, %v7002_v45  ;;  %v7018_v3 = vld [vmem:[%s10947_s0 + $0x50] sm:$0xff] }
  0xba   :  { %184 = vperm.xlu1 %8856, %v171_v4   ;;  %178 = vperm.xlu0 %8855, %v169_v5   ;;  %v8370_v35 = vpack.c.bf16 %v6995_v28, %v6994_v27  ;;  %v7010_v51 = vld [vmem:[%s10947_s0 + $0x40] sm:$0xff]  ;;  %v7011_v52 = vld [vmem:[%s10947_s0 + $0x48] sm:$0xff]  ;;  %v7019_v4 = vld [vmem:[%s10947_s0 + $0x58] sm:$0xff] }
  0xbb   :  { %8365 = vmatpush3.bf16.msra.mxu0 %v8362_v8  ;;  %8679 = vmatpush3.bf16.msra.mxu1 %v8362_v8  ;;  %v8378_v55 = vpack.c.bf16 %v7011_v52, %v7010_v51  ;;  %v8382_v7 = vpack.c.bf16 %v7019_v4, %v7018_v3  ;;  %v7042_v27 = vld [vmem:[%s10947_s0 + $0x80] sm:$0xff]  ;;  %v7043_v28 = vld [vmem:[%s10947_s0 + $0x88] sm:$0xff] }
  0xbc   :  { %8367 = vmatprep.subr.bf16.mxu0 %v8366_v13 }
  0xbe   :  { %190 = vperm.xlu1 %8856, %v173_v9   ;;  %187 = vperm.xlu0 %8855, %v172_v10  }
 0x135   :  { %v182_v16 = vpop.permute.xlu1 %181  ;;  %v176_v17 = vpop.permute.xlu0 %175 }
 0x136   :  { %vm194_vm0 = vcmp.eq.s32.totalorder %v182_v16, %v167_v15  ;;  %vm192_vm1 = vcmp.eq.s32.totalorder %v176_v17, %v167_v15  ;;  %v7026_v16 = vld [vmem:[%s10947_s0 + $0x60] sm:$0xff]  ;;  %v7027_v17 = vld [vmem:[%s10947_s0 + $0x68] sm:$0xff] }
 0x137   :  { %v9478_v20 = vsel %vm194_vm0, 1.0, %v9206_v18  ;;  %v9481_v21 = vsel %vm192_vm1, 1.0, %v9206_v18 }
 0x138   :  { %v224_v22 = vrot.slane %v9481_v21, 2  ;;  %v228_v26 = vrot.slane %v9478_v20, 2  ;;  %v456_v49 = vrot.slane %v9481_v21, 4  ;;  %v460_v54 = vrot.slane %v9478_v20, 4 }
 0x139   :  { %v185_v23 = vpop.permute.xlu1 %184  ;;  %v179_v24 = vpop.permute.xlu0 %178  ;;  %v586_v0 = vrot.slane %v9481_v21, 6  ;;  %v590_v6 = vrot.slane %v9478_v20, 6 }
 0x13a   :  { %vm195_vm4 = vcmp.eq.s32.totalorder %v185_v23, %v167_v15  ;;  %vm193_vm5 = vcmp.eq.s32.totalorder %v179_v24, %v167_v15  ;;  %v225_v25 = vsel %vm222_vm2, %v9475_v19, %v224_v22  ;;  %v457_v53 = vsel %vm454_vm8, %v9551_v48, %v456_v49  ;;  %v7034_v23 = vld [vmem:[%s10947_s0 + $0x70] sm:$0xff]  ;;  %v7035_v24 = vld [vmem:[%s10947_s0 + $0x78] sm:$0xff] }
 0x13b   :  { %v9494_v29 = vsel %vm195_vm4, 1.0, %v9206_v18  ;;  %v9497_v30 = vsel %vm193_vm5, 1.0, %v9206_v18  ;;  %7678 = vmatprep.mubr.msk.f32.mxu0 %vm236_vm3, %v225_v25  ;;  %v587_v5 = vsel %vm584_vm9, %v9586_v63, %v586_v0  ;;  %v8390_v25 = vpack.c.bf16 %v7035_v24, %v7034_v23 }
 0x13c   :  { %v226_v31 = vrot.slane %v9497_v30, 2  ;;  %v230_v32 = vrot.slane %v9494_v29, 2  ;;  %v458_v50 = vrot.slane %v9497_v30, 4  ;;  %v462_v58 = vrot.slane %v9494_v29, 4 }
 0x13d   :  { %v191_v33 = vpop.permute.xlu1 %190  ;;  %v188_v34 = vpop.permute.xlu0 %187  ;;  %v588_v2 = vrot.slane %v9497_v30, 6  ;;  %v592_v10 = vrot.slane %v9494_v29, 6 }
 0x13e   :  { %vm197_vm6 = vcmp.eq.s32.totalorder %v191_v33, %v167_v15  ;;  %vm196_vm7 = vcmp.eq.s32.totalorder %v188_v34, %v167_v15  ;;  %v9503_v36 = vsel %vm222_vm2, %v224_v22, %v226_v31  ;;  %v9506_v37 = vsel %vm222_vm2, %v226_v31, %v228_v26  ;;  %v7050_v34 = vld [vmem:[%s10948_s3 + $0x10] sm:$0xff] }
 0x13f   :  { %v9509_v38 = vsel %vm197_vm6, 1.0, %v9206_v18  ;;  %v9512_v39 = vsel %vm196_vm7, 1.0, %v9206_v18  ;;  %7679 = vmatmul.mubr.msk.f32.vlgmr.msra.gmra.mrb[0].mxu0 %vm236_vm3, %v9503_v36  ;;  %7681 = vmatprep.mubr.msk.f32.mxu1 %vm236_vm3, %v9506_v37  ;;  %v9519_v40 = vsel %vm222_vm2, %v228_v26, %v230_v32  ;;  %v9570_v56 = vsel %vm454_vm8, %v456_v49, %v458_v50 }
 0x140   :  { %8369 = vmatpush3.bf16.msra.mxu0 %v8366_v13  ;;  %7682 = vmatmul.mubr.msk.f32.vlgmr.msra.gmra.mrb[0].mxu1 %vm236_vm3, %v9519_v40  ;;  %v232_v41 = vrot.slane %v9512_v39, 2  ;;  %v234_v42 = vrot.slane %v9509_v38, 2  ;;  %v9575_v57 = vsel %vm454_vm8, %v458_v50, %v460_v54  ;;  %v464_v59 = vrot.slane %v9512_v39, 4 }
 0x141   :  { %7691 = vmatprep.mubr.f32.mxu0 %v9206_v18  ;;  %8371 = vmatprep.subr.bf16.mxu0 %v8370_v35  ;;  %v463_v60 = vsel %vm454_vm8, %v460_v54, %v462_v58  ;;  %v466_v61 = vrot.slane %v9509_v38, 4  ;;  %v589_v8 = vsel %vm584_vm9, %v586_v0, %v588_v2  ;;  %v591_v9 = vsel %vm584_vm9, %v588_v2, %v590_v6 }
 0x142   :  { %v9527_v43 = vsel %vm222_vm2, %v230_v32, %v232_v41  ;;  %v9532_v44 = vsel %vm222_vm2, %v232_v41, %v234_v42  ;;  %v465_v62 = vsel %vm454_vm8, %v462_v58, %v464_v59  ;;  %v594_v11 = vrot.slane %v9512_v39, 6  ;;  %v1274_v41 = vld [vmem:[%s10948_s3 + $0x8] sm:$0x1] }
 0x143   :  { %7684 = vmatprep.mubr.msk.f32.mxu1 %vm236_vm3, %v9527_v43  ;;  %v467_v1 = vsel %vm454_vm8, %v464_v59, %v466_v61  ;;  %v593_v12 = vsel %vm584_vm9, %v590_v6, %v592_v10  ;;  %v596_v13 = vrot.slane %v9509_v38, 6  ;;  %v8386_v22 = vpack.c.bf16 %v7027_v17, %v7026_v16  ;;  %v7065_v59 = vld [vmem:[%s10948_s3 + $0x20] sm:$0xff] }
 0x144   :  { %7685 = vmatmul.mubr.msk.f32.gmra.mrb[2].mxu1 %vm236_vm3, %v9532_v44  ;;  %v595_v14 = vsel %vm584_vm9, %v592_v10, %v594_v11  ;;  %v820_v26 = vsel %vm222_vm2, %v234_v42, %v9475_v19  ;;  %v8394_v31 = vpack.c.bf16 %v7043_v28, %v7042_v27  ;;  %v927_v32 = vsel %vm454_vm8, %v466_v61, %v9551_v48 }
 0x145   :  { %v597_v15 = vsel %vm584_vm9, %v594_v11, %v596_v13  ;;  %v1034_v33 = vsel %vm584_vm9, %v596_v13, %v9586_v63 }
 0x147   :  { %7692 = vmatmul.mubr.msk.f32.vlgmr.msra.gmra.mrb[0].mxu0 %vm236_vm3, %v9481_v21 }
 0x148   :  { %8373 = vmatpush3.bf16.msra.mxu0 %v8370_v35  ;;  %7694 = vmatprep.mubr.msk.f32.mxu0 %vm236_vm3, %v9497_v30  ;;  %v7051_v35 = vld [vmem:[%s10948_s3 + $0x18] sm:$0x1] }
 0x149   :  { %8375 = vmatprep.subr.bf16.mxu0 %v8374_v47 }
 0x14b   :  { %7695 = vmatmul.mubr.msk.f32.gmra.mrb[2].mxu0 %vm236_vm3, %v9478_v20 }
 0x14c   :  { %7697 = vmatprep.mubr.msk.f32.mxu0 %vm236_vm3, %v9494_v29 }
 0x14f   :  { %7698 = vmatmul.mubr.msk.f32.gmra.mrb[4].mxu0 %vm236_vm3, %v9512_v39 }
 0x150   :  { %7704 = vmatprep.mubr.msk.f32.mxu0 %vm236_vm3, %v457_v53 }
 0x153   :  { %7705 = vmatmul.mubr.msk.f32.vlgmr.msra.gmra.mrb[0].mxu0 %vm236_vm3, %v9570_v56 }
 0x154   :  { %8377 = vmatpush3.bf16.msra.mxu0 %v8374_v47  ;;  %7707 = vmatprep.mubr.msk.f32.mxu0 %vm236_vm3, %v9575_v57  ;;  %v7049_v47 = vld [vmem:[#allocation7] ss:$0 sm:$0xff] }
 0x155   :  { %8379 = vmatprep.subr.bf16.mxu0 %v8378_v55 }
 0x157   :  { %7708 = vmatmul.mubr.msk.f32.gmra.mrb[2].mxu0 %vm236_vm3, %v463_v60 }
 0x158   :  { %7710 = vmatprep.mubr.msk.f32.mxu0 %vm236_vm3, %v465_v62 }
 0x15b   :  { %7711 = vmatmul.mubr.msk.f32.gmra.mrb[4].mxu0 %vm236_vm3, %v467_v1 }
 0x15c   :  { %7717 = vmatprep.mubr.msk.f32.mxu0 %vm236_vm3, %v587_v5 }
 0x15f   :  { %7718 = vmatmul.mubr.msk.f32.vlgmr.msra.gmra.mrb[0].mxu0 %vm236_vm3, %v589_v8 }
 0x160   :  { %8381 = vmatpush3.bf16.msra.mxu0 %v8378_v55  ;;  %7720 = vmatprep.mubr.msk.f32.mxu0 %vm236_vm3, %v591_v9 }
 0x161   :  { %8383 = vmatprep.subr.bf16.mxu0 %v8382_v7 }
 0x163   :  { %7721 = vmatmul.mubr.msk.f32.gmra.mrb[2].mxu0 %vm236_vm3, %v593_v12 }
 0x164   :  { %7723 = vmatprep.mubr.msk.f32.mxu0 %vm236_vm3, %v595_v14 }
 0x167   :  { %7724 = vmatmul.mubr.msk.f32.gmra.mrb[4].mxu0 %vm236_vm3, %v597_v15 }
 0x168   :  { %7730 = vmatprep.mubr.msk.f32.mxu0 %vm236_vm3, %v9481_v21 }
 0x16b   :  { %7731 = vmatmul.mubr.msk.f32.vlgmr.msra.gmra.mrb[0].mxu0 %vm236_vm3, %v9497_v30 }
 0x16c   :  { %8385 = vmatpush3.bf16.msra.mxu0 %v8382_v7  ;;  %7733 = vmatprep.mubr.msk.f32.mxu0 %vm236_vm3, %v9478_v20 }
 0x16d   :  { %8387 = vmatprep.subr.bf16.mxu0 %v8386_v22 }
 0x16f   :  { %7734 = vmatmul.mubr.msk.f32.gmra.mrb[2].mxu0 %vm236_vm3, %v9494_v29 }
 0x170   :  { %7736 = vmatprep.mubr.msk.f32.mxu0 %vm236_vm3, %v9512_v39 }
 0x173   :  { %7737 = vmatmul.mubr.msk.f32.gmra.mrb[4].mxu0 %vm236_vm3, %v9509_v38 }
 0x174   :  { %7743 = vmatprep.mubr.msk.f32.mxu0 %vm236_vm3, %v9503_v36  ;;  %v8398_v36 = vpack.c.bf16 %v7051_v35, %v7050_v34  ;;  %v7074_v35 = vld [vmem:[%s10948_s3 + $0x30] sm:$0xff] }
 0x176   :  { %8400 = vmatprep.subr.msk.bf16.mxu1 %vm9701_vm12, %v8398_v36 }
 0x177   :  { %7744 = vmatmul.mubr.msk.f32.vlgmr.msra.gmra.mrb[0].mxu0 %vm236_vm3, %v9506_v37  ;;  %8403 = vmatpush3.bf16.msk.msra.mxu1 %vm9701_vm12, %v8398_v36  ;;  %v7075_v36 = vld [vmem:[%s10948_s3 + $0x38] sm:$0x1] }
 0x178   :  { %8389 = vmatpush3.bf16.msra.mxu0 %v8386_v22  ;;  %7746 = vmatprep.mubr.msk.f32.mxu0 %vm236_vm3, %v9519_v40  ;;  %v1273_v40 = vld [vmem:[%s10948_s3] sm:$0xff] }
 0x179   :  { %8391 = vmatprep.subr.bf16.mxu0 %v8390_v25  ;;  %v8404_v42 = vpack.c.bf16 %v1274_v41, %v1273_v40  ;;  %v8416_v40 = vpack.c.bf16 %v7075_v36, %v7074_v35 }
 0x17b   :  { %7747 = vmatmul.mubr.msk.f32.gmra.mrb[2].mxu0 %vm236_vm3, %v9527_v43  ;;  %8406 = vmatprep.subr.msk.bf16.mxu1 %vm9701_vm12, %v8404_v42 }
 0x17c   :  { %7749 = vmatprep.mubr.msk.f32.mxu0 %vm236_vm3, %v9532_v44 }
 0x17f   :  { %7750 = vmatmul.mubr.msk.f32.gmra.mrb[4].mxu0 %vm236_vm3, %v820_v26 }
 0x180   :  { %7756 = vmatprep.mubr.msk.f32.mxu0 %vm236_vm3, %v9570_v56 }
 0x183   :  { %7757 = vmatmul.mubr.msk.f32.vlgmr.msra.gmra.mrb[0].mxu0 %vm236_vm3, %v9575_v57 }
 0x184   :  { %8393 = vmatpush3.bf16.msra.mxu0 %v8390_v25  ;;  %7759 = vmatprep.mubr.msk.f32.mxu0 %vm236_vm3, %v463_v60  ;;  %v7066_v60 = vld [vmem:[%s10948_s3 + $0x28] sm:$0x1] }
 0x185   :  { %8395 = vmatprep.subr.bf16.mxu0 %v8394_v31  ;;  %v8410_v5 = vpack.c.bf16 %v7066_v60, %v7065_v59  ;;  %v7092_v60 = vld [vmem:[%s10948_s3 + $0x50] sm:$0xff] }
 0x187   :  { %7760 = vmatmul.mubr.msk.f32.gmra.mrb[2].mxu0 %vm236_vm3, %v465_v62 }
 0x188   :  { %7762 = vmatprep.mubr.msk.f32.mxu0 %vm236_vm3, %v467_v1 }
 0x18b   :  { %7763 = vmatmul.mubr.msk.f32.gmra.mrb[4].mxu0 %vm236_vm3, %v927_v32 }
 0x18c   :  { %7769 = vmatprep.mubr.msk.f32.mxu0 %vm236_vm3, %v589_v8 }
 0x18f   :  { %7770 = vmatmul.mubr.msk.f32.vlgmr.msra.gmra.mrb[0].mxu0 %vm236_vm3, %v591_v9 }
 0x190   :  { %8397 = vmatpush3.bf16.msra.mxu0 %v8394_v31  ;;  %7772 = vmatprep.mubr.msk.f32.mxu0 %vm236_vm3, %v593_v12 }
 0x193   :  { %7773 = vmatmul.mubr.msk.f32.gmra.mrb[2].mxu0 %vm236_vm3, %v595_v14 }
 0x194   :  { %7775 = vmatprep.mubr.msk.f32.mxu0 %vm236_vm3, %v597_v15 }
 0x197   :  { %7776 = vmatmul.mubr.msk.f32.gmra.mrb[4].mxu0 %vm236_vm3, %v1034_v33 }
 0x198   :  { %7782 = vmatprep.mubr.msk.f32.mxu0 %vm236_vm3, %v9497_v30 }
 0x19b   :  { %7783 = vmatmul.mubr.msk.f32.vlgmr.msra.gmra.mrb[0].mxu0 %vm236_vm3, %v9478_v20 }
 0x19c   :  { %7785 = vmatprep.mubr.msk.f32.mxu0 %vm236_vm3, %v9494_v29 }
 0x19f   :  { %7786 = vmatmul.mubr.msk.f32.gmra.mrb[2].mxu0 %vm236_vm3, %v9512_v39 }
 0x1a0   :  { %7788 = vmatprep.mubr.msk.f32.mxu0 %vm236_vm3, %v9509_v38 }
 0x1a3   :  { %7789 = vmatmul.mubr.f32.gmra.mrb[4].mxu0 %v9206_v18 }
 0x213   :  { %v7683_v43 = vpop.f32.mrb[0].mxu1 }
 0x214   :  { %v325_v44 = vpop.f32.mrb[1].mxu1 }
 0x217   :  { %v7686_v45 = vpop.f32.mrb[2].mxu1 }
 0x218   :  { %v335_v46 = vpop.f32.mrb[3].mxu1 }
 0x26e   :  { %v7784_v49 = vpop.f32.mrb[0].mxu0 }
 0x26f   :  { %v1250_v50 = vadd.f32 %v7784_v49, %v7049_v47  ;;  %v1207_v51 = vpop.f32.mrb[1].mxu0 }
 0x270   :  { %v1249_v52 = vadd.f32 %v7049_v47, %v1207_v51 }
 0x271   :  { %vm1256_vm13 = vcmp.gt.f32.partialorder %v1250_v50, 0.0  ;;  %v1262_v53 = vmul.f32 0.01, %v1250_v50 }
 0x272   :  { %vm1255_vm14 = vcmp.gt.f32.partialorder %v1249_v52, 0.0  ;;  %v1261_v54 = vmul.f32 0.01, %v1249_v52  ;;  %v7787_v55 = vpop.f32.mrb[2].mxu0 }
 0x273   :  { %v9717_v56 = vsel %vm1256_vm13, %v1250_v50, %v1262_v53  ;;  %v8680_v57 = vadd.f32 %v7787_v55, %v7683_v43  ;;  %v1217_v58 = vpop.f32.mrb[3].mxu0  ;;  %v7083_v43 = vld [vmem:[%s10948_s3 + $0x40] sm:$0xff] }
 0x274   :  { %v9725_v61 = vsel %vm1255_vm14, %v1249_v52, %v1261_v54  ;;  %v8681_v62 = vadd.f32 %v1217_v58, %v325_v44  ;;  %v1286_v0 = vrot.slane %v9717_v56, 2  ;;  %v7084_v44 = vld [vmem:[%s10948_s3 + $0x48] sm:$0x1]  ;;  %v1654_v59 = vrot.slane %v9717_v56, 6 }
 0x275   :  { %v1252_v1 = vadd.f32 %v8680_v57, %v7049_v47  ;;  %v1284_v2 = vrot.slane %v9725_v61, 2  ;;  %v1521_v41 = vrot.slane %v9725_v61, 4  ;;  %v1652_v57 = vrot.slane %v9725_v61, 6 }
 0x276   :  { %v1251_v3 = vadd.f32 %v8681_v62, %v7049_v47  ;;  %v7790_v4 = vpop.f32.mrb[4].mxu0  ;;  %v7093_v62 = vld [vmem:[%s10948_s3 + $0x58] sm:$0x1] }
 0x277   :  { %vm1258_vm0 = vcmp.gt.f32.partialorder %v1252_v1, 0.0  ;;  %v1264_v6 = vmul.f32 0.01, %v1252_v1  ;;  %v8682_v7 = vadd.f32 %v7790_v4, %v7686_v45  ;;  %v1227_v8 = vpop.f32.mrb[5].mxu0  ;;  %v1285_v9 = vsel %vm222_vm2, %v9475_v19, %v1284_v2 }
 0x278   :  { %vm1257_vm1 = vcmp.gt.f32.partialorder %v1251_v3, 0.0  ;;  %v1263_v10 = vmul.f32 0.01, %v1251_v3  ;;  %v8683_v11 = vadd.f32 %v1227_v8, %v335_v46  ;;  %7795 = vmatprep.mubr.msk.f32.mxu1 %vm1296_vm15, %v1285_v9  ;;  %v9733_v12 = vsel %vm222_vm2, %v1284_v2, %v1286_v0 }
 0x279   :  { %v9735_v13 = vsel %vm1258_vm0, %v1252_v1, %v1264_v6  ;;  %v1254_v14 = vadd.f32 %v8682_v7, %v7049_v47  ;;  %7796 = vmatmul.mubr.msk.f32.vlgmr.msra.gmra.mrb[4].mxu1 %vm1296_vm15, %v9733_v12  ;;  %v1522_v45 = vsel %vm454_vm8, %v9551_v48, %v1521_v41  ;;  %v8428_v2 = vpack.c.bf16 %v7093_v62, %v7092_v60  ;;  %v7143_v62 = vld [vmem:[%s10951_s2 + $0x20] sm:$0xff] }
 0x27a   :  { %v9739_v15 = vsel %vm1257_vm1, %v1251_v3, %v1263_v10  ;;  %v1253_v16 = vadd.f32 %v8683_v11, %v7049_v47  ;;  %8409 = vmatpush3.bf16.msk.msra.mxu1 %vm9701_vm12, %v8404_v42  ;;  %v1290_v17 = vrot.slane %v9735_v13, 2  ;;  %v1523_v42 = vrot.slane %v9717_v56, 4  ;;  %v7101_v11 = vld [vmem:[%s10948_s3 + $0x60] sm:$0xff] }
 0x27b   :  { %vm1260_vm4 = vcmp.gt.f32.partialorder %v1254_v14, 0.0  ;;  %v1266_v22 = vmul.f32 0.01, %v1254_v14  ;;  %v1288_v23 = vrot.slane %v9739_v15, 2  ;;  %8412 = vmatprep.subr.msk.bf16.mxu1 %vm9701_vm12, %v8410_v5  ;;  %v1525_v46 = vrot.slane %v9739_v15, 4 }
 0x27c   :  { %vm1259_vm5 = vcmp.gt.f32.partialorder %v1253_v16, 0.0  ;;  %v1265_v24 = vmul.f32 0.01, %v1253_v16  ;;  %v8422_v47 = vpack.c.bf16 %v7084_v44, %v7083_v43  ;;  %v9809_v49 = vsel %vm454_vm8, %v1521_v41, %v1523_v42 }
 0x27d   :  { %v9747_v25 = vsel %vm1260_vm4, %v1254_v14, %v1266_v22  ;;  %v9750_v26 = vsel %vm222_vm2, %v1286_v0, %v1288_v23  ;;  %v9753_v27 = vsel %vm222_vm2, %v1288_v23, %v1290_v17  ;;  %v1527_v50 = vrot.slane %v9735_v13, 4  ;;  %v7102_v14 = vld [vmem:[%s10948_s3 + $0x68] sm:$0x1]  ;;  %v7119_v23 = vld [vmem:[%s10948_s3 + $0x80] sm:$0xff] }
 0x27e   :  { %v9755_v28 = vsel %vm1259_vm5, %v1253_v16, %v1265_v24  ;;  %7798 = vmatprep.mubr.msk.f32.mxu1 %vm1296_vm15, %v9750_v26  ;;  %v1294_v31 = vrot.slane %v9747_v25, 2  ;;  %v1526_v51 = vsel %vm454_vm8, %v1523_v42, %v1525_v46  ;;  %v1531_v54 = vrot.slane %v9747_v25, 4  ;;  %v7120_v24 = vld [vmem:[%s10948_s3 + $0x88] sm:$0x1] }
 0x27f   :  { %7799 = vmatmul.mubr.msk.f32.gmra.mrb[6].mxu1 %vm1296_vm15, %v9753_v27  ;;  %v1292_v32 = vrot.slane %v9755_v28, 2  ;;  %v1529_v52 = vrot.slane %v9755_v28, 4  ;;  %v1528_v53 = vsel %vm454_vm8, %v1525_v46, %v1527_v50  ;;  %v1653_v0 = vsel %vm584_vm9, %v9586_v63, %v1652_v57 }
 0x280   :  { %v1656_v1 = vrot.slane %v9739_v15, 6  ;;  %v1655_v3 = vsel %vm584_vm9, %v1652_v57, %v1654_v59  ;;  %v1658_v4 = vrot.slane %v9735_v13, 6  ;;  %v1660_v6 = vrot.slane %v9755_v28, 6 }
 0x281   :  { %v9764_v33 = vsel %vm222_vm2, %v1290_v17, %v1292_v32  ;;  %v9769_v34 = vsel %vm222_vm2, %v1292_v32, %v1294_v31  ;;  %v1530_v55 = vsel %vm454_vm8, %v1527_v50, %v1529_v52  ;;  %v1532_v58 = vsel %vm454_vm8, %v1529_v52, %v1531_v54  ;;  %v7111_v17 = vld [vmem:[%s10948_s3 + $0x78] sm:$0x1]  ;;  %v7128_v32 = vld [vmem:[%s10951_s2 + $0x10] sm:$0xff] }
 0x282   :  { %7801 = vmatprep.mubr.msk.f32.mxu1 %vm1296_vm15, %v9764_v33  ;;  %v1659_v7 = vsel %vm584_vm9, %v1656_v1, %v1658_v4  ;;  %v1662_v8 = vrot.slane %v9747_v25, 6  ;;  %v1661_v9 = vsel %vm584_vm9, %v1658_v4, %v1660_v6  ;;  %v8434_v16 = vpack.c.bf16 %v7102_v14, %v7101_v11 }
 0x283   :  { %7802 = vmatmul.mubr.msk.f32.gmra.mrb[8].mxu1 %vm1296_vm15, %v9769_v34  ;;  %vm3753_vm5 = vcmask 80896  }
 0x284   :  { %7808 = vmatprep.mubr.f32.mxu1 %v9206_v18  ;;  %v1663_v10 = vsel %vm584_vm9, %v1660_v6, %v1662_v8 }
 0x287   :  { %7809 = vmatmul.mubr.msk.f32.vlgmr.msra.gmra.mrb[4].mxu1 %vm1296_vm15, %v9725_v61 }
 0x288   :  { %8415 = vmatpush3.bf16.msk.msra.mxu1 %vm9701_vm12, %v8410_v5  ;;  %7811 = vmatprep.mubr.msk.f32.mxu1 %vm1296_vm15, %v9717_v56  ;;  %v1657_v5 = vsel %vm584_vm9, %v1654_v59, %v1656_v1 }
 0x289   :  { %8418 = vmatprep.subr.msk.bf16.mxu1 %vm9701_vm12, %v8416_v40 }
 0x28b   :  { %7812 = vmatmul.mubr.msk.f32.gmra.mrb[6].mxu1 %vm1296_vm15, %v9739_v15 }
 0x28c   :  { %7814 = vmatprep.mubr.msk.f32.mxu1 %vm1296_vm15, %v9735_v13 }
 0x28f   :  { %7815 = vmatmul.mubr.msk.f32.gmra.mrb[8].mxu1 %vm1296_vm15, %v9755_v28 }
 0x290   :  { %7821 = vmatprep.mubr.msk.f32.mxu1 %vm1296_vm15, %v1522_v45 }
 0x293   :  { %7822 = vmatmul.mubr.msk.f32.vlgmr.msra.gmra.mrb[4].mxu1 %vm1296_vm15, %v9809_v49 }
 0x294   :  { %8421 = vmatpush3.bf16.msk.msra.mxu1 %vm9701_vm12, %v8416_v40  ;;  %7824 = vmatprep.mubr.msk.f32.mxu1 %vm1296_vm15, %v1526_v51 }
 0x295   :  { %8424 = vmatprep.subr.msk.bf16.mxu1 %vm9701_vm12, %v8422_v47 }
 0x297   :  { %7825 = vmatmul.mubr.msk.f32.gmra.mrb[6].mxu1 %vm1296_vm15, %v1528_v53 }
 0x298   :  { %7827 = vmatprep.mubr.msk.f32.mxu1 %vm1296_vm15, %v1530_v55 }
 0x29b   :  { %7828 = vmatmul.mubr.msk.f32.gmra.mrb[8].mxu1 %vm1296_vm15, %v1532_v58 }
 0x29c   :  { %7834 = vmatprep.mubr.msk.f32.mxu1 %vm1296_vm15, %v1653_v0  ;;  %v7144_v0 = vld [vmem:[%s10951_s2 + $0x28] sm:$0x1] }
 0x29f   :  { %7835 = vmatmul.mubr.msk.f32.vlgmr.msra.gmra.mrb[4].mxu1 %vm1296_vm15, %v1655_v3 }
 0x2a0   :  { %8427 = vmatpush3.bf16.msk.msra.mxu1 %vm9701_vm12, %v8422_v47  ;;  %7837 = vmatprep.mubr.msk.f32.mxu1 %vm1296_vm15, %v1657_v5 }
 0x2a1   :  { %8430 = vmatprep.subr.msk.bf16.mxu1 %vm9701_vm12, %v8428_v2 }
 0x2a3   :  { %7838 = vmatmul.mubr.msk.f32.gmra.mrb[6].mxu1 %vm1296_vm15, %v1659_v7 }
 0x2a4   :  { %7840 = vmatprep.mubr.msk.f32.mxu1 %vm1296_vm15, %v1661_v9 }
 0x2a7   :  { %7841 = vmatmul.mubr.msk.f32.gmra.mrb[8].mxu1 %vm1296_vm15, %v1663_v10 }
 0x2a8   :  { %7847 = vmatprep.mubr.msk.f32.mxu1 %vm1296_vm15, %v9725_v61  ;;  %v7110_v61 = vld [vmem:[%s10948_s3 + $0x70] sm:$0xff] }
 0x2a9   :  { %v8440_v22 = vpack.c.bf16 %v7111_v17, %v7110_v61 }
 0x2ab   :  { %7848 = vmatmul.mubr.msk.f32.vlgmr.msra.gmra.mrb[4].mxu1 %vm1296_vm15, %v9717_v56 }
 0x2ac   :  { %8433 = vmatpush3.bf16.msk.msra.mxu1 %vm9701_vm12, %v8428_v2  ;;  %7850 = vmatprep.mubr.msk.f32.mxu1 %vm1296_vm15, %v9739_v15 }
 0x2ad   :  { %8436 = vmatprep.subr.msk.bf16.mxu1 %vm9701_vm12, %v8434_v16 }
 0x2af   :  { %7851 = vmatmul.mubr.msk.f32.gmra.mrb[6].mxu1 %vm1296_vm15, %v9735_v13 }
 0x2b0   :  { %7853 = vmatprep.mubr.msk.f32.mxu1 %vm1296_vm15, %v9755_v28 }
 0x2b3   :  { %7854 = vmatmul.mubr.msk.f32.gmra.mrb[8].mxu1 %vm1296_vm15, %v9747_v25 }
 0x2b4   :  { %7860 = vmatprep.mubr.msk.f32.mxu1 %vm1296_vm15, %v9733_v12  ;;  %v1892_v12 = vsel %vm222_vm2, %v1294_v31, %v9475_v19  ;;  %v2112_v31 = vsel %vm584_vm9, %v1662_v8, %v9586_v63 }
 0x2b7   :  { %7861 = vmatmul.mubr.msk.f32.vlgmr.msra.gmra.mrb[4].mxu1 %vm1296_vm15, %v9750_v26  ;;  %v8446_v26 = vpack.c.bf16 %v7120_v24, %v7119_v23 }
 0x2b8   :  { %8439 = vmatpush3.bf16.msk.msra.mxu1 %vm9701_vm12, %v8434_v16  ;;  %7863 = vmatprep.mubr.msk.f32.mxu1 %vm1296_vm15, %v9753_v27  ;;  %v2002_v27 = vsel %vm454_vm8, %v1531_v54, %v9551_v48 }
 0x2b9   :  { %8442 = vmatprep.subr.msk.bf16.mxu1 %vm9701_vm12, %v8440_v22 }
 0x2bb   :  { %7864 = vmatmul.mubr.msk.f32.gmra.mrb[6].mxu1 %vm1296_vm15, %v9764_v33  ;;  %v7127_v33 = vld [vmem:[#allocation9] ss:$0 sm:$0xff] }
 0x2bc   :  { %7866 = vmatprep.mubr.msk.f32.mxu1 %vm1296_vm15, %v9769_v34 }
 0x2bf   :  { %7867 = vmatmul.mubr.msk.f32.gmra.mrb[8].mxu1 %vm1296_vm15, %v1892_v12 }
 0x2c0   :  { %7873 = vmatprep.mubr.msk.f32.mxu1 %vm1296_vm15, %v9809_v49 }
 0x2c3   :  { %7874 = vmatmul.mubr.msk.f32.vlgmr.msra.gmra.mrb[4].mxu1 %vm1296_vm15, %v1526_v51 }
 0x2c4   :  { %8445 = vmatpush3.bf16.msk.msra.mxu1 %vm9701_vm12, %v8440_v22  ;;  %7876 = vmatprep.mubr.msk.f32.mxu1 %vm1296_vm15, %v1528_v53 }
 0x2c5   :  { %8448 = vmatprep.subr.msk.bf16.mxu1 %vm9701_vm12, %v8446_v26 }
 0x2c7   :  { %7877 = vmatmul.mubr.msk.f32.gmra.mrb[6].mxu1 %vm1296_vm15, %v1530_v55 }
 0x2c8   :  { %7879 = vmatprep.mubr.msk.f32.mxu1 %vm1296_vm15, %v1532_v58 }
 0x2cb   :  { %7880 = vmatmul.mubr.msk.f32.gmra.mrb[8].mxu1 %vm1296_vm15, %v2002_v27 }
 0x2cc   :  { %7886 = vmatprep.mubr.msk.f32.mxu1 %vm1296_vm15, %v1655_v3 }
 0x2cf   :  { %7887 = vmatmul.mubr.msk.f32.vlgmr.msra.gmra.mrb[4].mxu1 %vm1296_vm15, %v1657_v5 }
 0x2d0   :  { %8451 = vmatpush3.bf16.msk.msra.mxu1 %vm9701_vm12, %v8446_v26  ;;  %7889 = vmatprep.mubr.msk.f32.mxu1 %vm1296_vm15, %v1659_v7 }
 0x2d3   :  { %7890 = vmatmul.mubr.msk.f32.gmra.mrb[6].mxu1 %vm1296_vm15, %v1661_v9 }
 0x2d4   :  { %7892 = vmatprep.mubr.msk.f32.mxu1 %vm1296_vm15, %v1663_v10  ;;  %v8464_v10 = vpack.c.bf16 %v7144_v0, %v7143_v62 }
 0x2d7   :  { %7893 = vmatmul.mubr.msk.f32.gmra.mrb[8].mxu1 %vm1296_vm15, %v2112_v31 }
 0x2d8   :  { %7899 = vmatprep.mubr.msk.f32.mxu1 %vm1296_vm15, %v9717_v56  ;;  %v7129_v56 = vld [vmem:[%s10951_s2 + $0x18] sm:$0x1] }
 0x2db   :  { %7900 = vmatmul.mubr.msk.f32.vlgmr.msra.gmra.mrb[4].mxu1 %vm1296_vm15, %v9739_v15  ;;  %v8452_v15 = vpack.c.bf16 %v7129_v56, %v7128_v32 }
 0x2dc   :  { %7902 = vmatprep.mubr.msk.f32.mxu1 %vm1296_vm15, %v9735_v13  ;;  %v2378_v13 = vld [vmem:[%s10951_s2] sm:$0xff] }
 0x2dd   :  { %8454 = vmatprep.subr.msk.bf16.mxu0 %vm9701_vm12, %v8452_v15 }
 0x2de   :  { %8457 = vmatpush3.bf16.msk.msra.mxu0 %vm9701_vm12, %v8452_v15 }
 0x2df   :  { %7903 = vmatmul.mubr.msk.f32.gmra.mrb[6].mxu1 %vm1296_vm15, %v9755_v28 }
 0x2e0   :  { %7905 = vmatprep.mubr.msk.f32.mxu1 %vm1296_vm15, %v9747_v25  ;;  %v2379_v25 = vld [vmem:[%s10951_s2 + $0x8] sm:$0x1] }
 0x2e1   :  { %v8458_v28 = vpack.c.bf16 %v2379_v25, %v2378_v13 }
 0x2e3   :  { %7906 = vmatmul.mubr.f32.gmra.mrb[8].mxu1 %v9206_v18  ;;  %8460 = vmatprep.subr.msk.bf16.mxu0 %vm9701_vm12, %v8458_v28 }
 0x3ae   :  { %v7901_v34 = vpop.f32.mrb[4].mxu1 }
 0x3af   :  { %v2334_v35 = vadd.f32 %v7901_v34, %v7127_v33  ;;  %v2291_v36 = vpop.f32.mrb[5].mxu1 }
 0x3b0   :  { %v2333_v40 = vadd.f32 %v7127_v33, %v2291_v36 }
 0x3b1   :  { %vm2340_vm6 = vcmp.gt.f32.partialorder %v2334_v35, 0.0  ;;  %v2346_v41 = vmul.f32 0.01, %v2334_v35 }
 0x3b2   :  { %vm2339_vm7 = vcmp.gt.f32.partialorder %v2333_v40, 0.0  ;;  %v2345_v42 = vmul.f32 0.01, %v2333_v40  ;;  %v7904_v43 = vpop.f32.mrb[6].mxu1 }
 0x3b3   :  { %v2352_v44 = vsel %vm2340_vm6, %v2334_v35, %v2346_v41  ;;  %v2336_v45 = vadd.f32 %v7904_v43, %v7127_v33  ;;  %v2301_v46 = vpop.f32.mrb[7].mxu1  ;;  %v7162_v41 = vld [vmem:[%s10951_s2 + $0x48] sm:$0x1]  ;;  %vm3830_vm6 = vcmask 123904  }
 0x3b4   :  { %v2364_v47 = vrot.slane %v2352_v44, 6  ;;  %v2351_v49 = vsel %vm2339_vm7, %v2333_v40, %v2345_v42  ;;  %v2335_v50 = vadd.f32 %v7127_v33, %v2301_v46  ;;  %v7161_v40 = vld [vmem:[%s10951_s2 + $0x40] sm:$0xff]  ;;  %vm3850_vm7 = vcmask 64512  }
 0x3b5   :  { %v2363_v51 = vrot.slane %v2351_v49, 6  ;;  %vm2342_vm10 = vcmp.gt.f32.partialorder %v2336_v45, 0.0  ;;  %v2348_v52 = vmul.f32 0.01, %v2336_v45  ;;  %v8476_v44 = vpack.c.bf16 %v7162_v41, %v7161_v40 }
 0x3b6   :  { %vm2341_vm13 = vcmp.gt.f32.partialorder %v2335_v50, 0.0  ;;  %v2347_v53 = vmul.f32 0.01, %v2335_v50  ;;  %v7907_v54 = vpop.f32.mrb[8].mxu1 }
 0x3b7   :  { %v9967_v55 = vsel %vm584_vm9, %v2363_v51, %v2364_v47  ;;  %v9970_v57 = vsel %vm584_vm9, 0.0, %v2363_v51  ;;  %v2354_v58 = vsel %vm2342_vm10, %v2336_v45, %v2348_v52  ;;  %v2338_v59 = vadd.f32 %v7907_v54, %v7127_v33  ;;  %v2311_v60 = vpop.f32.mrb[9].mxu1 }
 0x3b8   :  { %v2368_v1 = vrot.slane %v2354_v58, 6  ;;  %v2353_v2 = vsel %vm2341_vm13, %v2335_v50, %v2347_v53  ;;  %v2337_v3 = vadd.f32 %v7127_v33, %v2311_v60  ;;  %v2384_v4 = vrot.slane %v9970_v57, 2  ;;  %v7153_v33 = vld [vmem:[%s10951_s2 + $0x38] sm:$0x1] }
 0x3b9   :  { %v2366_v5 = vrot.slane %v2353_v2, 6  ;;  %vm2344_vm14 = vcmp.gt.f32.partialorder %v2338_v59, 0.0  ;;  %v2350_v6 = vmul.f32 0.01, %v2338_v59  ;;  %v2386_v7 = vrot.slane %v9967_v55, 2 }
 0x3ba   :  { %vm2343_vm0 = vcmp.gt.f32.partialorder %v2337_v3, 0.0  ;;  %v2349_v8 = vmul.f32 0.01, %v2337_v3  ;;  %v2385_v9 = vsel %vm222_vm2, %v9475_v19, %v2384_v4  ;;  %v2617_v35 = vrot.slane %v9970_v57, 4  ;;  %v7171_v60 = vld [vmem:[%s10951_s2 + $0x58] sm:$0x1] }
 0x3bb   :  { %v9983_v11 = vsel %vm584_vm9, %v2364_v47, %v2366_v5  ;;  %v9986_v14 = vsel %vm584_vm9, %v2366_v5, %v2368_v1  ;;  %v9988_v16 = vsel %vm2344_vm14, %v2338_v59, %v2350_v6  ;;  %7912 = vmatprep.mubr.msk.f32.mxu0 %vm1296_vm15, %v2385_v9  ;;  %v9992_v61 = vsel %vm222_vm2, %v2384_v4, %v2386_v7  ;;  %v7170_v59 = vld [vmem:[%s10951_s2 + $0x50] sm:$0xff]  ;;  %v7179_v9 = vld [vmem:[%s10951_s2 + $0x60] sm:$0xff] }
 0x3bc   :  { %v2372_v17 = vrot.slane %v9988_v16, 6  ;;  %v2355_v22 = vsel %vm2343_vm0, %v2337_v3, %v2349_v8  ;;  %7913 = vmatmul.mubr.msk.f32.vlgmr.msra.gmra.mrb[6].mxu0 %vm1296_vm15, %v9992_v61  ;;  %v2388_v12 = vrot.slane %v9983_v11, 2  ;;  %v2390_v23 = vrot.slane %v9986_v14, 2 }
 0x3bd   :  { %v2370_v24 = vrot.slane %v2355_v22, 6  ;;  %8463 = vmatpush3.bf16.msk.msra.mxu0 %vm9701_vm12, %v8458_v28  ;;  %v7152_v28 = vld [vmem:[%s10951_s2 + $0x30] sm:$0xff]  ;;  %v2619_v36 = vrot.slane %v9967_v55, 4  ;;  %v2618_v42 = vsel %vm454_vm8, %v9551_v48, %v2617_v35  ;;  %v2621_v43 = vrot.slane %v9983_v11, 4 }
 0x3be   :  { %v10002_v26 = vsel %vm222_vm2, %v2386_v7, %v2388_v12  ;;  %v10005_v27 = vsel %vm222_vm2, %v2388_v12, %v2390_v23  ;;  %8466 = vmatprep.subr.msk.bf16.mxu0 %vm9701_vm12, %v8464_v10  ;;  %v8470_v34 = vpack.c.bf16 %v7153_v33, %v7152_v28  ;;  %v2623_v46 = vrot.slane %v9986_v14, 4  ;;  %v7189_v12 = vld [vmem:[%s10951_s2 + $0x78] sm:$0x1] }
 0x3bf   :  { %v10010_v31 = vsel %vm584_vm9, %v2368_v1, %v2370_v24  ;;  %v10015_v32 = vsel %vm584_vm9, %v2370_v24, %v2372_v17  ;;  %7915 = vmatprep.mubr.msk.f32.mxu0 %vm1296_vm15, %v10002_v26  ;;  %v10069_v45 = vsel %vm454_vm8, %v2617_v35, %v2619_v36  ;;  %v10075_v47 = vsel %vm454_vm8, %v2619_v36, %v2621_v43  ;;  %v7207_v35 = vld [vmem:[%s10951_s2 + $0x98] sm:$0x1] }
 0x3c0   :  { %7916 = vmatmul.mubr.msk.f32.gmra.mrb[8].mxu0 %vm1296_vm15, %v10005_v27  ;;  %v2392_v56 = vrot.slane %v10010_v31, 2  ;;  %v2394_v15 = vrot.slane %v10015_v32, 2  ;;  %v2625_v49 = vrot.slane %v10010_v31, 4  ;;  %v10085_v50 = vsel %vm454_vm8, %v2621_v43, %v2623_v46  ;;  %v7216_v43 = vld [vmem:[%s10951_s2 + $0xa8] sm:$0x1] }
 0x3c1   :  { %v2627_v51 = vrot.slane %v10015_v32, 4  ;;  %v2748_v53 = vrot.slane %v9970_v57, 6  ;;  %v2750_v58 = vrot.slane %v9967_v55, 6  ;;  %v2752_v0 = vrot.slane %v9983_v11, 6 }
 0x3c2   :  { %v10024_v13 = vsel %vm222_vm2, %v2390_v23, %v2392_v56  ;;  %v10029_v25 = vsel %vm222_vm2, %v2392_v56, %v2394_v15  ;;  %v10091_v52 = vsel %vm454_vm8, %v2623_v46, %v2625_v49  ;;  %v8482_v1 = vpack.c.bf16 %v7171_v60, %v7170_v59 }
 0x3c3   :  { %7918 = vmatprep.mubr.msk.f32.mxu0 %vm1296_vm15, %v10024_v13  ;;  %v10099_v54 = vsel %vm454_vm8, %v2625_v49, %v2627_v51  ;;  %v2749_v62 = vsel %vm584_vm9, %v9586_v63, %v2748_v53  ;;  %v2751_v2 = vsel %vm584_vm9, %v2748_v53, %v2750_v58  ;;  %v2754_v3 = vrot.slane %v9986_v14, 6 }
 0x3c4   :  { %7919 = vmatmul.mubr.msk.f32.gmra.mrb[10].mxu0 %vm1296_vm15, %v10029_v25  ;;  %v2753_v4 = vsel %vm584_vm9, %v2750_v58, %v2752_v0  ;;  %v2756_v5 = vrot.slane %v10010_v31, 6  ;;  %v2758_v6 = vrot.slane %v10015_v32, 6  ;;  %v2377_v24 = vsel %vm584_vm9, %v2372_v17, 0.0  ;;  %v7198_v17 = vld [vmem:[%s10951_s2 + $0x88] sm:$0x1] }
 0x3c5   :  { %7925 = vmatprep.mubr.f32.mxu0 %v9206_v18  ;;  %v2755_v63 = vsel %vm584_vm9, %v2752_v0, %v2754_v3  ;;  %v2989_v56 = vrot.slane %v2377_v24, 2  ;;  %v3211_v40 = vrot.slane %v2377_v24, 6  ;;  %vm4017_vm10 = vcmask 261120  }
 0x3c6   :  { %v2757_v7 = vsel %vm584_vm9, %v2754_v3, %v2756_v5  ;;  %v2759_v8 = vsel %vm584_vm9, %v2756_v5, %v2758_v6  ;;  %vm4091_vm13 = vcmask 1024   ;;  %vm4314_vm14 = vcmask 254976  }
 0x3c7   :  { %v2990_v16 = vsel %vm222_vm2, %v2394_v15, %v2989_v56  ;;  %v3100_v15 = vrot.slane %v2377_v24, 4  ;;  %v3212_v41 = vsel %vm584_vm9, %v2758_v6, %v3211_v40  ;;  %vm4422_vm0 = vcmask 257026  }
 0x3c8   :  { %7926 = vmatmul.mubr.msk.f32.vlgmr.msra.gmra.mrb[6].mxu0 %vm1296_vm15, %v9970_v57 }
 0x3c9   :  { %8469 = vmatpush3.bf16.msk.msra.mxu0 %vm9701_vm12, %v8464_v10  ;;  %7928 = vmatprep.mubr.msk.f32.mxu0 %vm1296_vm15, %v9967_v55  ;;  %v7180_v10 = vld [vmem:[%s10951_s2 + $0x68] sm:$0x1]  ;;  %v3101_v33 = vsel %vm454_vm8, %v2627_v51, %v3100_v15  ;;  %v3541_v37 = vsel %vm454_vm8, %v3100_v15, %v9551_v48  ;;  %v7224_v48 = vld [vmem:[#allocation10] ss:$0 sm:$0xff] }
 0x3ca   :  { %8472 = vmatprep.subr.msk.bf16.mxu0 %vm9701_vm12, %v8470_v34  ;;  %v8488_v22 = vpack.c.bf16 %v7180_v10, %v7179_v9 }
 0x3cc   :  { %7929 = vmatmul.mubr.msk.f32.gmra.mrb[8].mxu0 %vm1296_vm15, %v9983_v11 }
 0x3cd   :  { %7931 = vmatprep.mubr.msk.f32.mxu0 %vm1296_vm15, %v9986_v14 }
 0x3d0   :  { %7932 = vmatmul.mubr.msk.f32.gmra.mrb[10].mxu0 %vm1296_vm15, %v10010_v31 }
 0x3d1   :  { %7938 = vmatprep.mubr.msk.f32.mxu0 %vm1296_vm15, %v2618_v42  ;;  %v7215_v42 = vld [vmem:[%s10951_s2 + $0xa0] sm:$0xff] }
 0x3d4   :  { %7939 = vmatmul.mubr.msk.f32.vlgmr.msra.gmra.mrb[6].mxu0 %vm1296_vm15, %v10069_v45 }
 0x3d5   :  { %8475 = vmatpush3.bf16.msk.msra.mxu0 %vm9701_vm12, %v8470_v34  ;;  %7941 = vmatprep.mubr.msk.f32.mxu0 %vm1296_vm15, %v10075_v47  ;;  %v7206_v34 = vld [vmem:[%s10951_s2 + $0x90] sm:$0xff] }
 0x3d6   :  { %8478 = vmatprep.subr.msk.bf16.mxu0 %vm9701_vm12, %v8476_v44  ;;  %v8506_v36 = vpack.c.bf16 %v7207_v35, %v7206_v34 }
 0x3d8   :  { %7942 = vmatmul.mubr.msk.f32.gmra.mrb[8].mxu0 %vm1296_vm15, %v10085_v50 }
 0x3d9   :  { %7944 = vmatprep.mubr.msk.f32.mxu0 %vm1296_vm15, %v10091_v52 }
 0x3dc   :  { %7945 = vmatmul.mubr.msk.f32.gmra.mrb[10].mxu0 %vm1296_vm15, %v10099_v54 }
 0x3dd   :  { %7951 = vmatprep.mubr.msk.f32.mxu0 %vm1296_vm15, %v2749_v62 }
 0x3e0   :  { %7952 = vmatmul.mubr.msk.f32.vlgmr.msra.gmra.mrb[6].mxu0 %vm1296_vm15, %v2751_v2 }
 0x3e1   :  { %8481 = vmatpush3.bf16.msk.msra.mxu0 %vm9701_vm12, %v8476_v44  ;;  %7954 = vmatprep.mubr.msk.f32.mxu0 %vm1296_vm15, %v2753_v4  ;;  %v8512_v44 = vpack.c.bf16 %v7216_v43, %v7215_v42 }
 0x3e2   :  { %8484 = vmatprep.subr.msk.bf16.mxu0 %vm9701_vm12, %v8482_v1 }
 0x3e4   :  { %7955 = vmatmul.mubr.msk.f32.gmra.mrb[8].mxu0 %vm1296_vm15, %v2755_v63 }
 0x3e5   :  { %7957 = vmatprep.mubr.msk.f32.mxu0 %vm1296_vm15, %v2757_v7 }
 0x3e8   :  { %7958 = vmatmul.mubr.msk.f32.gmra.mrb[10].mxu0 %vm1296_vm15, %v2759_v8 }
 0x3e9   :  { %7964 = vmatprep.mubr.msk.f32.mxu0 %vm1296_vm15, %v9970_v57  ;;  %v7188_v57 = vld [vmem:[%s10951_s2 + $0x70] sm:$0xff] }
 0x3ea   :  { %v8494_v23 = vpack.c.bf16 %v7189_v12, %v7188_v57 }
 0x3ec   :  { %7965 = vmatmul.mubr.msk.f32.vlgmr.msra.gmra.mrb[6].mxu0 %vm1296_vm15, %v9967_v55 }
 0x3ed   :  { %8487 = vmatpush3.bf16.msk.msra.mxu0 %vm9701_vm12, %v8482_v1  ;;  %7967 = vmatprep.mubr.msk.f32.mxu0 %vm1296_vm15, %v9983_v11 }
 0x3ee   :  { %8490 = vmatprep.subr.msk.bf16.mxu0 %vm9701_vm12, %v8488_v22 }
 0x3f0   :  { %7968 = vmatmul.mubr.msk.f32.gmra.mrb[8].mxu0 %vm1296_vm15, %v9986_v14 }
 0x3f1   :  { %7970 = vmatprep.mubr.msk.f32.mxu0 %vm1296_vm15, %v10010_v31 }
 0x3f4   :  { %7971 = vmatmul.mubr.msk.f32.gmra.mrb[10].mxu0 %vm1296_vm15, %v10015_v32 }
 0x3f5   :  { %7977 = vmatprep.mubr.msk.f32.mxu0 %vm1296_vm15, %v9992_v61  ;;  %v7197_v61 = vld [vmem:[%s10951_s2 + $0x80] sm:$0xff] }
 0x3f6   :  { %v8500_v28 = vpack.c.bf16 %v7198_v17, %v7197_v61 }
 0x3f8   :  { %7978 = vmatmul.mubr.msk.f32.vlgmr.msra.gmra.mrb[6].mxu0 %vm1296_vm15, %v10002_v26 }
 0x3f9   :  { %8493 = vmatpush3.bf16.msk.msra.mxu0 %vm9701_vm12, %v8488_v22  ;;  %7980 = vmatprep.mubr.msk.f32.mxu0 %vm1296_vm15, %v10005_v27 }
 0x3fa   :  { %8496 = vmatprep.subr.msk.bf16.mxu0 %vm9701_vm12, %v8494_v23 }
 0x3fc   :  { %7981 = vmatmul.mubr.msk.f32.gmra.mrb[8].mxu0 %vm1296_vm15, %v10024_v13 }
 0x3fd   :  { %7983 = vmatprep.mubr.msk.f32.mxu0 %vm1296_vm15, %v10029_v25 }
 0x400   :  { %7984 = vmatmul.mubr.msk.f32.gmra.mrb[10].mxu0 %vm1296_vm15, %v2990_v16 }
 0x401   :  { %7990 = vmatprep.mubr.msk.f32.mxu0 %vm1296_vm15, %v10069_v45 }
 0x404   :  { %7991 = vmatmul.mubr.msk.f32.vlgmr.msra.gmra.mrb[6].mxu0 %vm1296_vm15, %v10075_v47 }
 0x405   :  { %8499 = vmatpush3.bf16.msk.msra.mxu0 %vm9701_vm12, %v8494_v23  ;;  %7993 = vmatprep.mubr.msk.f32.mxu0 %vm1296_vm15, %v10085_v50 }
 0x406   :  { %8502 = vmatprep.subr.msk.bf16.mxu0 %vm9701_vm12, %v8500_v28 }
 0x408   :  { %7994 = vmatmul.mubr.msk.f32.gmra.mrb[8].mxu0 %vm1296_vm15, %v10091_v52 }
 0x409   :  { %7996 = vmatprep.mubr.msk.f32.mxu0 %vm1296_vm15, %v10099_v54 }
 0x40c   :  { %7997 = vmatmul.mubr.msk.f32.gmra.mrb[10].mxu0 %vm1296_vm15, %v3101_v33 }
 0x40d   :  { %8003 = vmatprep.mubr.msk.f32.mxu0 %vm1296_vm15, %v2751_v2 }
 0x410   :  { %8004 = vmatmul.mubr.msk.f32.vlgmr.msra.gmra.mrb[6].mxu0 %vm1296_vm15, %v2753_v4 }
 0x411   :  { %8505 = vmatpush3.bf16.msk.msra.mxu0 %vm9701_vm12, %v8500_v28  ;;  %8006 = vmatprep.mubr.msk.f32.mxu0 %vm1296_vm15, %v2755_v63 }
 0x412   :  { %8508 = vmatprep.subr.msk.bf16.mxu0 %vm9701_vm12, %v8506_v36 }
 0x414   :  { %8007 = vmatmul.mubr.msk.f32.gmra.mrb[8].mxu0 %vm1296_vm15, %v2757_v7 }
 0x415   :  { %8009 = vmatprep.mubr.msk.f32.mxu0 %vm1296_vm15, %v2759_v8 }
 0x418   :  { %8010 = vmatmul.mubr.msk.f32.gmra.mrb[10].mxu0 %vm1296_vm15, %v3212_v41 }
 0x419   :  { %8016 = vmatprep.mubr.msk.f32.mxu0 %vm1296_vm15, %v9967_v55  ;;  %v3431_v55 = vsel %vm222_vm2, %v2989_v56, %v9475_v19  ;;  %v3744_v19 = vld [vmem:[#allocation12] sm:$0xff]  ;;  %vm8520_vm2 = vmpackc.low %vm584_vm9, %vm9207_vm11 }
 0x41c   :  { %8017 = vmatmul.mubr.msk.f32.vlgmr.msra.gmra.mrb[6].mxu0 %vm1296_vm15, %v9983_v11  ;;  %v3745_v11 = vld [vmem:[#allocation12 + $0x8] sm:$0x3] }
 0x41d   :  { %8511 = vmatpush3.bf16.msk.msra.mxu0 %vm9701_vm12, %v8506_v36  ;;  %8019 = vmatprep.mubr.msk.f32.mxu0 %vm1296_vm15, %v9986_v14  ;;  %v9208_v14 = vmov 0.0|0.0  }
 0x41e   :  { %8514 = vmatprep.subr.msk.bf16.mxu0 %vm9701_vm12, %v8512_v44  ;;  %8518 = vmatprep.subr.bf16.mxu1 %v9208_v14 }
 0x420   :  { %8020 = vmatmul.mubr.msk.f32.gmra.mrb[8].mxu0 %vm1296_vm15, %v10010_v31 }
 0x421   :  { %8022 = vmatprep.mubr.msk.f32.mxu0 %vm1296_vm15, %v10015_v32 }
 0x424   :  { %8023 = vmatmul.mubr.msk.f32.gmra.mrb[10].mxu0 %vm1296_vm15, %v2377_v24 }
 0x425   :  { %8029 = vmatprep.mubr.msk.f32.mxu0 %vm1296_vm15, %v10002_v26  ;;  %v8519_v26 = vpack.c.bf16 %v3745_v11, %v3744_v19 }
 0x427   :  { %8521 = vmatpush3.bf16.msk.msra.mxu1 %vm8520_vm2, %v8519_v26  ;;  %vm4644_vm2 = vcmask 261126  }
 0x428   :  { %8030 = vmatmul.mubr.msk.f32.vlgmr.msra.gmra.mrb[6].mxu0 %vm1296_vm15, %v10005_v27  ;;  %8058 = vmatprep.subr.mxu1 %v9206_v18 }
 0x429   :  { %8517 = vmatpush3.bf16.msk.msra.mxu0 %vm9701_vm12, %v8512_v44  ;;  %8032 = vmatprep.mubr.msk.f32.mxu0 %vm1296_vm15, %v10024_v13  ;;  %vm9209_vm12 = vmmov 0  }
 0x42a   :  { %8055 = vmatprep.mubr.msk.f32.mxu1 %vm9209_vm12, %v9206_v18  ;;  %8610 = vmatprep.subr.bf16.mxu0 %v9208_v14 }
 0x42c   :  { %8033 = vmatmul.mubr.msk.f32.gmra.mrb[8].mxu0 %vm1296_vm15, %v10029_v25 }
 0x42d   :  { %8035 = vmatprep.mubr.msk.f32.mxu0 %vm1296_vm15, %v2990_v16 }
 0x430   :  { %8036 = vmatmul.mubr.msk.f32.gmra.mrb[10].mxu0 %vm1296_vm15, %v3431_v55 }
 0x431   :  { %8042 = vmatprep.mubr.msk.f32.mxu0 %vm1296_vm15, %v10075_v47 }
 0x434   :  { %8043 = vmatmul.mubr.msk.f32.vlgmr.msra.gmra.mrb[6].mxu0 %vm1296_vm15, %v10085_v50 }
 0x435   :  { %8045 = vmatprep.mubr.msk.f32.mxu0 %vm1296_vm15, %v10091_v52 }
 0x438   :  { %8046 = vmatmul.mubr.msk.f32.gmra.mrb[8].mxu0 %vm1296_vm15, %v10099_v54 }
 0x439   :  { %8048 = vmatprep.mubr.msk.f32.mxu0 %vm1296_vm15, %v3101_v33 }
 0x43c   :  { %8049 = vmatmul.mubr.msk.f32.gmra.mrb[10].mxu0 %vm1296_vm15, %v3541_v37 }
 0x43d   :  { %8243 = vmatprep.mubr.msk.f32.mxu0 %vm9209_vm12, %v9206_v18 }
 0x507   :  { %v8044_v27 = vpop.f32.mrb[6].mxu0 }
 0x508   :  { %v3613_v31 = vpop.f32.mrb[7].mxu0  ;;  %v3656_v13 = vadd.f32 %v8044_v27, %v7224_v48 }
 0x509   :  { %v3655_v32 = vadd.f32 %v7224_v48, %v3613_v31 }
 0x50a   :  { %v3668_v50 = vmul.f32 0.01, %v3656_v13  ;;  %vm3662_vm9 = vcmp.gt.f32.partialorder %v3656_v13, 0.0 }
 0x50b   :  { %vm3661_vm8 = vcmp.gt.f32.partialorder %v3655_v32, 0.0  ;;  %v3667_v25 = vmul.f32 0.01, %v3655_v32  ;;  %v8047_v45 = vpop.f32.mrb[8].mxu0 }
 0x50c   :  { %v3623_v46 = vpop.f32.mrb[9].mxu0  ;;  %v3674_v60 = vsel %vm3662_vm9, %v3656_v13, %v3668_v50  ;;  %v3658_v7 = vadd.f32 %v8047_v45, %v7224_v48  ;;  %v7225_v50 = vld [vmem:[%s10952_s8] ss:$0 sm:$0xff] }
 0x50d   :  { %v3673_v47 = vsel %vm3661_vm8, %v3655_v32, %v3667_v25  ;;  %v3657_v62 = vadd.f32 %v7224_v48, %v3623_v46  ;;  %v3691_v1 = vrot.slane %v3674_v60, 2  ;;  %v3694_v4 = vrot.slane %v3674_v60, 4 }
 0x50e   :  { %v3680_v49 = vrot.slane %v3673_v47, 2  ;;  %v3683_v53 = vrot.slane %v3673_v47, 4  ;;  %v3686_v59 = vrot.slane %v3673_v47, 6  ;;  %v3697_v63 = vrot.slane %v3674_v60, 6 }
 0x50f   :  { %v8050_v51 = vpop.f32.mrb[10].mxu0  ;;  %v3669_v3 = vmul.f32 0.01, %v3657_v62  ;;  %vm3663_vm11 = vcmp.gt.f32.partialorder %v3657_v62, 0.0  ;;  %v3670_v57 = vmul.f32 0.01, %v3658_v7 }
 0x510   :  { %v3682_v52 = vmax.f32 %v3673_v47, %v3680_v49  ;;  %v3633_v54 = vpop.f32.mrb[11].mxu0  ;;  %vm3664_vm15 = vcmp.gt.f32.partialorder %v3658_v7, 0.0  ;;  %v3660_v41 = vadd.f32 %v8050_v51, %v7224_v48  ;;  %vm6727_vm8 = vcmask 259072  }
 0x511   :  { %v3675_v8 = vsel %vm3663_vm11, %v3657_v62, %v3669_v3  ;;  %v3676_v16 = vsel %vm3664_vm15, %v3658_v7, %v3670_v57  ;;  %v3659_v61 = vadd.f32 %v7224_v48, %v3633_v54  ;;  %v3832_v62 = vld [vmem:[#allocation4] sm:$0x3]  ;;  %v4009_v7 = vld [vmem:[%s10906_s14 + $0x18] sm:$0xff]  ;;  %v4197_v57 = vld [vmem:[%s10909_s17] sm:$0xff] }
 0x512   :  { %v3685_v58 = vmax.f32 %v3682_v52, %v3683_v53  ;;  %v3702_v22 = vrot.slane %v3675_v8, 2  ;;  %v3705_v23 = vrot.slane %v3675_v8, 4  ;;  %v3708_v56 = vrot.slane %v3675_v8, 6  ;;  %v3924_v3 = vld [vmem:[#allocation15] sm:$0xff] }
 0x513   :  { %v3713_v28 = vrot.slane %v3676_v16, 2  ;;  %v3671_v33 = vmul.f32 0.01, %v3659_v61  ;;  %v3716_v34 = vrot.slane %v3676_v16, 4  ;;  %vm3665_vm1 = vcmp.gt.f32.partialorder %v3659_v61, 0.0 }
 0x514   :  { %v3688_v0 = vmax.f32 %v3685_v58, %v3686_v59  ;;  %v3719_v36 = vrot.slane %v3676_v16, 6  ;;  %v3672_v37 = vmul.f32 0.01, %v3660_v41  ;;  %vm3666_vm4 = vcmp.gt.f32.partialorder %v3660_v41, 0.0  ;;  %v3842_v59 = vld [vmem:[#allocation13] sm:$0xff] }
 0x515   :  { %v3677_v42 = vsel %vm3665_vm1, %v3659_v61, %v3671_v33 }
 0x516   :  { %v3689_v2 = vmax.f32 %v3688_v0, %v3674_v60  ;;  %v3724_v55 = vrot.slane %v3677_v42, 2  ;;  %v3727_v11 = vrot.slane %v3677_v42, 4  ;;  %v3730_v27 = vrot.slane %v3677_v42, 6 }
 0x517   :  { %v3678_v31 = vsel %vm3666_vm4, %v3660_v41, %v3672_v37 }
 0x518   :  { %v3693_v5 = vmax.f32 %v3689_v2, %v3691_v1  ;;  %v3735_v13 = vrot.slane %v3678_v31, 2  ;;  %v3738_v45 = vrot.slane %v3678_v31, 4  ;;  %v3741_v47 = vrot.slane %v3678_v31, 6 }
 0x51a   :  { %v3696_v6 = vmax.f32 %v3693_v5, %v3694_v4  ;;  %v4006_v4 = vld [vmem:[%s10906_s14] sm:$0xff]  ;;  %v4007_v5 = vld [vmem:[%s10906_s14 + $0x8] sm:$0xff] }
 0x51c   :  { %v3699_v9 = vmax.f32 %v3696_v6, %v3697_v63  ;;  %v8523_v63 = vpack.c.bf16 %v4007_v5, %v4006_v4  ;;  %v4008_v6 = vld [vmem:[%s10906_s14 + $0x10] sm:$0xff] }
 0x51e   :  { %v3700_v10 = vmax.f32 %v3699_v9, %v3675_v8  ;;  %v4093_v8 = vld [vmem:[%s10908_s16] sm:$0xff]  ;;  %v8526_v9 = vpack.c.bf16 %v4009_v7, %v4008_v6 }
 0x520   :  { %v3704_v12 = vmax.f32 %v3700_v10, %v3702_v22  ;;  %v4094_v10 = vld [vmem:[%s10908_s16 + $0x8] sm:$0xff] }
 0x521   :  { %v8528_v22 = vpack.c.bf16 %v4094_v10, %v4093_v8 }
 0x522   :  { %v3707_v24 = vmax.f32 %v3704_v12, %v3705_v23  ;;  %v4198_v12 = vld [vmem:[%s10909_s17 + $0x8] sm:$0xff] }
 0x523   :  { %v10313_v23 = vpack.c.bf16 %v4198_v12, %v4197_v57 }
 0x524   :  { %v3710_v17 = vmax.f32 %v3707_v24, %v3708_v56  ;;  %v4199_v24 = vld [vmem:[%s10909_s17 + $0x10] sm:$0xff]  ;;  %v4200_v56 = vld [vmem:[%s10909_s17 + $0x18] sm:$0xff] }
 0x525   :  { %8612 = vmatpush3.bf16.msra.mxu0 %v10313_v23 }
 0x526   :  { %v3711_v15 = vmax.f32 %v3710_v17, %v3676_v16  ;;  %8613 = vmatprep.subr.bf16.mxu0 %v9208_v14  ;;  %v10323_v16 = vpack.c.bf16 %v4200_v56, %v4199_v24 }
 0x528   :  { %v3715_v35 = vmax.f32 %v3711_v15, %v3713_v28  ;;  %v7230_v28 = vld [vmem:[%s10905_s13] ss:$0 sm:$0xff] }
 0x529   :  { %8615 = vmatpush3.bf16.msra.mxu0 %v10323_v16 }
 0x52a   :  { %v3718_v40 = vmax.f32 %v3715_v35, %v3716_v34  ;;  %8622 = vmatprep.subr.bf16.mxu0 %v9208_v14 }
 0x52c   :  { %v3721_v43 = vmax.f32 %v3718_v40, %v3719_v36  ;;  %v7234_v36 = vld [vmem:[%s10910_s18] ss:$0 sm:$0xff] }
 0x52e   :  { %v3722_v44 = vmax.f32 %v3721_v43, %v3677_v42 }
 0x530   :  { %v3726_v19 = vmax.f32 %v3722_v44, %v3724_v55 }
 0x532   :  { %v3729_v26 = vmax.f32 %v3726_v19, %v3727_v11 }
 0x534   :  { %v3732_v32 = vmax.f32 %v3729_v26, %v3730_v27 }
 0x536   :  { %v3733_v25 = vmax.f32 %v3732_v32, %v3678_v31  ;;  %v10379_v31 = vld [vmem:[%s10911_s19] ss:$0 sm:$0xff] }
 0x538   :  { %v3737_v46 = vmax.f32 %v3733_v25, %v3735_v13 }
 0x53a   :  { %v3740_v49 = vmax.f32 %v3737_v46, %v3738_v45 }
 0x53c   :  { %v3743_v48 = vmax.f32 %v3740_v49, %v3741_v47 }
 0x53e   :  { %8056 = vmatmul.mubr.msk.f32.vlgmr.msra.gmra.mrb[10].mxu1 %vm3753_vm5, %v3743_v48 }
 0x53f   :  { %8060 = vmatprep.mubr.msk.f32.mxu1 %vm9209_vm12, %v9206_v18  ;;  %8059 = vmatpush3.msra.mxu1 %v3842_v59 }
 0x540   :  { %8063 = vmatprep.subr.mxu1 %v9206_v18 }
 0x611   :  { %v3826_v51 = vpop.f32.mrb[10].mxu1 }
 0x612   :  { %v3827_v52 = vadd.f32 %v7225_v50, %v3826_v51  ;;  %v8057_v53 = vpop.f32.mrb[11].mxu1 }
 0x614   :  { %v3833_v54 = vmul.f32 0.5, %v3827_v52  ;;  %3831 = vst.msk [vmem:[#allocation16] sm:$0x3] %vm3830_vm6, %v3827_v52 }
 0x616   :  { %v3834_v58 = vmul.f32 1.442695, %v3833_v54 }
 0x618   :  { %8857 = vpow2.f32 %v3834_v58 }
 0x622   :  { %v8858_v60 = vpop.eup %8857 }
 0x623   :  { %3837 = vrot.lane.b32.xlu0 %v8858_v60, %s9210_s27 }
 0x695   :  { %v3838_v0 = vpop.permute.xlu0 %3837 }
 0x696   :  { %v3840_v1 = vmul.f32 %v3838_v0, %v3832_v62 }
 0x698   :  { %v3841_v2 = vadd.f32 %v3840_v1, %v3827_v52 }
 0x69a   :  { %8061 = vmatmul.mubr.msk.f32.vlgmr.msra.gmra.mrb[12].mxu1 %vm3850_vm7, %v3841_v2 }
 0x69b   :  { %8064 = vmatpush3.msra.mxu1 %v3924_v3  ;;  %8065 = vmatprep.mubr.msk.f32.mxu1 %vm9209_vm12, %v9206_v18 }
 0x69c   :  { %8522 = vmatprep.subr.bf16.mxu1 %v9208_v14 }
 0x69e   :  { %8066 = vmatmul.mubr.msk.f32.vlgmr.msra.gmra.mrb[14].mxu1 %vm3850_vm7, %v3827_v52 }
 0x69f   :  { %8076 = vmatprep.mubr.msk.f32.mxu1 %vm9209_vm12, %v9206_v18  ;;  %8524 = vmatpush3.bf16.msra.mxu1 %v8523_v63 }
 0x6a0   :  { %8525 = vmatprep.subr.bf16.mxu1 %v9208_v14 }
 0x6a3   :  { %8527 = vmatpush3.bf16.msra.mxu1 %v8526_v9 }
 0x6a4   :  { %8529 = vmatprep.subr.bf16.mxu1 %v8528_v22 }
 0x76d   :  { %v3920_v61 = vpop.f32.mrb[12].mxu1 }
 0x76e   :  { %v8062_v17 = vpop.f32.mrb[13].mxu1 }
 0x771   :  { %v4001_v15 = vpop.f32.mrb[14].mxu1 }
 0x772   :  { %v4002_v33 = vadd.f32 %v7230_v28, %v4001_v15  ;;  %v8067_v34 = vpop.f32.mrb[15].mxu1 }
 0x774   :  { %v4005_v35 = vmax.f32 %v4002_v33, 0.0 }
 0x776   :  { %8077 = vmatmul.mubr.msk.f32.vlgmr.msra.gmra.mrb[16].mxu1 %vm4017_vm10, %v4005_v35 }
 0x777   :  { %8531 = vmatpush3.bf16.msra.mxu1 %v8528_v22  ;;  %8083 = vmatprep.mubr.msk.f32.mxu1 %vm236_vm3, %v9481_v21  ;;  %v7228_v21 = vld [vmem:[%s10903_s11] ss:$0 sm:$0xff] }
 0x778   :  { %8532 = vmatprep.subr.bf16.mxu1 %v9208_v14 }
 0x77a   :  { %8084 = vmatmul.mubr.msk.f32.vlgmr.msra.gmra.mrb[18].mxu1 %vm236_vm3, %v9497_v30 }
 0x77b   :  { %8534 = vmatpush3.bf16.msra.mxu1 %v10313_v23  ;;  %8086 = vmatprep.mubr.msk.f32.mxu1 %vm236_vm3, %v9478_v20  ;;  %v3921_v20 = vadd.f32 %v7228_v21, %v3920_v61 }
 0x77c   :  { %8535 = vmatprep.subr.bf16.mxu1 %v9208_v14 }
 0x77e   :  { %8087 = vmatmul.mubr.msk.f32.gmra.mrb[20].mxu1 %vm236_vm3, %v9494_v29  ;;  %v7232_v29 = vld [vmem:[#allocation3] ss:$0 sm:$0xff] }
 0x77f   :  { %8089 = vmatprep.mubr.msk.f32.mxu1 %vm236_vm3, %v9512_v39  ;;  %8537 = vmatpush3.bf16.msra.mxu1 %v10323_v16 }
 0x780   :  { %8538 = vmatprep.subr.bf16.mxu1 %v9208_v14 }
 0x782   :  { %8090 = vmatmul.mubr.msk.f32.gmra.mrb[22].mxu1 %vm236_vm3, %v9509_v38 }
 0x783   :  { %8100 = vmatprep.mubr.msk.f32.mxu1 %vm9209_vm12, %v9206_v18 }
 0x786   :  { %8101 = vmatmul.mubr.msk.f32.vlgmr.msra.gmra.mrb[24].mxu1 %vm4017_vm10, %v3921_v20 }
 0x787   :  { %8540 = vmatpush3.bf16.msra.mxu1 %v10313_v23  ;;  %8111 = vmatprep.mubr.msk.f32.mxu1 %vm9209_vm12, %v9206_v18 }
 0x788   :  { %8541 = vmatprep.subr.bf16.mxu1 %v9208_v14 }
 0x78b   :  { %8543 = vmatpush3.bf16.msra.mxu1 %v10323_v16 }
 0x78c   :  { %8544 = vmatprep.subr.bf16.mxu1 %v9208_v14 }
 0x849   :  { %v4087_v30 = vpop.f32.mrb[16].mxu1 }
 0x84a   :  { %v4088_v38 = vadd.f32 %v7232_v29, %v4087_v30  ;;  %v8078_v39 = vpop.f32.mrb[17].mxu1 }
 0x84c   :  { %4092 = vst.msk [vmem:[%s10918_s26] sm:$0x3] %vm4091_vm13, %v4088_v38  ;;  %s9211_s26 = smov 64  }
 0x84d   :  { %v8085_v40 = vpop.f32.mrb[18].mxu1 }
 0x84e   :  { %v10366_v41 = vadd.f32 %v8085_v40, %v7234_v36  ;;  %v4168_v42 = vpop.f32.mrb[19].mxu1 }
 0x84f   :  { %v10383_v45 = vadd.f32 %v7234_v36, %v4168_v42 }
 0x851   :  { %v8088_v43 = vpop.f32.mrb[20].mxu1 }
 0x852   :  { %v10368_v44 = vadd.f32 %v8088_v43, %v7234_v36  ;;  %v4178_v55 = vpop.f32.mrb[21].mxu1 }
 0x853   :  { %v10370_v37 = vadd.f32 %v7234_v36, %v4178_v55 }
 0x855   :  { %v8091_v19 = vpop.f32.mrb[22].mxu1 }
 0x856   :  { %v10372_v11 = vadd.f32 %v8091_v19, %v7234_v36  ;;  %v4188_v26 = vpop.f32.mrb[23].mxu1 }
 0x857   :  { %v10374_v27 = vadd.f32 %v7234_v36, %v4188_v26 }
 0x859   :  { %v4277_v32 = vpop.f32.mrb[24].mxu1 }
 0x85a   :  { %v4278_v13 = vadd.f32 %v10379_v31, %v4277_v32  ;;  %v8102_v25 = vpop.f32.mrb[25].mxu1 }
 0x85c   :  { %4289 = vrot.lane.b32.xlu1 %v4278_v13, %s9211_s26  ;;  %v4281_v46 = vadd.f32 %v4278_v13, %v10383_v45 }
 0x85e   :  { %v7243_v47 = vmul.f32 -1.442695, %v4281_v46 }
 0x860   :  { %8859 = vpow2.f32 %v7243_v47 }
 0x86a   :  { %v8860_v49 = vpop.eup %8859 }
 0x86b   :  { %v4285_v48 = vadd.f32 1.0, %v8860_v49 }
 0x86d   :  { %8861 = vrcp.f32 %v4285_v48 }
 0x877   :  { %v8862_v50 = vpop.eup %8861 }
 0x878   :  { %v4299_v60 = vsub.f32 1.0, %v8862_v50 }
 0x8ce   :  { %v4290_v51 = vpop.permute.xlu1 %4289 }
 0x8cf   :  { %v4292_v52 = vmul.f32 %v8862_v50, %v4290_v51 }
 0x8d1   :  { %4294 = vrot.lane.b32.xlu0 %v4292_v52, %s9211_s26 }
 0x8d5   :  { %4305 = vrot.lane.b32.xlu0 %v3921_v20, %s9212_s30 }
 0x943   :  { %v4295_v53 = vpop.permute.xlu0 %4294 }
 0x944   :  { %v4297_v54 = vadd.f32 %v4295_v53, %v10383_v45 }
 0x946   :  { %8863 = vtanh.f32 %v4297_v54 }
 0x947   :  { %v4306_v59 = vpop.permute.xlu0 %4305 }
 0x948   :  { %v4308_v0 = vmul.f32 %v8862_v50, %v4306_v59 }
 0x950   :  { %v8864_v58 = vpop.eup %8863 }
 0x951   :  { %4301 = vrot.lane.b32.xlu1 %v8864_v58, %s9213_s15 }
 0x9c3   :  { %v4302_v62 = vpop.permute.xlu1 %4301 }
 0x9c4   :  { %v4304_v1 = vmul.f32 %v4302_v62, %v4299_v60 }
 0x9c6   :  { %v4309_v2 = vadd.f32 %v4308_v0, %v4304_v1 }
 0x9c8   :  { %4311 = vrot.lane.b32.xlu1 %v4309_v2, %s9213_s15  ;;  %v4414_v17 = vrot.slane %v4309_v2, 6 }
 0xa3a   :  { %v4312_v3 = vpop.permute.xlu1 %4311 }
 0xa3b   :  { %4315 = vst.msk [vmem:[#allocation2] sm:$0x3] %vm4314_vm14, %v4312_v3  ;;  %8112 = vmatmul.mubr.msk.f32.vlgmr.msra.gmra.mrb[26].mxu1 %vm4017_vm10, %v4312_v3 }
 0xa3c   :  { %8546 = vmatpush3.bf16.msra.mxu1 %v10313_v23  ;;  %8122 = vmatprep.mubr.msk.f32.mxu1 %vm9209_vm12, %v9206_v18 }
 0xa3d   :  { %8547 = vmatprep.subr.bf16.mxu1 %v9208_v14 }
 0xa40   :  { %8549 = vmatpush3.bf16.msra.mxu1 %v10323_v16 }
 0xa41   :  { %8550 = vmatprep.subr.bf16.mxu1 %v9208_v14 }
 0xb0e   :  { %v4384_v4 = vpop.f32.mrb[26].mxu1 }
 0xb0f   :  { %v4385_v5 = vadd.f32 %v10379_v31, %v4384_v4  ;;  %v8113_v63 = vpop.f32.mrb[27].mxu1 }
 0xb11   :  { %v4389_v6 = vrot.slane %v4385_v5, 6 }
 0xb13   :  { %4398 = vrot.lane.b32.xlu0 %v4389_v6, %s9211_s26  ;;  %v4391_v7 = vadd.f32 %v4389_v6, %v10383_v45 }
 0xb15   :  { %v7245_v8 = vmul.f32 -1.442695, %v4391_v7 }
 0xb17   :  { %8865 = vpow2.f32 %v7245_v8 }
 0xb21   :  { %v8866_v9 = vpop.eup %8865 }
 0xb22   :  { %v4395_v10 = vadd.f32 1.0, %v8866_v9 }
 0xb24   :  { %8867 = vrcp.f32 %v4395_v10 }
 0xb2e   :  { %v8868_v22 = vpop.eup %8867 }
 0xb2f   :  { %v4408_v28 = vsub.f32 1.0, %v8868_v22  ;;  %v4416_v34 = vmul.f32 %v8868_v22, %v4414_v17 }
 0xb85   :  { %v4399_v57 = vpop.permute.xlu0 %4398 }
 0xb86   :  { %v4401_v12 = vmul.f32 %v8868_v22, %v4399_v57 }
 0xb88   :  { %4403 = vrot.lane.b32.xlu1 %v4401_v12, %s9211_s26 }
 0xbfa   :  { %v4404_v24 = vpop.permute.xlu1 %4403 }
 0xbfb   :  { %v4406_v56 = vadd.f32 %v4404_v24, %v10383_v45 }
 0xbfd   :  { %8869 = vtanh.f32 %v4406_v56 }
 0xc07   :  { %v8870_v61 = vpop.eup %8869 }
 0xc08   :  { %4410 = vrot.lane.b32.xlu0 %v8870_v61, %s9213_s15 }
 0xc7a   :  { %v4411_v15 = vpop.permute.xlu0 %4410 }
 0xc7b   :  { %v4413_v33 = vmul.f32 %v4411_v15, %v4408_v28 }
 0xc7d   :  { %v10404_v35 = vadd.f32 %v4416_v34, %v4413_v33 }
 0xc7f   :  { %v4424_v21 = vrot.slane %v10404_v35, 2  ;;  %v4525_v47 = vrot.slane %v10404_v35, 6 }
 0xc81   :  { %4425 = vrot.lane.b32.xlu1 %v4424_v21, %s9213_s15 }
 0xcf3   :  { %v4426_v20 = vpop.permute.xlu1 %4425 }
 0xcf4   :  { %8123 = vmatmul.mubr.msk.f32.vlgmr.msra.gmra.mrb[28].mxu1 %vm4017_vm10, %v4426_v20 }
 0xcf5   :  { %8552 = vmatpush3.bf16.msra.mxu1 %v10313_v23  ;;  %8133 = vmatprep.mubr.msk.f32.mxu1 %vm9209_vm12, %v9206_v18 }
 0xcf6   :  { %8553 = vmatprep.subr.bf16.mxu1 %v9208_v14 }
 0xcf9   :  { %8555 = vmatpush3.bf16.msra.mxu1 %v10323_v16 }
 0xcfa   :  { %8556 = vmatprep.subr.bf16.mxu1 %v9208_v14 }
 0xdc7   :  { %v4495_v29 = vpop.f32.mrb[28].mxu1 }
 0xdc8   :  { %v4496_v30 = vadd.f32 %v10379_v31, %v4495_v29  ;;  %v8124_v38 = vpop.f32.mrb[29].mxu1 }
 0xdca   :  { %v4500_v39 = vrot.slane %v4496_v30, 4 }
 0xdcc   :  { %4509 = vrot.lane.b32.xlu0 %v4500_v39, %s9211_s26  ;;  %v4502_v36 = vadd.f32 %v4500_v39, %v10383_v45 }
 0xdce   :  { %v7247_v40 = vmul.f32 -1.442695, %v4502_v36 }
 0xdd0   :  { %8871 = vpow2.f32 %v7247_v40 }
 0xdda   :  { %v8872_v42 = vpop.eup %8871 }
 0xddb   :  { %v4506_v43 = vadd.f32 1.0, %v8872_v42 }
 0xddd   :  { %8873 = vrcp.f32 %v4506_v43 }
 0xde7   :  { %v8874_v55 = vpop.eup %8873 }
 0xde8   :  { %v4519_v46 = vsub.f32 1.0, %v8874_v55  ;;  %v4527_v48 = vmul.f32 %v8874_v55, %v4525_v47 }
 0xe3e   :  { %v4510_v19 = vpop.permute.xlu0 %4509 }
 0xe3f   :  { %v4512_v26 = vmul.f32 %v8874_v55, %v4510_v19 }
 0xe41   :  { %4514 = vrot.lane.b32.xlu1 %v4512_v26, %s9211_s26 }
 0xeb3   :  { %v4515_v32 = vpop.permute.xlu1 %4514 }
 0xeb4   :  { %v4517_v13 = vadd.f32 %v4515_v32, %v10383_v45 }
 0xeb6   :  { %8875 = vtanh.f32 %v4517_v13 }
 0xec0   :  { %v8876_v25 = vpop.eup %8875 }
 0xec1   :  { %4521 = vrot.lane.b32.xlu0 %v8876_v25, %s9213_s15 }
 0xf33   :  { %v4522_v49 = vpop.permute.xlu0 %4521 }
 0xf34   :  { %v4524_v50 = vmul.f32 %v4522_v49, %v4519_v46 }
 0xf36   :  { %v10422_v51 = vadd.f32 %v4527_v48, %v4524_v50 }
 0xf38   :  { %v4535_v52 = vrot.slane %v10422_v51, 4  ;;  %v4636_v9 = vrot.slane %v10422_v51, 6 }
 0xf3a   :  { %4536 = vrot.lane.b32.xlu1 %v4535_v52, %s9213_s15 }
 0xfac   :  { %v4537_v53 = vpop.permute.xlu1 %4536 }
 0xfad   :  { %8134 = vmatmul.mubr.msk.f32.vlgmr.msra.gmra.mrb[30].mxu1 %vm4017_vm10, %v4537_v53 }
 0xfae   :  { %8558 = vmatpush3.bf16.msra.mxu1 %v10313_v23  ;;  %8144 = vmatprep.mubr.msk.f32.mxu1 %vm9209_vm12, %v9206_v18 }
 0xfaf   :  { %8559 = vmatprep.subr.bf16.mxu1 %v9208_v14 }
 0xfb2   :  { %8561 = vmatpush3.bf16.msra.mxu1 %v10323_v16 }
 0xfb3   :  { %8562 = vmatprep.subr.bf16.mxu1 %v9208_v14 }
0x1080   :  { %v4606_v54 = vpop.f32.mrb[30].mxu1 }
0x1081   :  { %v4607_v58 = vadd.f32 %v10379_v31, %v4606_v54  ;;  %v8135_v59 = vpop.f32.mrb[31].mxu1 }
0x1083   :  { %v4611_v60 = vrot.slane %v4607_v58, 2 }
0x1085   :  { %4620 = vrot.lane.b32.xlu0 %v4611_v60, %s9211_s26  ;;  %v4613_v62 = vadd.f32 %v4611_v60, %v10383_v45 }
0x1087   :  { %v7249_v0 = vmul.f32 -1.442695, %v4613_v62 }
0x1089   :  { %8877 = vpow2.f32 %v7249_v0 }
0x1093   :  { %v8878_v1 = vpop.eup %8877 }
0x1094   :  { %v4617_v2 = vadd.f32 1.0, %v8878_v1 }
0x1096   :  { %8879 = vrcp.f32 %v4617_v2 }
0x10a0   :  { %v8880_v3 = vpop.eup %8879 }
0x10a1   :  { %v4630_v8 = vsub.f32 1.0, %v8880_v3  ;;  %v4638_v22 = vmul.f32 %v8880_v3, %v4636_v9 }
0x10f7   :  { %v4621_v4 = vpop.permute.xlu0 %4620 }
0x10f8   :  { %v4623_v5 = vmul.f32 %v8880_v3, %v4621_v4 }
0x10fa   :  { %4625 = vrot.lane.b32.xlu1 %v4623_v5, %s9211_s26 }
0x116c   :  { %v4626_v63 = vpop.permute.xlu1 %4625 }
0x116d   :  { %v4628_v6 = vadd.f32 %v4626_v63, %v10383_v45 }
0x116f   :  { %8881 = vtanh.f32 %v4628_v6 }
0x1179   :  { %v8882_v7 = vpop.eup %8881 }
0x117a   :  { %4632 = vrot.lane.b32.xlu0 %v8882_v7, %s9213_s15 }
0x11ec   :  { %v4633_v10 = vpop.permute.xlu0 %4632 }
0x11ed   :  { %v4635_v57 = vmul.f32 %v4633_v10, %v4630_v8 }
0x11ef   :  { %v10440_v12 = vadd.f32 %v4638_v22, %v4635_v57 }
0x11f1   :  { %v4646_v24 = vrot.slane %v10440_v12, 6 }
0x11f3   :  { %4647 = vrot.lane.b32.xlu1 %v4646_v24, %s9213_s15 }
0x1265   :  { %v4648_v56 = vpop.permute.xlu1 %4647 }
0x1266   :  { %8145 = vmatmul.mubr.msk.f32.vlgmr.msra.gmra.mrb[32].mxu1 %vm4017_vm10, %v4648_v56 }
0x1267   :  { %8564 = vmatpush3.bf16.msra.mxu1 %v10313_v23  ;;  %8155 = vmatprep.mubr.msk.f32.mxu1 %vm9209_vm12, %v9206_v18 }
0x1268   :  { %8565 = vmatprep.subr.bf16.mxu1 %v9208_v14 }
0x126b   :  { %8567 = vmatpush3.bf16.msra.mxu1 %v10323_v16 }
0x126c   :  { %8568 = vmatprep.subr.bf16.mxu1 %v9208_v14 }
0x1339   :  { %v4717_v45 = vpop.f32.mrb[32].mxu1 }
0x133a   :  { %v4718_v61 = vadd.f32 %v10379_v31, %v4717_v45  ;;  %v8146_v17 = vpop.f32.mrb[33].mxu1 }
0x133c   :  { %4729 = vrot.lane.b32.xlu0 %v4718_v61, %s9211_s26  ;;  %v4721_v28 = vadd.f32 %v4718_v61, %v10366_v41 }
0x133e   :  { %v7251_v15 = vmul.f32 -1.442695, %v4721_v28 }
0x1340   :  { %8883 = vpow2.f32 %v7251_v15 }
0x134a   :  { %v8884_v33 = vpop.eup %8883 }
0x134b   :  { %v4725_v34 = vadd.f32 1.0, %v8884_v33 }
0x134d   :  { %8885 = vrcp.f32 %v4725_v34 }
0x1357   :  { %v8886_v21 = vpop.eup %8885 }
0x1358   :  { %v4739_v36 = vsub.f32 1.0, %v8886_v21  ;;  %v4746_v42 = vmul.f32 %v8886_v21, %v4646_v24 }
0x13ae   :  { %v4730_v20 = vpop.permute.xlu0 %4729 }
0x13af   :  { %v4732_v29 = vmul.f32 %v8886_v21, %v4730_v20 }
0x13b1   :  { %4734 = vrot.lane.b32.xlu1 %v4732_v29, %s9211_s26 }
0x1423   :  { %v4735_v30 = vpop.permute.xlu1 %4734 }
0x1424   :  { %v4737_v38 = vadd.f32 %v4735_v30, %v10366_v41 }
0x1426   :  { %8887 = vtanh.f32 %v4737_v38 }
0x1430   :  { %v8888_v39 = vpop.eup %8887 }
0x1431   :  { %4741 = vrot.lane.b32.xlu0 %v8888_v39, %s9213_s15 }
0x14a3   :  { %v4742_v40 = vpop.permute.xlu0 %4741 }
0x14a4   :  { %v4744_v43 = vmul.f32 %v4742_v40, %v4739_v36 }
0x14a6   :  { %v4747_v55 = vadd.f32 %v4746_v42, %v4744_v43 }
0x14a8   :  { %4749 = vrot.lane.b32.xlu1 %v4747_v55, %s9213_s15  ;;  %v4851_v60 = vrot.slane %v4747_v55, 6 }
0x151a   :  { %v4750_v19 = vpop.permute.xlu1 %4749 }
0x151b   :  { %4752 = vst.msk [vmem:[#allocation2 + $0x8] sm:$0x3] %vm4314_vm14, %v4750_v19  ;;  %8156 = vmatmul.mubr.msk.f32.vlgmr.msra.gmra.mrb[34].mxu1 %vm4017_vm10, %v4750_v19 }
0x151c   :  { %8570 = vmatpush3.bf16.msra.mxu1 %v10313_v23  ;;  %8166 = vmatprep.mubr.msk.f32.mxu1 %vm9209_vm12, %v9206_v18 }
0x151d   :  { %8571 = vmatprep.subr.bf16.mxu1 %v9208_v14 }
0x1520   :  { %8573 = vmatpush3.bf16.msra.mxu1 %v10323_v16 }
0x1521   :  { %8574 = vmatprep.subr.bf16.mxu1 %v9208_v14 }
0x15ee   :  { %v4821_v26 = vpop.f32.mrb[34].mxu1 }
0x15ef   :  { %v4822_v32 = vadd.f32 %v10379_v31, %v4821_v26  ;;  %v8157_v13 = vpop.f32.mrb[35].mxu1 }
0x15f1   :  { %v4826_v25 = vrot.slane %v4822_v32, 6 }
0x15f3   :  { %4835 = vrot.lane.b32.xlu0 %v4826_v25, %s9211_s26  ;;  %v4828_v46 = vadd.f32 %v4826_v25, %v10366_v41 }
0x15f5   :  { %v7253_v47 = vmul.f32 -1.442695, %v4828_v46 }
0x15f7   :  { %8889 = vpow2.f32 %v7253_v47 }
0x1601   :  { %v8890_v49 = vpop.eup %8889 }
0x1602   :  { %v4832_v48 = vadd.f32 1.0, %v8890_v49 }
0x1604   :  { %8891 = vrcp.f32 %v4832_v48 }
0x160e   :  { %v8892_v50 = vpop.eup %8891 }
0x160f   :  { %v4845_v62 = vsub.f32 1.0, %v8892_v50  ;;  %v4853_v1 = vmul.f32 %v8892_v50, %v4851_v60 }
0x1665   :  { %v4836_v52 = vpop.permute.xlu0 %4835 }
0x1666   :  { %v4838_v53 = vmul.f32 %v8892_v50, %v4836_v52 }
0x1668   :  { %4840 = vrot.lane.b32.xlu1 %v4838_v53, %s9211_s26 }
0x16da   :  { %v4841_v54 = vpop.permute.xlu1 %4840 }
0x16db   :  { %v4843_v58 = vadd.f32 %v4841_v54, %v10366_v41 }
0x16dd   :  { %8893 = vtanh.f32 %v4843_v58 }
0x16e7   :  { %v8894_v59 = vpop.eup %8893 }
0x16e8   :  { %4847 = vrot.lane.b32.xlu0 %v8894_v59, %s9213_s15 }
0x175a   :  { %v4848_v0 = vpop.permute.xlu0 %4847 }
0x175b   :  { %v4850_v2 = vmul.f32 %v4848_v0, %v4845_v62 }
0x175d   :  { %v10472_v3 = vadd.f32 %v4853_v1, %v4850_v2 }
0x175f   :  { %v4860_v4 = vrot.slane %v10472_v3, 2  ;;  %v4961_v33 = vrot.slane %v10472_v3, 6 }
0x1761   :  { %4861 = vrot.lane.b32.xlu1 %v4860_v4, %s9213_s15 }
0x17d3   :  { %v4862_v5 = vpop.permute.xlu1 %4861 }
0x17d4   :  { %8167 = vmatmul.mubr.msk.f32.vlgmr.msra.gmra.mrb[36].mxu1 %vm4017_vm10, %v4862_v5 }
0x17d5   :  { %8576 = vmatpush3.bf16.msra.mxu1 %v10313_v23  ;;  %8177 = vmatprep.mubr.msk.f32.mxu1 %vm9209_vm12, %v9206_v18 }
0x17d6   :  { %8577 = vmatprep.subr.bf16.mxu1 %v9208_v14 }
0x17d9   :  { %8579 = vmatpush3.bf16.msra.mxu1 %v10323_v16 }
0x17da   :  { %8580 = vmatprep.subr.bf16.mxu1 %v9208_v14 }
0x18a7   :  { %v4931_v63 = vpop.f32.mrb[36].mxu1 }
0x18a8   :  { %v4932_v6 = vadd.f32 %v10379_v31, %v4931_v63  ;;  %v8168_v7 = vpop.f32.mrb[37].mxu1 }
0x18aa   :  { %v4936_v8 = vrot.slane %v4932_v6, 4 }
0x18ac   :  { %4945 = vrot.lane.b32.xlu0 %v4936_v8, %s9211_s26  ;;  %v4938_v9 = vadd.f32 %v4936_v8, %v10366_v41 }
0x18ae   :  { %v7255_v10 = vmul.f32 -1.442695, %v4938_v9 }
0x18b0   :  { %8895 = vpow2.f32 %v7255_v10 }
0x18ba   :  { %v8896_v22 = vpop.eup %8895 }
0x18bb   :  { %v4942_v57 = vadd.f32 1.0, %v8896_v22 }
0x18bd   :  { %8897 = vrcp.f32 %v4942_v57 }
0x18c7   :  { %v8898_v24 = vpop.eup %8897 }
0x18c8   :  { %v4955_v15 = vsub.f32 1.0, %v8898_v24  ;;  %v4963_v21 = vmul.f32 %v8898_v24, %v4961_v33 }
0x191e   :  { %v4946_v56 = vpop.permute.xlu0 %4945 }
0x191f   :  { %v4948_v45 = vmul.f32 %v8898_v24, %v4946_v56 }
0x1921   :  { %4950 = vrot.lane.b32.xlu1 %v4948_v45, %s9211_s26 }
0x1993   :  { %v4951_v61 = vpop.permute.xlu1 %4950 }
0x1994   :  { %v4953_v17 = vadd.f32 %v4951_v61, %v10366_v41 }
0x1996   :  { %8899 = vtanh.f32 %v4953_v17 }
0x19a0   :  { %v8900_v28 = vpop.eup %8899 }
0x19a1   :  { %4957 = vrot.lane.b32.xlu0 %v8900_v28, %s9213_s15 }
0x1a13   :  { %v4958_v34 = vpop.permute.xlu0 %4957 }
0x1a14   :  { %v4960_v20 = vmul.f32 %v4958_v34, %v4955_v15 }
0x1a16   :  { %v10490_v29 = vadd.f32 %v4963_v21, %v4960_v20 }
0x1a18   :  { %v4970_v30 = vrot.slane %v10490_v29, 4  ;;  %v5071_v50 = vrot.slane %v10490_v29, 6 }
0x1a1a   :  { %4971 = vrot.lane.b32.xlu1 %v4970_v30, %s9213_s15 }
0x1a8c   :  { %v4972_v38 = vpop.permute.xlu1 %4971 }
0x1a8d   :  { %8178 = vmatmul.mubr.msk.f32.vlgmr.msra.gmra.mrb[38].mxu1 %vm4017_vm10, %v4972_v38 }
0x1a8e   :  { %8582 = vmatpush3.bf16.msra.mxu1 %v10313_v23  ;;  %8188 = vmatprep.mubr.msk.f32.mxu1 %vm9209_vm12, %v9206_v18 }
0x1a8f   :  { %8583 = vmatprep.subr.bf16.mxu1 %v9208_v14 }
0x1a92   :  { %8585 = vmatpush3.bf16.msra.mxu1 %v10323_v16 }
0x1a93   :  { %8586 = vmatprep.subr.bf16.mxu1 %v9208_v14 }
0x1b60   :  { %v5041_v39 = vpop.f32.mrb[38].mxu1 }
0x1b61   :  { %v5042_v36 = vadd.f32 %v10379_v31, %v5041_v39  ;;  %v8179_v40 = vpop.f32.mrb[39].mxu1 }
0x1b63   :  { %v5046_v42 = vrot.slane %v5042_v36, 2 }
0x1b65   :  { %5055 = vrot.lane.b32.xlu0 %v5046_v42, %s9211_s26  ;;  %v5048_v43 = vadd.f32 %v5046_v42, %v10366_v41 }
0x1b67   :  { %v7257_v55 = vmul.f32 -1.442695, %v5048_v43 }
0x1b69   :  { %8901 = vpow2.f32 %v7257_v55 }
0x1b73   :  { %v8902_v19 = vpop.eup %8901 }
0x1b74   :  { %v5052_v26 = vadd.f32 1.0, %v8902_v19 }
0x1b76   :  { %8903 = vrcp.f32 %v5052_v26 }
0x1b80   :  { %v8904_v32 = vpop.eup %8903 }
0x1b81   :  { %v5065_v48 = vsub.f32 1.0, %v8904_v32  ;;  %v5073_v53 = vmul.f32 %v8904_v32, %v5071_v50 }
0x1bd7   :  { %v5056_v13 = vpop.permute.xlu0 %5055 }
0x1bd8   :  { %v5058_v25 = vmul.f32 %v8904_v32, %v5056_v13 }
0x1bda   :  { %5060 = vrot.lane.b32.xlu1 %v5058_v25, %s9211_s26 }
0x1c4c   :  { %v5061_v46 = vpop.permute.xlu1 %5060 }
0x1c4d   :  { %v5063_v47 = vadd.f32 %v5061_v46, %v10366_v41 }
0x1c4f   :  { %8905 = vtanh.f32 %v5063_v47 }
0x1c59   :  { %v8906_v49 = vpop.eup %8905 }
0x1c5a   :  { %5067 = vrot.lane.b32.xlu0 %v8906_v49, %s9213_s15 }
0x1ccc   :  { %v5068_v52 = vpop.permute.xlu0 %5067 }
0x1ccd   :  { %v5070_v54 = vmul.f32 %v5068_v52, %v5065_v48 }
0x1ccf   :  { %v10508_v58 = vadd.f32 %v5073_v53, %v5070_v54 }
0x1cd1   :  { %v5080_v59 = vrot.slane %v10508_v58, 6 }
0x1cd3   :  { %5081 = vrot.lane.b32.xlu1 %v5080_v59, %s9213_s15 }
0x1d45   :  { %v5082_v60 = vpop.permute.xlu1 %5081 }
0x1d46   :  { %8189 = vmatmul.mubr.msk.f32.vlgmr.msra.gmra.mrb[40].mxu1 %vm4017_vm10, %v5082_v60 }
0x1d47   :  { %8588 = vmatpush3.bf16.msra.mxu1 %v10313_v23  ;;  %8199 = vmatprep.mubr.msk.f32.mxu1 %vm9209_vm12, %v9206_v18 }
0x1d48   :  { %8589 = vmatprep.subr.bf16.mxu1 %v9208_v14 }
0x1d4b   :  { %8591 = vmatpush3.bf16.msra.mxu1 %v10323_v16 }
0x1d4c   :  { %8592 = vmatprep.subr.bf16.mxu1 %v9208_v14 }
0x1e19   :  { %v5151_v41 = vpop.f32.mrb[40].mxu1 }
0x1e1a   :  { %v5152_v62 = vadd.f32 %v10379_v31, %v5151_v41  ;;  %v8190_v0 = vpop.f32.mrb[41].mxu1 }
0x1e1c   :  { %5163 = vrot.lane.b32.xlu0 %v5152_v62, %s9211_s26  ;;  %v5155_v1 = vadd.f32 %v5152_v62, %v10370_v37 }
0x1e1e   :  { %v7259_v2 = vmul.f32 -1.442695, %v5155_v1 }
0x1e20   :  { %8907 = vpow2.f32 %v7259_v2 }
0x1e2a   :  { %v8908_v4 = vpop.eup %8907 }
0x1e2b   :  { %v5159_v5 = vadd.f32 1.0, %v8908_v4 }
0x1e2d   :  { %8909 = vrcp.f32 %v5159_v5 }
0x1e37   :  { %v8910_v63 = vpop.eup %8909 }
0x1e38   :  { %v5173_v22 = vsub.f32 1.0, %v8910_v63  ;;  %v5180_v24 = vmul.f32 %v8910_v63, %v5080_v59 }
0x1e8e   :  { %v5164_v6 = vpop.permute.xlu0 %5163 }
0x1e8f   :  { %v5166_v7 = vmul.f32 %v8910_v63, %v5164_v6 }
0x1e91   :  { %5168 = vrot.lane.b32.xlu1 %v5166_v7, %s9211_s26 }
0x1f03   :  { %v5169_v8 = vpop.permute.xlu1 %5168 }
0x1f04   :  { %v5171_v9 = vadd.f32 %v5169_v8, %v10370_v37 }
0x1f06   :  { %8911 = vtanh.f32 %v5171_v9 }
0x1f10   :  { %v8912_v10 = vpop.eup %8911 }
0x1f11   :  { %5175 = vrot.lane.b32.xlu0 %v8912_v10, %s9213_s15 }
0x1f83   :  { %v5176_v57 = vpop.permute.xlu0 %5175 }
0x1f84   :  { %v5178_v56 = vmul.f32 %v5176_v57, %v5173_v22 }
0x1f86   :  { %v5181_v45 = vadd.f32 %v5180_v24, %v5178_v56 }
0x1f88   :  { %5183 = vrot.lane.b32.xlu1 %v5181_v45, %s9213_s15  ;;  %v5285_v55 = vrot.slane %v5181_v45, 6 }
0x1ffa   :  { %v5184_v61 = vpop.permute.xlu1 %5183 }
0x1ffb   :  { %5186 = vst.msk [vmem:[#allocation2 + $0x10] sm:$0x3] %vm4314_vm14, %v5184_v61  ;;  %8200 = vmatmul.mubr.msk.f32.vlgmr.msra.gmra.mrb[42].mxu1 %vm4017_vm10, %v5184_v61 }
0x1ffc   :  { %8594 = vmatpush3.bf16.msra.mxu1 %v10313_v23  ;;  %8210 = vmatprep.mubr.msk.f32.mxu1 %vm9209_vm12, %v9206_v18 }
0x1ffd   :  { %8595 = vmatprep.subr.bf16.mxu1 %v9208_v14 }
0x2000   :  { %8597 = vmatpush3.bf16.msra.mxu1 %v10323_v16 }
0x2001   :  { %8598 = vmatprep.subr.bf16.mxu1 %v9208_v14 }
0x20ce   :  { %v5255_v17 = vpop.f32.mrb[42].mxu1 }
0x20cf   :  { %v5256_v28 = vadd.f32 %v10379_v31, %v5255_v17  ;;  %v8201_v15 = vpop.f32.mrb[43].mxu1 }
0x20d1   :  { %v5260_v33 = vrot.slane %v5256_v28, 6 }
0x20d3   :  { %5269 = vrot.lane.b32.xlu0 %v5260_v33, %s9211_s26  ;;  %v5262_v34 = vadd.f32 %v5260_v33, %v10370_v37 }
0x20d5   :  { %v7261_v21 = vmul.f32 -1.442695, %v5262_v34 }
0x20d7   :  { %8913 = vpow2.f32 %v7261_v21 }
0x20e1   :  { %v8914_v20 = vpop.eup %8913 }
0x20e2   :  { %v5266_v30 = vadd.f32 1.0, %v8914_v20 }
0x20e4   :  { %8915 = vrcp.f32 %v5266_v30 }
0x20ee   :  { %v8916_v38 = vpop.eup %8915 }
0x20ef   :  { %v5279_v19 = vsub.f32 1.0, %v8916_v38  ;;  %v5287_v32 = vmul.f32 %v8916_v38, %v5285_v55 }
0x2145   :  { %v5270_v39 = vpop.permute.xlu0 %5269 }
0x2146   :  { %v5272_v36 = vmul.f32 %v8916_v38, %v5270_v39 }
0x2148   :  { %5274 = vrot.lane.b32.xlu1 %v5272_v36, %s9211_s26 }
0x21ba   :  { %v5275_v40 = vpop.permute.xlu1 %5274 }
0x21bb   :  { %v5277_v42 = vadd.f32 %v5275_v40, %v10370_v37 }
0x21bd   :  { %8917 = vtanh.f32 %v5277_v42 }
0x21c7   :  { %v8918_v43 = vpop.eup %8917 }
0x21c8   :  { %5281 = vrot.lane.b32.xlu0 %v8918_v43, %s9213_s15 }
0x223a   :  { %v5282_v26 = vpop.permute.xlu0 %5281 }
0x223b   :  { %v5284_v13 = vmul.f32 %v5282_v26, %v5279_v19 }
0x223d   :  { %v10540_v25 = vadd.f32 %v5287_v32, %v5284_v13 }
0x223f   :  { %v5294_v46 = vrot.slane %v10540_v25, 2  ;;  %v5395_v63 = vrot.slane %v10540_v25, 6 }
0x2241   :  { %5295 = vrot.lane.b32.xlu1 %v5294_v46, %s9213_s15 }
0x22b3   :  { %v5296_v47 = vpop.permute.xlu1 %5295 }
0x22b4   :  { %8211 = vmatmul.mubr.msk.f32.vlgmr.msra.gmra.mrb[44].mxu1 %vm4017_vm10, %v5296_v47 }
0x22b5   :  { %8600 = vmatpush3.bf16.msra.mxu1 %v10313_v23  ;;  %8221 = vmatprep.mubr.msk.f32.mxu1 %vm9209_vm12, %v9206_v18 }
0x22b6   :  { %8601 = vmatprep.subr.bf16.mxu1 %v9208_v14 }
0x22b9   :  { %8603 = vmatpush3.bf16.msra.mxu1 %v10323_v16 }
0x22ba   :  { %8604 = vmatprep.subr.bf16.mxu1 %v9208_v14 }
0x2387   :  { %v5365_v49 = vpop.f32.mrb[44].mxu1 }
0x2388   :  { %v5366_v48 = vadd.f32 %v10379_v31, %v5365_v49  ;;  %v8212_v50 = vpop.f32.mrb[45].mxu1 }
0x238a   :  { %v5370_v52 = vrot.slane %v5366_v48, 4 }
0x238c   :  { %5379 = vrot.lane.b32.xlu0 %v5370_v52, %s9211_s26  ;;  %v5372_v53 = vadd.f32 %v5370_v52, %v10370_v37 }
0x238e   :  { %v7263_v54 = vmul.f32 -1.442695, %v5372_v53 }
0x2390   :  { %8919 = vpow2.f32 %v7263_v54 }
0x239a   :  { %v8920_v59 = vpop.eup %8919 }
0x239b   :  { %v5376_v60 = vadd.f32 1.0, %v8920_v59 }
0x239d   :  { %8921 = vrcp.f32 %v5376_v60 }
0x23a7   :  { %v8922_v41 = vpop.eup %8921 }
0x23a8   :  { %v5389_v5 = vsub.f32 1.0, %v8922_v41  ;;  %v5397_v7 = vmul.f32 %v8922_v41, %v5395_v63 }
0x23fe   :  { %v5380_v62 = vpop.permute.xlu0 %5379 }
0x23ff   :  { %v5382_v0 = vmul.f32 %v8922_v41, %v5380_v62 }
0x2401   :  { %5384 = vrot.lane.b32.xlu1 %v5382_v0, %s9211_s26 }
0x2473   :  { %v5385_v1 = vpop.permute.xlu1 %5384 }
0x2474   :  { %v5387_v2 = vadd.f32 %v5385_v1, %v10370_v37 }
0x2476   :  { %8923 = vtanh.f32 %v5387_v2 }
0x2480   :  { %v8924_v4 = vpop.eup %8923 }
0x2481   :  { %5391 = vrot.lane.b32.xlu0 %v8924_v4, %s9213_s15 }
0x24f3   :  { %v5392_v6 = vpop.permute.xlu0 %5391 }
0x24f4   :  { %v5394_v8 = vmul.f32 %v5392_v6, %v5389_v5 }
0x24f6   :  { %v10558_v9 = vadd.f32 %v5397_v7, %v5394_v8 }
0x24f8   :  { %v5404_v10 = vrot.slane %v10558_v9, 4  ;;  %v5505_v36 = vrot.slane %v10558_v9, 6 }
0x24fa   :  { %5405 = vrot.lane.b32.xlu1 %v5404_v10, %s9213_s15 }
0x256c   :  { %v5406_v22 = vpop.permute.xlu1 %5405 }
0x256d   :  { %8222 = vmatmul.mubr.msk.f32.vlgmr.msra.gmra.mrb[46].mxu1 %vm4017_vm10, %v5406_v22 }
0x256e   :  { %8606 = vmatpush3.bf16.msra.mxu1 %v10313_v23  ;;  %8232 = vmatprep.mubr.msk.f32.mxu1 %vm9209_vm12, %v9206_v18 }
0x256f   :  { %8607 = vmatprep.subr.bf16.mxu1 %v9208_v14 }
0x2572   :  { %8609 = vmatpush3.bf16.msra.mxu1 %v10323_v16 }
0x2573   :  { %8616 = vmatprep.subr.bf16.mxu1 %v9208_v14 }
0x2640   :  { %v5475_v57 = vpop.f32.mrb[46].mxu1 }
0x2641   :  { %v5476_v24 = vadd.f32 %v10379_v31, %v5475_v57  ;;  %v8223_v56 = vpop.f32.mrb[47].mxu1 }
0x2643   :  { %v5480_v45 = vrot.slane %v5476_v24, 2 }
0x2645   :  { %5489 = vrot.lane.b32.xlu0 %v5480_v45, %s9211_s26  ;;  %v5482_v61 = vadd.f32 %v5480_v45, %v10370_v37 }
0x2647   :  { %v7265_v17 = vmul.f32 -1.442695, %v5482_v61 }
0x2649   :  { %8925 = vpow2.f32 %v7265_v17 }
0x2653   :  { %v8926_v28 = vpop.eup %8925 }
0x2654   :  { %v5486_v15 = vadd.f32 1.0, %v8926_v28 }
0x2656   :  { %8927 = vrcp.f32 %v5486_v15 }
0x2660   :  { %v8928_v33 = vpop.eup %8927 }
0x2661   :  { %v5499_v39 = vsub.f32 1.0, %v8928_v33  ;;  %v5507_v42 = vmul.f32 %v8928_v33, %v5505_v36 }
0x26b7   :  { %v5490_v34 = vpop.permute.xlu0 %5489 }
0x26b8   :  { %v5492_v21 = vmul.f32 %v8928_v33, %v5490_v34 }
0x26ba   :  { %5494 = vrot.lane.b32.xlu1 %v5492_v21, %s9211_s26 }
0x272c   :  { %v5495_v20 = vpop.permute.xlu1 %5494 }
0x272d   :  { %v5497_v30 = vadd.f32 %v5495_v20, %v10370_v37 }
0x272f   :  { %8929 = vtanh.f32 %v5497_v30 }
0x2739   :  { %v8930_v38 = vpop.eup %8929 }
0x273a   :  { %5501 = vrot.lane.b32.xlu0 %v8930_v38, %s9213_s15 }
0x27ac   :  { %v5502_v40 = vpop.permute.xlu0 %5501 }
0x27ad   :  { %v5504_v43 = vmul.f32 %v5502_v40, %v5499_v39 }
0x27af   :  { %v10576_v55 = vadd.f32 %v5507_v42, %v5504_v43 }
0x27b1   :  { %v5514_v19 = vrot.slane %v10576_v55, 6 }
0x27b3   :  { %5515 = vrot.lane.b32.xlu1 %v5514_v19, %s9213_s15 }
0x2825   :  { %v5516_v26 = vpop.permute.xlu1 %5515 }
0x2826   :  { %8233 = vmatmul.mubr.msk.f32.vlgmr.msra.gmra.mrb[48].mxu1 %vm4017_vm10, %v5516_v26 }
0x2827   :  { %8618 = vmatpush3.bf16.msra.mxu1 %v10313_v23  ;;  %8254 = vmatprep.mubr.msk.f32.mxu1 %vm9209_vm12, %v9206_v18 }
0x2828   :  { %8619 = vmatprep.subr.bf16.mxu1 %v9208_v14 }
0x282b   :  { %8621 = vmatpush3.bf16.msra.mxu1 %v10323_v16 }
0x282c   :  { %8628 = vmatprep.subr.bf16.mxu1 %v9208_v14 }
0x28f9   :  { %v5585_v37 = vpop.f32.mrb[48].mxu1 }
0x28fa   :  { %v5586_v32 = vadd.f32 %v10379_v31, %v5585_v37  ;;  %v8234_v13 = vpop.f32.mrb[49].mxu1 }
0x28fc   :  { %5597 = vrot.lane.b32.xlu0 %v5586_v32, %s9211_s26  ;;  %v5589_v46 = vadd.f32 %v5586_v32, %v10368_v44 }
0x28fe   :  { %v7267_v47 = vmul.f32 -1.442695, %v5589_v46 }
0x2900   :  { %8931 = vpow2.f32 %v7267_v47 }
0x290a   :  { %v8932_v49 = vpop.eup %8931 }
0x290b   :  { %v5593_v48 = vadd.f32 1.0, %v8932_v49 }
0x290d   :  { %8933 = vrcp.f32 %v5593_v48 }
0x2917   :  { %v8934_v50 = vpop.eup %8933 }
0x2918   :  { %v5607_v41 = vsub.f32 1.0, %v8934_v50  ;;  %v5614_v0 = vmul.f32 %v8934_v50, %v5514_v19 }
0x296e   :  { %v5598_v52 = vpop.permute.xlu0 %5597 }
0x296f   :  { %v5600_v53 = vmul.f32 %v8934_v50, %v5598_v52 }
0x2971   :  { %5602 = vrot.lane.b32.xlu1 %v5600_v53, %s9211_s26 }
0x29e3   :  { %v5603_v54 = vpop.permute.xlu1 %5602 }
0x29e4   :  { %v5605_v59 = vadd.f32 %v5603_v54, %v10368_v44 }
0x29e6   :  { %8935 = vtanh.f32 %v5605_v59 }
0x29f0   :  { %v8936_v60 = vpop.eup %8935 }
0x29f1   :  { %5609 = vrot.lane.b32.xlu0 %v8936_v60, %s9213_s15 }
0x2a63   :  { %v5610_v62 = vpop.permute.xlu0 %5609 }
0x2a64   :  { %v5612_v1 = vmul.f32 %v5610_v62, %v5607_v41 }
0x2a66   :  { %v5615_v2 = vadd.f32 %v5614_v0, %v5612_v1  ;;  %v10640_v1 = vld [vmem:[%s10911_s19] ss:$0 sm:$0xff] }
0x2a68   :  { %5617 = vrot.lane.b32.xlu1 %v5615_v2, %s9213_s15  ;;  %v5719_v15 = vrot.slane %v5615_v2, 6 }
0x2ada   :  { %v5618_v4 = vpop.permute.xlu1 %5617 }
0x2adb   :  { %5620 = vst.msk [vmem:[#allocation2 + $0x18] sm:$0x3] %vm4314_vm14, %v5618_v4  ;;  %8244 = vmatmul.mubr.msk.f32.vlgmr.msra.gmra.mrb[12].mxu0 %vm4017_vm10, %v5618_v4 }
0x2adc   :  { %8624 = vmatpush3.bf16.msra.mxu0 %v10313_v23  ;;  %8265 = vmatprep.mubr.msk.f32.mxu0 %vm9209_vm12, %v9206_v18 }
0x2add   :  { %8625 = vmatprep.subr.bf16.mxu0 %v9208_v14 }
0x2ae0   :  { %8627 = vmatpush3.bf16.msra.mxu0 %v10323_v16 }
0x2ae1   :  { %8634 = vmatprep.subr.bf16.mxu0 %v9208_v14 }
0x2bae   :  { %v5689_v5 = vpop.f32.mrb[12].mxu0 }
0x2baf   :  { %v5690_v63 = vadd.f32 %v10379_v31, %v5689_v5  ;;  %v8245_v6 = vpop.f32.mrb[13].mxu0 }
0x2bb1   :  { %v5694_v7 = vrot.slane %v5690_v63, 6 }
0x2bb3   :  { %5703 = vrot.lane.b32.xlu0 %v5694_v7, %s9211_s26  ;;  %v5696_v8 = vadd.f32 %v5694_v7, %v10368_v44 }
0x2bb5   :  { %v7269_v10 = vmul.f32 -1.442695, %v5696_v8 }
0x2bb7   :  { %8937 = vpow2.f32 %v7269_v10 }
0x2bc1   :  { %v8938_v22 = vpop.eup %8937 }
0x2bc2   :  { %v5700_v57 = vadd.f32 1.0, %v8938_v22 }
0x2bc4   :  { %8939 = vrcp.f32 %v5700_v57 }
0x2bce   :  { %v8940_v24 = vpop.eup %8939 }
0x2bcf   :  { %v5713_v33 = vsub.f32 1.0, %v8940_v24  ;;  %v5721_v20 = vmul.f32 %v8940_v24, %v5719_v15 }
0x2c25   :  { %v5704_v56 = vpop.permute.xlu0 %5703 }
0x2c26   :  { %v5706_v45 = vmul.f32 %v8940_v24, %v5704_v56 }
0x2c28   :  { %5708 = vrot.lane.b32.xlu1 %v5706_v45, %s9211_s26 }
0x2c9a   :  { %v5709_v61 = vpop.permute.xlu1 %5708 }
0x2c9b   :  { %v5711_v17 = vadd.f32 %v5709_v61, %v10368_v44 }
0x2c9d   :  { %8941 = vtanh.f32 %v5711_v17 }
0x2ca7   :  { %v8942_v28 = vpop.eup %8941 }
0x2ca8   :  { %5715 = vrot.lane.b32.xlu0 %v8942_v28, %s9213_s15 }
0x2d1a   :  { %v5716_v34 = vpop.permute.xlu0 %5715 }
0x2d1b   :  { %v5718_v21 = vmul.f32 %v5716_v34, %v5713_v33 }
0x2d1d   :  { %v10608_v30 = vadd.f32 %v5721_v20, %v5718_v21 }
0x2d1f   :  { %v5728_v38 = vrot.slane %v10608_v30, 2  ;;  %v5829_v52 = vrot.slane %v10608_v30, 6 }
0x2d21   :  { %5729 = vrot.lane.b32.xlu1 %v5728_v38, %s9213_s15 }
0x2d93   :  { %v5730_v39 = vpop.permute.xlu1 %5729 }
0x2d94   :  { %8255 = vmatmul.mubr.msk.f32.vlgmr.msra.gmra.mrb[50].mxu1 %vm4017_vm10, %v5730_v39 }
0x2d95   :  { %8630 = vmatpush3.bf16.msra.mxu1 %v10313_v23  ;;  %8276 = vmatprep.mubr.msk.f32.mxu1 %vm9209_vm12, %v9206_v18 }
0x2d96   :  { %8631 = vmatprep.subr.bf16.mxu1 %v9208_v14 }
0x2d99   :  { %8633 = vmatpush3.bf16.msra.mxu1 %v10323_v16 }
0x2d9a   :  { %8640 = vmatprep.subr.bf16.mxu1 %v9208_v14 }
0x2e67   :  { %v5799_v36 = vpop.f32.mrb[50].mxu1 }
0x2e68   :  { %v5800_v40 = vadd.f32 %v10379_v31, %v5799_v36  ;;  %v8256_v42 = vpop.f32.mrb[51].mxu1 }
0x2e6a   :  { %v5804_v43 = vrot.slane %v5800_v40, 4 }
0x2e6c   :  { %5813 = vrot.lane.b32.xlu0 %v5804_v43, %s9211_s26  ;;  %v5806_v19 = vadd.f32 %v5804_v43, %v10368_v44 }
0x2e6e   :  { %v7271_v26 = vmul.f32 -1.442695, %v5806_v19 }
0x2e70   :  { %8943 = vpow2.f32 %v7271_v26 }
0x2e7a   :  { %v8944_v37 = vpop.eup %8943 }
0x2e7b   :  { %v5810_v32 = vadd.f32 1.0, %v8944_v37 }
0x2e7d   :  { %8945 = vrcp.f32 %v5810_v32 }
0x2e87   :  { %v8946_v13 = vpop.eup %8945 }
0x2e88   :  { %v5823_v50 = vsub.f32 1.0, %v8946_v13  ;;  %v5831_v54 = vmul.f32 %v8946_v13, %v5829_v52 }
0x2ede   :  { %v5814_v46 = vpop.permute.xlu0 %5813 }
0x2edf   :  { %v5816_v47 = vmul.f32 %v8946_v13, %v5814_v46 }
0x2ee1   :  { %5818 = vrot.lane.b32.xlu1 %v5816_v47, %s9211_s26 }
0x2f53   :  { %v5819_v49 = vpop.permute.xlu1 %5818 }
0x2f54   :  { %v5821_v48 = vadd.f32 %v5819_v49, %v10368_v44 }
0x2f56   :  { %8947 = vtanh.f32 %v5821_v48 }
0x2f60   :  { %v8948_v31 = vpop.eup %8947 }
0x2f61   :  { %5825 = vrot.lane.b32.xlu0 %v8948_v31, %s9213_s15 }
0x2fd3   :  { %v5826_v53 = vpop.permute.xlu0 %5825 }
0x2fd4   :  { %v5828_v59 = vmul.f32 %v5826_v53, %v5823_v50 }
0x2fd6   :  { %v10626_v60 = vadd.f32 %v5831_v54, %v5828_v59 }
0x2fd8   :  { %v5838_v41 = vrot.slane %v10626_v60, 4  ;;  %v5939_v17 = vrot.slane %v10626_v60, 6 }
0x2fda   :  { %5839 = vrot.lane.b32.xlu1 %v5838_v41, %s9213_s15 }
0x304c   :  { %v5840_v62 = vpop.permute.xlu1 %5839 }
0x304d   :  { %8266 = vmatmul.mubr.msk.f32.vlgmr.msra.gmra.mrb[14].mxu0 %vm4017_vm10, %v5840_v62 }
0x304e   :  { %8636 = vmatpush3.bf16.msra.mxu0 %v10313_v23  ;;  %8287 = vmatprep.mubr.msk.f32.mxu0 %vm9209_vm12, %v9206_v18 }
0x304f   :  { %8637 = vmatprep.subr.bf16.mxu0 %v9208_v14 }
0x3052   :  { %8639 = vmatpush3.bf16.msra.mxu0 %v10323_v16 }
0x3053   :  { %8646 = vmatprep.subr.bf16.mxu0 %v9208_v14 }
0x3120   :  { %v5909_v0 = vpop.f32.mrb[14].mxu0 }
0x3121   :  { %v5910_v2 = vadd.f32 %v10640_v1, %v5909_v0  ;;  %v8267_v4 = vpop.f32.mrb[15].mxu0 }
0x3123   :  { %v5914_v5 = vrot.slane %v5910_v2, 2 }
0x3125   :  { %5923 = vrot.lane.b32.xlu0 %v5914_v5, %s9211_s26  ;;  %v5916_v63 = vadd.f32 %v5914_v5, %v10368_v44 }
0x3127   :  { %v7273_v6 = vmul.f32 -1.442695, %v5916_v63 }
0x3129   :  { %8949 = vpow2.f32 %v7273_v6 }
0x3133   :  { %v8950_v7 = vpop.eup %8949 }
0x3134   :  { %v5920_v8 = vadd.f32 1.0, %v8950_v7 }
0x3136   :  { %8951 = vrcp.f32 %v5920_v8 }
0x3140   :  { %v8952_v10 = vpop.eup %8951 }
0x3141   :  { %v5933_v61 = vsub.f32 1.0, %v8952_v10  ;;  %v5941_v15 = vmul.f32 %v8952_v10, %v5939_v17 }
0x3197   :  { %v5924_v22 = vpop.permute.xlu0 %5923 }
0x3198   :  { %v5926_v57 = vmul.f32 %v8952_v10, %v5924_v22 }
0x319a   :  { %5928 = vrot.lane.b32.xlu1 %v5926_v57, %s9211_s26 }
0x320c   :  { %v5929_v24 = vpop.permute.xlu1 %5928 }
0x320d   :  { %v5931_v56 = vadd.f32 %v5929_v24, %v10368_v44 }
0x320f   :  { %8953 = vtanh.f32 %v5931_v56 }
0x3219   :  { %v8954_v45 = vpop.eup %8953 }
0x321a   :  { %5935 = vrot.lane.b32.xlu0 %v8954_v45, %s9213_s15 }
0x328c   :  { %v5936_v28 = vpop.permute.xlu0 %5935 }
0x328d   :  { %v5938_v33 = vmul.f32 %v5936_v28, %v5933_v61 }
0x328f   :  { %v10649_v34 = vadd.f32 %v5941_v15, %v5938_v33 }
0x3291   :  { %v5948_v21 = vrot.slane %v10649_v34, 6 }
0x3293   :  { %5949 = vrot.lane.b32.xlu1 %v5948_v21, %s9213_s15 }
0x3305   :  { %v5950_v20 = vpop.permute.xlu1 %5949 }
0x3306   :  { %8277 = vmatmul.mubr.msk.f32.vlgmr.msra.gmra.mrb[52].mxu1 %vm4017_vm10, %v5950_v20 }
0x3307   :  { %8642 = vmatpush3.bf16.msra.mxu1 %v10313_v23  ;;  %8298 = vmatprep.mubr.msk.f32.mxu1 %vm9209_vm12, %v9206_v18 }
0x3308   :  { %8643 = vmatprep.subr.bf16.mxu1 %v9208_v14 }
0x330b   :  { %8645 = vmatpush3.bf16.msra.mxu1 %v10323_v16 }
0x330c   :  { %8652 = vmatprep.subr.bf16.mxu1 %v9208_v14 }
0x33d9   :  { %v6019_v44 = vpop.f32.mrb[52].mxu1 }
0x33da   :  { %v6020_v38 = vadd.f32 %v10640_v1, %v6019_v44  ;;  %v8278_v39 = vpop.f32.mrb[53].mxu1 }
0x33dc   :  { %6031 = vrot.lane.b32.xlu0 %v6020_v38, %s9211_s26  ;;  %v6023_v36 = vadd.f32 %v6020_v38, %v10374_v27 }
0x33de   :  { %v7275_v40 = vmul.f32 -1.442695, %v6023_v36 }
0x33e0   :  { %8955 = vpow2.f32 %v7275_v40 }
0x33ea   :  { %v8956_v42 = vpop.eup %8955 }
0x33eb   :  { %v6027_v43 = vadd.f32 1.0, %v8956_v42 }
0x33ed   :  { %8957 = vrcp.f32 %v6027_v43 }
0x33f7   :  { %v8958_v19 = vpop.eup %8957 }
0x33f8   :  { %v6041_v47 = vsub.f32 1.0, %v8958_v19  ;;  %v6048_v48 = vmul.f32 %v8958_v19, %v5948_v21 }
0x344e   :  { %v6032_v26 = vpop.permute.xlu0 %6031 }
0x344f   :  { %v6034_v37 = vmul.f32 %v8958_v19, %v6032_v26 }
0x3451   :  { %6036 = vrot.lane.b32.xlu1 %v6034_v37, %s9211_s26 }
0x34c3   :  { %v6037_v32 = vpop.permute.xlu1 %6036 }
0x34c4   :  { %v6039_v13 = vadd.f32 %v6037_v32, %v10374_v27 }
0x34c6   :  { %8959 = vtanh.f32 %v6039_v13 }
0x34d0   :  { %v8960_v46 = vpop.eup %8959 }
0x34d1   :  { %6043 = vrot.lane.b32.xlu0 %v8960_v46, %s9213_s15 }
0x3543   :  { %v6044_v49 = vpop.permute.xlu0 %6043 }
0x3544   :  { %v6046_v31 = vmul.f32 %v6044_v49, %v6041_v47 }
0x3546   :  { %v6049_v50 = vadd.f32 %v6048_v48, %v6046_v31 }
0x3548   :  { %6051 = vrot.lane.b32.xlu1 %v6049_v50, %s9213_s15  ;;  %v6153_v22 = vrot.slane %v6049_v50, 6 }
0x35ba   :  { %v6052_v52 = vpop.permute.xlu1 %6051 }
0x35bb   :  { %6054 = vst.msk [vmem:[#allocation2 + $0x20] sm:$0x3] %vm4314_vm14, %v6052_v52  ;;  %8288 = vmatmul.mubr.msk.f32.vlgmr.msra.gmra.mrb[16].mxu0 %vm4017_vm10, %v6052_v52 }
0x35bc   :  { %8648 = vmatpush3.bf16.msra.mxu0 %v10313_v23  ;;  %8309 = vmatprep.mubr.msk.f32.mxu0 %vm9209_vm12, %v9206_v18 }
0x35bd   :  { %8649 = vmatprep.subr.bf16.mxu0 %v9208_v14 }
0x35c0   :  { %8651 = vmatpush3.bf16.msra.mxu0 %v10323_v16 }
0x35c1   :  { %8658 = vmatprep.subr.bf16.mxu0 %v9208_v14 }
0x368e   :  { %v6123_v53 = vpop.f32.mrb[16].mxu0 }
0x368f   :  { %v6124_v54 = vadd.f32 %v10640_v1, %v6123_v53  ;;  %v8289_v59 = vpop.f32.mrb[17].mxu0 }
0x3691   :  { %v6128_v41 = vrot.slane %v6124_v54, 6 }
0x3693   :  { %6137 = vrot.lane.b32.xlu0 %v6128_v41, %s9211_s26  ;;  %v6130_v62 = vadd.f32 %v6128_v41, %v10374_v27 }
0x3695   :  { %v7277_v0 = vmul.f32 -1.442695, %v6130_v62 }
0x3697   :  { %8961 = vpow2.f32 %v7277_v0 }
0x36a1   :  { %v8962_v2 = vpop.eup %8961 }
0x36a2   :  { %v6134_v4 = vadd.f32 1.0, %v8962_v2 }
0x36a4   :  { %8963 = vrcp.f32 %v6134_v4 }
0x36ae   :  { %v8964_v5 = vpop.eup %8963 }
0x36af   :  { %v6147_v57 = vsub.f32 1.0, %v8964_v5  ;;  %v6155_v45 = vmul.f32 %v8964_v5, %v6153_v22 }
0x3705   :  { %v6138_v63 = vpop.permute.xlu0 %6137 }
0x3706   :  { %v6140_v6 = vmul.f32 %v8964_v5, %v6138_v63 }
0x3708   :  { %6142 = vrot.lane.b32.xlu1 %v6140_v6, %s9211_s26 }
0x377a   :  { %v6143_v7 = vpop.permute.xlu1 %6142 }
0x377b   :  { %v6145_v8 = vadd.f32 %v6143_v7, %v10374_v27 }
0x377d   :  { %8965 = vtanh.f32 %v6145_v8 }
0x3787   :  { %v8966_v10 = vpop.eup %8965 }
0x3788   :  { %6149 = vrot.lane.b32.xlu0 %v8966_v10, %s9213_s15 }
0x37fa   :  { %v6150_v24 = vpop.permute.xlu0 %6149 }
0x37fb   :  { %v6152_v56 = vmul.f32 %v6150_v24, %v6147_v57 }
0x37fd   :  { %v10681_v61 = vadd.f32 %v6155_v45, %v6152_v56 }
0x37ff   :  { %v6162_v17 = vrot.slane %v10681_v61, 2  ;;  %v6263_v13 = vrot.slane %v10681_v61, 6 }
0x3801   :  { %6163 = vrot.lane.b32.xlu1 %v6162_v17, %s9213_s15 }
0x3873   :  { %v6164_v28 = vpop.permute.xlu1 %6163 }
0x3874   :  { %8299 = vmatmul.mubr.msk.f32.vlgmr.msra.gmra.mrb[54].mxu1 %vm4017_vm10, %v6164_v28 }
0x3875   :  { %8654 = vmatpush3.bf16.msra.mxu1 %v10313_v23  ;;  %8320 = vmatprep.mubr.msk.f32.mxu1 %vm9209_vm12, %v9206_v18 }
0x3876   :  { %8655 = vmatprep.subr.bf16.mxu1 %v9208_v14 }
0x3879   :  { %8657 = vmatpush3.bf16.msra.mxu1 %v10323_v16 }
0x387a   :  { %8664 = vmatprep.subr.bf16.mxu1 %v9208_v14 }
0x3947   :  { %v6233_v15 = vpop.f32.mrb[54].mxu1 }
0x3948   :  { %v6234_v33 = vadd.f32 %v10640_v1, %v6233_v15  ;;  %v8300_v21 = vpop.f32.mrb[55].mxu1 }
0x394a   :  { %v6238_v20 = vrot.slane %v6234_v33, 4 }
0x394c   :  { %6247 = vrot.lane.b32.xlu0 %v6238_v20, %s9211_s26  ;;  %v6240_v44 = vadd.f32 %v6238_v20, %v10374_v27 }
0x394e   :  { %v7279_v38 = vmul.f32 -1.442695, %v6240_v44 }
0x3950   :  { %8967 = vpow2.f32 %v7279_v38 }
0x395a   :  { %v8968_v39 = vpop.eup %8967 }
0x395b   :  { %v6244_v36 = vadd.f32 1.0, %v8968_v39 }
0x395d   :  { %8969 = vrcp.f32 %v6244_v36 }
0x3967   :  { %v8970_v40 = vpop.eup %8969 }
0x3968   :  { %v6257_v32 = vsub.f32 1.0, %v8970_v40  ;;  %v6265_v47 = vmul.f32 %v8970_v40, %v6263_v13 }
0x39be   :  { %v6248_v42 = vpop.permute.xlu0 %6247 }
0x39bf   :  { %v6250_v43 = vmul.f32 %v8970_v40, %v6248_v42 }
0x39c1   :  { %6252 = vrot.lane.b32.xlu1 %v6250_v43, %s9211_s26 }
0x3a33   :  { %v6253_v19 = vpop.permute.xlu1 %6252 }
0x3a34   :  { %v6255_v26 = vadd.f32 %v6253_v19, %v10374_v27 }
0x3a36   :  { %8971 = vtanh.f32 %v6255_v26 }
0x3a40   :  { %v8972_v37 = vpop.eup %8971 }
0x3a41   :  { %6259 = vrot.lane.b32.xlu0 %v8972_v37, %s9213_s15 }
0x3ab3   :  { %v6260_v46 = vpop.permute.xlu0 %6259 }
0x3ab4   :  { %v6262_v49 = vmul.f32 %v6260_v46, %v6257_v32 }
0x3ab6   :  { %v10699_v48 = vadd.f32 %v6265_v47, %v6262_v49 }
0x3ab8   :  { %v6272_v31 = vrot.slane %v10699_v48, 4  ;;  %v6373_v22 = vrot.slane %v10699_v48, 6 }
0x3aba   :  { %6273 = vrot.lane.b32.xlu1 %v6272_v31, %s9213_s15 }
0x3b2c   :  { %v6274_v50 = vpop.permute.xlu1 %6273 }
0x3b2d   :  { %8310 = vmatmul.mubr.msk.f32.vlgmr.msra.gmra.mrb[18].mxu0 %vm4017_vm10, %v6274_v50 }
0x3b2e   :  { %8660 = vmatpush3.bf16.msra.mxu0 %v10313_v23  ;;  %8331 = vmatprep.mubr.msk.f32.mxu0 %vm9209_vm12, %v9206_v18 }
0x3b2f   :  { %8661 = vmatprep.subr.bf16.mxu0 %v9208_v14 }
0x3b32   :  { %8663 = vmatpush3.bf16.msra.mxu0 %v10323_v16 }
0x3c00   :  { %v6343_v52 = vpop.f32.mrb[18].mxu0 }
0x3c01   :  { %v6344_v53 = vadd.f32 %v10640_v1, %v6343_v52  ;;  %v8311_v54 = vpop.f32.mrb[19].mxu0 }
0x3c03   :  { %v6348_v59 = vrot.slane %v6344_v53, 2 }
0x3c05   :  { %6357 = vrot.lane.b32.xlu0 %v6348_v59, %s9211_s26  ;;  %v6350_v41 = vadd.f32 %v6348_v59, %v10374_v27 }
0x3c07   :  { %v7281_v62 = vmul.f32 -1.442695, %v6350_v41 }
0x3c09   :  { %8973 = vpow2.f32 %v7281_v62 }
0x3c13   :  { %v8974_v0 = vpop.eup %8973 }
0x3c14   :  { %v6354_v2 = vadd.f32 1.0, %v8974_v0 }
0x3c16   :  { %8975 = vrcp.f32 %v6354_v2 }
0x3c20   :  { %v8976_v4 = vpop.eup %8975 }
0x3c21   :  { %v6367_v10 = vsub.f32 1.0, %v8976_v4  ;;  %v6375_v24 = vmul.f32 %v8976_v4, %v6373_v22 }
0x3c77   :  { %v6358_v5 = vpop.permute.xlu0 %6357 }
0x3c78   :  { %v6360_v63 = vmul.f32 %v8976_v4, %v6358_v5 }
0x3c7a   :  { %6362 = vrot.lane.b32.xlu1 %v6360_v63, %s9211_s26 }
0x3cec   :  { %v6363_v6 = vpop.permute.xlu1 %6362 }
0x3ced   :  { %v6365_v7 = vadd.f32 %v6363_v6, %v10374_v27 }
0x3cef   :  { %8977 = vtanh.f32 %v6365_v7 }
0x3cf9   :  { %v8978_v8 = vpop.eup %8977 }
0x3cfa   :  { %6369 = vrot.lane.b32.xlu0 %v8978_v8, %s9213_s15 }
0x3d6c   :  { %v6370_v57 = vpop.permute.xlu0 %6369 }
0x3d6d   :  { %v6372_v56 = vmul.f32 %v6370_v57, %v6367_v10 }
0x3d6f   :  { %v10716_v45 = vadd.f32 %v6375_v24, %v6372_v56 }
0x3d71   :  { %v6382_v17 = vrot.slane %v10716_v45, 6 }
0x3d73   :  { %6383 = vrot.lane.b32.xlu1 %v6382_v17, %s9213_s15 }
0x3de5   :  { %v6384_v28 = vpop.permute.xlu1 %6383 }
0x3de6   :  { %8321 = vmatmul.mubr.msk.f32.vlgmr.msra.gmra.mrb[56].mxu1 %vm4017_vm10, %v6384_v28 }
0x3de7   :  { %8666 = vmatpush3.bf16.msra.mxu1 %v10313_v23  ;;  %8342 = vmatprep.mubr.msk.f32.mxu1 %vm9209_vm12, %v9206_v18  ;;  %vm4533_vm12 = vcmask 259076  }
0x3de8   :  { %8667 = vmatprep.subr.bf16.mxu1 %v9208_v14 }
0x3deb   :  { %8669 = vmatpush3.bf16.msra.mxu1 %v10323_v16 }
0x3eb9   :  { %v6453_v27 = vpop.f32.mrb[56].mxu1 }
0x3eba   :  { %v6454_v15 = vadd.f32 %v10640_v1, %v6453_v27  ;;  %v8322_v33 = vpop.f32.mrb[57].mxu1 }
0x3ebc   :  { %6465 = vrot.lane.b32.xlu0 %v6454_v15, %s9211_s26  ;;  %v6457_v21 = vadd.f32 %v6454_v15, %v10372_v11 }
0x3ebe   :  { %v7283_v20 = vmul.f32 -1.442695, %v6457_v21 }
0x3ec0   :  { %8979 = vpow2.f32 %v7283_v20 }
0x3eca   :  { %v8980_v44 = vpop.eup %8979 }
0x3ecb   :  { %v6461_v38 = vadd.f32 1.0, %v8980_v44 }
0x3ecd   :  { %8981 = vrcp.f32 %v6461_v38 }
0x3ed7   :  { %v8982_v23 = vpop.eup %8981 }
0x3ed8   :  { %v6475_v40 = vsub.f32 1.0, %v8982_v23  ;;  %v6482_v43 = vmul.f32 %v8982_v23, %v6382_v17 }
0x3f2e   :  { %v6466_v39 = vpop.permute.xlu0 %6465 }
0x3f2f   :  { %v6468_v18 = vmul.f32 %v8982_v23, %v6466_v39 }
0x3f31   :  { %6470 = vrot.lane.b32.xlu1 %v6468_v18, %s9211_s26 }
0x3fa3   :  { %v6471_v14 = vpop.permute.xlu1 %6470 }
0x3fa4   :  { %v6473_v16 = vadd.f32 %v6471_v14, %v10372_v11 }
0x3fa6   :  { %8983 = vtanh.f32 %v6473_v16 }
0x3fb0   :  { %v8984_v36 = vpop.eup %8983 }
0x3fb1   :  { %6477 = vrot.lane.b32.xlu0 %v8984_v36, %s9213_s15 }
0x4023   :  { %v6478_v42 = vpop.permute.xlu0 %6477 }
0x4024   :  { %v6480_v19 = vmul.f32 %v6478_v42, %v6475_v40 }
0x4026   :  { %v6483_v26 = vadd.f32 %v6482_v43, %v6480_v19 }
0x4028   :  { %6485 = vrot.lane.b32.xlu1 %v6483_v26, %s9213_s15  ;;  %v6587_v2 = vrot.slane %v6483_v26, 6 }
0x409a   :  { %v6486_v37 = vpop.permute.xlu1 %6485 }
0x409b   :  { %6488 = vst.msk [vmem:[#allocation2 + $0x28] sm:$0x3] %vm4314_vm14, %v6486_v37  ;;  %8332 = vmatmul.mubr.msk.f32.vlgmr.msra.gmra.mrb[20].mxu0 %vm4017_vm10, %v6486_v37 }
0x416e   :  { %v6557_v32 = vpop.f32.mrb[20].mxu0 }
0x416f   :  { %v6558_v13 = vadd.f32 %v10640_v1, %v6557_v32  ;;  %v8333_v46 = vpop.f32.mrb[21].mxu0 }
0x4171   :  { %v6562_v47 = vrot.slane %v6558_v13, 6 }
0x4173   :  { %6571 = vrot.lane.b32.xlu0 %v6562_v47, %s9211_s26  ;;  %v6564_v49 = vadd.f32 %v6562_v47, %v10372_v11 }
0x4175   :  { %v7285_v31 = vmul.f32 -1.442695, %v6564_v49 }
0x4177   :  { %8985 = vpow2.f32 %v7285_v31 }
0x4181   :  { %v8986_v50 = vpop.eup %8985 }
0x4182   :  { %v6568_v52 = vadd.f32 1.0, %v8986_v50 }
0x4184   :  { %8987 = vrcp.f32 %v6568_v52 }
0x418e   :  { %v8988_v53 = vpop.eup %8987 }
0x418f   :  { %v6581_v4 = vsub.f32 1.0, %v8988_v53  ;;  %v6589_v6 = vmul.f32 %v8988_v53, %v6587_v2 }
0x41e5   :  { %v6572_v54 = vpop.permute.xlu0 %6571 }
0x41e6   :  { %v6574_v59 = vmul.f32 %v8988_v53, %v6572_v54 }
0x41e8   :  { %6576 = vrot.lane.b32.xlu1 %v6574_v59, %s9211_s26 }
0x425a   :  { %v6577_v41 = vpop.permute.xlu1 %6576 }
0x425b   :  { %v6579_v62 = vadd.f32 %v6577_v41, %v10372_v11 }
0x425d   :  { %8989 = vtanh.f32 %v6579_v62 }
0x4267   :  { %v8990_v0 = vpop.eup %8989 }
0x4268   :  { %6583 = vrot.lane.b32.xlu0 %v8990_v0, %s9213_s15 }
0x42da   :  { %v6584_v5 = vpop.permute.xlu0 %6583 }
0x42db   :  { %v6586_v63 = vmul.f32 %v6584_v5, %v6581_v4 }
0x42dd   :  { %v10741_v7 = vadd.f32 %v6589_v6, %v6586_v63 }
0x42df   :  { %v6596_v8 = vrot.slane %v10741_v7, 2 }
0x42e1   :  { %6597 = vrot.lane.b32.xlu1 %v6596_v8, %s9213_s15 }
0x4353   :  { %v6598_v10 = vpop.permute.xlu1 %6597 }
0x4354   :  { %8343 = vmatmul.mubr.msk.f32.vlgmr.msra.gmra.mrb[58].mxu1 %vm4017_vm10, %v6598_v10 }
0x4427   :  { %v6667_v22 = vpop.f32.mrb[58].mxu1 }
0x4428   :  { %v6668_v57 = vadd.f32 %v10640_v1, %v6667_v22  ;;  %v8344_v24 = vpop.f32.mrb[59].mxu1 }
0x442a   :  { %v6672_v56 = vrot.slane %v6668_v57, 4 }
0x442c   :  { %6681 = vrot.lane.b32.xlu0 %v6672_v56, %s9211_s26  ;;  %v6674_v17 = vadd.f32 %v6672_v56, %v10372_v11 }
0x442e   :  { %v7287_v28 = vmul.f32 -1.442695, %v6674_v17 }
0x4430   :  { %8991 = vpow2.f32 %v7287_v28 }
0x443a   :  { %v8992_v27 = vpop.eup %8991 }
0x443b   :  { %v6678_v15 = vadd.f32 1.0, %v8992_v27 }
0x443d   :  { %8993 = vrcp.f32 %v6678_v15 }
0x4447   :  { %v8994_v33 = vpop.eup %8993 }
0x449e   :  { %v6682_v21 = vpop.permute.xlu0 %6681 }
0x449f   :  { %v6684_v20 = vmul.f32 %v8994_v33, %v6682_v21 }
0x44a1   :  { %6686 = vrot.lane.b32.xlu1 %v6684_v20, %s9211_s26  ;;  %v6818_v20 = vld [vmem:[%s10914_s22] sm:$0xff] }
0x44a5   :  { %4419 = vrot.lane.b32.xlu1 %v10404_v35, %s9213_s15 }
0x44a9   :  { %4641 = vrot.lane.b32.xlu1 %v10440_v12, %s9213_s15 }
0x44ad   :  { %4966 = vrot.lane.b32.xlu1 %v10490_v29, %s9213_s15 }
0x44b1   :  { %5290 = vrot.lane.b32.xlu1 %v10540_v25, %s9213_s15 }
0x44b5   :  { %5510 = vrot.lane.b32.xlu1 %v10576_v55, %s9213_s15 }
0x44b9   :  { %5834 = vrot.lane.b32.xlu1 %v10626_v60, %s9213_s15 }
0x44bd   :  { %6158 = vrot.lane.b32.xlu1 %v10681_v61, %s9213_s15 }
0x44c1   :  { %6378 = vrot.lane.b32.xlu1 %v10716_v45, %s9213_s15 }
0x4513   :  { %v6687_v35 = vpop.permute.xlu1 %6686 }
0x4514   :  { %v6689_v12 = vadd.f32 %v6687_v35, %v10372_v11  ;;  %v6819_v35 = vld [vmem:[%s10914_s22 + $0x8] sm:$0xff] }
0x4516   :  { %8995 = vtanh.f32 %v6689_v12  ;;  %v6820_v12 = vld [vmem:[%s10914_s22 + $0x10] sm:$0xff] }
0x4517   :  { %v4420_v29 = vpop.permute.xlu1 %4419 }
0x4518   :  { %4423 = vst.msk [vmem:[#allocation2] sm:$0xc] %vm4422_vm0, %v4420_v29  ;;  %v8670_v29 = vpack.c.bf16 %v6819_v35, %v6818_v20 }
0x451a   :  { %8671 = vmatprep.subr.bf16.mxu0 %v8670_v29 }
0x451b   :  { %v4642_v25 = vpop.permute.xlu1 %4641  ;;  %8673 = vmatpush3.bf16.msra.mxu0 %v8670_v29 }
0x451c   :  { %4645 = vst.msk [vmem:[#allocation2] sm:$0xc0] %vm4644_vm2, %v4642_v25  ;;  %v6821_v25 = vld [vmem:[%s10914_s22 + $0x18] sm:$0xff] }
0x451f   :  { %v4967_v55 = vpop.permute.xlu1 %4966 }
0x4520   :  { %v8996_v60 = vpop.eup %8995  ;;  %4969 = vst.msk [vmem:[#allocation2 + $0x8] sm:$0x30] %vm4533_vm12, %v4967_v55  ;;  %v8674_v55 = vpack.c.bf16 %v6821_v25, %v6820_v12 }
0x4521   :  { %6693 = vrot.lane.b32.xlu0 %v8996_v60, %s9213_s15 }
0x4522   :  { %8675 = vmatprep.subr.bf16.mxu0 %v8674_v55 }
0x4523   :  { %v5291_v1 = vpop.permute.xlu1 %5290  ;;  %8677 = vmatpush3.bf16.msra.mxu0 %v8674_v55 }
0x4524   :  { %5293 = vst.msk [vmem:[#allocation2 + $0x10] sm:$0xc] %vm4422_vm0, %v5291_v1 }
0x4525   :  { %4530 = vrot.lane.b32.xlu0 %v10422_v51, %s9213_s15  ;;  %v6691_v51 = vsub.f32 1.0, %v8994_v33 }
0x4527   :  { %v5511_v11 = vpop.permute.xlu1 %5510 }
0x4528   :  { %5513 = vst.msk [vmem:[#allocation2 + $0x10] sm:$0xc0] %vm4644_vm2, %v5511_v11 }
0x4529   :  { %4856 = vrot.lane.b32.xlu0 %v10472_v3, %s9213_s15  ;;  %v6697_v3 = vrot.slane %v10741_v7, 6 }
0x452b   :  { %v5835_v61 = vpop.permute.xlu1 %5834 }
0x452c   :  { %5837 = vst.msk [vmem:[#allocation2 + $0x18] sm:$0x30] %vm4533_vm12, %v5835_v61 }
0x452d   :  { %5076 = vrot.lane.b32.xlu0 %v10508_v58, %s9213_s15 }
0x452f   :  { %v6159_v45 = vpop.permute.xlu1 %6158 }
0x4530   :  { %6161 = vst.msk [vmem:[#allocation2 + $0x20] sm:$0xc] %vm4422_vm0, %v6159_v45 }
0x4531   :  { %5400 = vrot.lane.b32.xlu0 %v10558_v9, %s9213_s15  ;;  %v6699_v9 = vmul.f32 %v8994_v33, %v6697_v3 }
0x4533   :  { %v6379_v44 = vpop.permute.xlu1 %6378 }
0x4534   :  { %6381 = vst.msk [vmem:[#allocation2 + $0x20] sm:$0xc0] %vm4644_vm2, %v6379_v44 }
0x4535   :  { %5724 = vrot.lane.b32.xlu0 %v10608_v30, %s9213_s15 }
0x4539   :  { %5944 = vrot.lane.b32.xlu0 %v10649_v34, %s9213_s15 }
0x453d   :  { %6268 = vrot.lane.b32.xlu0 %v10699_v48, %s9213_s15 }
0x4541   :  { %6592 = vrot.lane.b32.xlu0 %v10741_v7, %s9213_s15 }
0x4593   :  { %v6694_v58 = vpop.permute.xlu0 %6693 }
0x4594   :  { %v6696_v38 = vmul.f32 %v6694_v58, %v6691_v51 }
0x4596   :  { %v6700_v23 = vadd.f32 %v6699_v9, %v6696_v38  ;;  %v7288_v9 = vld [vmem:[%s10912_s20] ss:$0 sm:$0xff]  ;;  %s9214_s20 = smov [#allocation16]  }
0x4597   :  { %v4531_v39 = vpop.permute.xlu0 %4530 }
0x4598   :  { %4534 = vst.msk [vmem:[#allocation2] sm:$0x30] %vm4533_vm12, %v4531_v39  ;;  %6702 = vrot.lane.b32.xlu1 %v6700_v23, %s9213_s15  ;;  %v7289_v39 = vld [vmem:[%s10913_s21] ss:$0 sm:$0xff]  ;;  %s6957_s21 = sshll.u32 %s9214_s20, 4  ;;  %s6958_s21 = int_to_ptr.vmem [resolvable:$true] %s6957_s21 }
0x4599   :  { %s9164_s7 = scalar_lea.vmem %s6958_s21, 32  ;;  %p9169_p1 = scmp.lt.s32.totalorder %s6958_s21, %s6958_s21 }
0x459a   :  { %p9165_p0 = scmp.ne.s32.totalorder %s6958_s21, %s9164_s7  ;;  %p9170_p2 = scmp.lt.s32.totalorder %s9164_s7, %s9164_s7 }
0x459b   :  { %v4857_v30 = vpop.permute.xlu0 %4856 }
0x459c   :  { %4859 = vst.msk [vmem:[#allocation2 + $0x8] sm:$0xc] %vm4422_vm0, %v4857_v30  ;;  %p9171_p3 = por %p9170_p2, %p9169_p1 }
0x459e   :  { %p9172_p4 = pnand %p9171_p3, %p9165_p0 }
0x459f   :  { %v5077_v34 = vpop.permute.xlu0 %5076  ;;  %v6706_v48 = vld [vmem:[#allocation2] sm:$0xff] }
0x45a0   :  { %5079 = vst.msk [vmem:[#allocation2 + $0x8] sm:$0xc0] %vm4644_vm2, %v5077_v34  ;;  %v6712_v18 = vsel %vm4017_vm10, %v6706_v48, 0.0 }
0x45a1   :  { %6713 = vadd.xlane.f32.xlu0 %v6712_v18 }
0x45a3   :  { %v5401_v14 = vpop.permute.xlu0 %5400 }
0x45a4   :  { %5403 = vst.msk [vmem:[#allocation2 + $0x10] sm:$0x30] %vm4533_vm12, %v5401_v14 }
0x45a7   :  { %v5725_v16 = vpop.permute.xlu0 %5724  ;;  %v6707_v32 = vld [vmem:[#allocation2 + $0x8] sm:$0xff] }
0x45a8   :  { %5727 = vst.msk [vmem:[#allocation2 + $0x18] sm:$0xc] %vm4422_vm0, %v5725_v16  ;;  %v6715_v13 = vsel %vm4017_vm10, %v6707_v32, 0.0 }
0x45ab   :  { %v5945_v36 = vpop.permute.xlu0 %5944  ;;  %v6708_v40 = vld [vmem:[#allocation2 + $0x10] sm:$0xff] }
0x45ac   :  { %5947 = vst.msk [vmem:[#allocation2 + $0x18] sm:$0xc0] %vm4644_vm2, %v5945_v36  ;;  %v6718_v42 = vsel %vm4017_vm10, %v6708_v40, 0.0 }
0x45ad   :  { %6719 = vadd.xlane.f32.xlu0 %v6718_v42 }
0x45af   :  { %v6269_v43 = vpop.permute.xlu0 %6268 }
0x45b0   :  { %6271 = vst.msk [vmem:[#allocation2 + $0x20] sm:$0x30] %vm4533_vm12, %v6269_v43 }
0x45b3   :  { %v6593_v19 = vpop.permute.xlu0 %6592  ;;  %v6709_v26 = vld [vmem:[#allocation2 + $0x18] sm:$0xff] }
0x45b4   :  { %6595 = vst.msk [vmem:[#allocation2 + $0x28] sm:$0xc] %vm4422_vm0, %v6593_v19  ;;  %v6721_v37 = vsel %vm4017_vm10, %v6709_v26, 0.0 }
0x45b5   :  { %6722 = vadd.xlane.f32.xlu0 %v6721_v37 }
0x45b7   :  { %v6710_v46 = vld [vmem:[#allocation2 + $0x20] sm:$0xff] }
0x45b8   :  { %v6724_v47 = vsel %vm4017_vm10, %v6710_v46, 0.0 }
0x45bc   :  { %6716 = vadd.xlane.f32.xlu1 %v6715_v13 }
0x45c0   :  { %6725 = vadd.xlane.f32.xlu1 %v6724_v47 }
0x460a   :  { %v6703_v49 = vpop.permute.xlu1 %6702 }
0x460b   :  { %6705 = vst.msk [vmem:[#allocation2 + $0x28] sm:$0x30] %vm4533_vm12, %v6703_v49 }
0x4612   :  { %v6711_v31 = vld [vmem:[#allocation2 + $0x28] sm:$0x3f] }
0x4613   :  { %v6728_v50 = vsel %vm6727_vm8, %v6711_v31, 0.0 }
0x4614   :  { %6729 = vadd.xlane.f32.xlu0 %v6728_v50 }
0x462e   :  { %v6714_v52 = vpop.xlane.xlu0 %6713 }
0x462f   :  { %v6732_v53 = vmul.f32 0.03125, %v6714_v52 }
0x4631   :  { %v6738_v54 = vsub.f32 %v6706_v48, %v6732_v53 }
0x4633   :  { %v6744_v59 = vmul.f32 %v6738_v54, %v6738_v54 }
0x4635   :  { %v6750_v41 = vsel %vm4017_vm10, %v6744_v59, 0.0 }
0x4636   :  { %6751 = vadd.xlane.f32.xlu1 %v6750_v41 }
0x463a   :  { %v6720_v62 = vpop.xlane.xlu0 %6719 }
0x463b   :  { %v6734_v0 = vmul.f32 0.03125, %v6720_v62 }
0x463d   :  { %v10810_v2 = vsub.f32 %v6708_v40, %v6734_v0 }
0x463f   :  { %v6746_v4 = vmul.f32 %v10810_v2, %v10810_v2 }
0x4641   :  { %v6756_v5 = vsel %vm4017_vm10, %v6746_v4, 0.0 }
0x4642   :  { %6757 = vadd.xlane.f32.xlu1 %v6756_v5  ;;  %v6723_v63 = vpop.xlane.xlu0 %6722 }
0x4643   :  { %v6735_v6 = vmul.f32 0.03125, %v6723_v63 }
0x4645   :  { %v10815_v10 = vsub.f32 %v6709_v26, %v6735_v6 }
0x4647   :  { %v6747_v27 = vmul.f32 %v10815_v10, %v10815_v10 }
0x4649   :  { %v6717_v7 = vpop.xlane.xlu1 %6716  ;;  %v6759_v33 = vsel %vm4017_vm10, %v6747_v27, 0.0 }
0x464a   :  { %v6733_v8 = vmul.f32 0.03125, %v6717_v7 }
0x464c   :  { %v6739_v22 = vsub.f32 %v6707_v32, %v6733_v8 }
0x464d   :  { %v6726_v57 = vpop.xlane.xlu1 %6725 }
0x464e   :  { %v6736_v24 = vmul.f32 0.03125, %v6726_v57  ;;  %v6745_v56 = vmul.f32 %v6739_v22, %v6739_v22 }
0x4650   :  { %v10817_v17 = vsub.f32 %v6710_v46, %v6736_v24  ;;  %v6753_v28 = vsel %vm4017_vm10, %v6745_v56, 0.0 }
0x4651   :  { %6754 = vadd.xlane.f32.xlu0 %v6753_v28 }
0x4652   :  { %v6748_v15 = vmul.f32 %v10817_v17, %v10817_v17 }
0x4654   :  { %v6762_v21 = vsel %vm4017_vm10, %v6748_v15, 0.0 }
0x4655   :  { %6760 = vadd.xlane.f32.xlu0 %v6759_v33  ;;  %6763 = vadd.xlane.f32.xlu1 %v6762_v21 }
0x46a1   :  { %v6730_v60 = vpop.xlane.xlu0 %6729 }
0x46a2   :  { %v6737_v1 = vmul.f32 0.03125, %v6730_v60 }
0x46a4   :  { %v6743_v11 = vsub.f32 %v6711_v31, %v6737_v1 }
0x46a6   :  { %v6749_v61 = vmul.f32 %v6743_v11, %v6743_v11 }
0x46a8   :  { %v6765_v45 = vsel %vm6727_vm8, %v6749_v61, 0.0 }
0x46a9   :  { %6766 = vadd.xlane.f32.xlu0 %v6765_v45 }
0x46c3   :  { %v6752_v44 = vpop.xlane.xlu1 %6751 }
0x46c4   :  { %v6768_v51 = vmul.f32 0.03125, %v6752_v44 }
0x46c6   :  { %v6774_v3 = vadd.f32 1e-05, %v6768_v51 }
0x46c8   :  { %8997 = vrsqrt.f32 %v6774_v3 }
0x46cf   :  { %v6758_v38 = vpop.xlane.xlu1 %6757 }
0x46d0   :  { %v6770_v34 = vmul.f32 0.03125, %v6758_v38 }
0x46d2   :  { %v8998_v58 = vpop.eup %8997  ;;  %v6776_v18 = vadd.f32 1e-05, %v6770_v34 }
0x46d3   :  { %v6786_v23 = vmul.f32 %v8998_v58, %v6738_v54 }
0x46d4   :  { %8999 = vrsqrt.f32 %v6776_v18 }
0x46d5   :  { %v6799_v30 = vmul.f32 %v7288_v9, %v6786_v23 }
0x46d7   :  { %v6812_v48 = vadd.f32 %v7289_v39, %v6799_v30 }
0x46d9   :  { %8353 = vmatprep.mubr.msk.f32.mxu0 %vm4017_vm10, %v6812_v48 }
0x46de   :  { %v6755_v14 = vpop.xlane.xlu0 %6754  ;;  %v9000_v32 = vpop.eup %8999 }
0x46df   :  { %v6769_v16 = vmul.f32 0.03125, %v6755_v14  ;;  %v6788_v13 = vmul.f32 %v9000_v32, %v10810_v2 }
0x46e1   :  { %v6775_v36 = vadd.f32 1e-05, %v6769_v16  ;;  %v6801_v49 = vmul.f32 %v7288_v9, %v6788_v13 }
0x46e2   :  { %v6761_v40 = vpop.xlane.xlu0 %6760  ;;  %v6764_v42 = vpop.xlane.xlu1 %6763 }
0x46e3   :  { %9001 = vrsqrt.f32 %v6775_v36  ;;  %v6771_v43 = vmul.f32 0.03125, %v6761_v40  ;;  %v6772_v19 = vmul.f32 0.03125, %v6764_v42  ;;  %v6814_v59 = vadd.f32 %v7289_v39, %v6801_v49 }
0x46e5   :  { %v6777_v26 = vadd.f32 1e-05, %v6771_v43  ;;  %v6778_v37 = vadd.f32 1e-05, %v6772_v19 }
0x46e7   :  { %9003 = vrsqrt.f32 %v6777_v26 }
0x46e8   :  { %9005 = vrsqrt.f32 %v6778_v37 }
0x46ed   :  { %v9002_v46 = vpop.eup %9001 }
0x46ee   :  { %v6787_v47 = vmul.f32 %v9002_v46, %v6739_v22 }
0x46f0   :  { %v6800_v31 = vmul.f32 %v7288_v9, %v6787_v47 }
0x46f1   :  { %v9004_v50 = vpop.eup %9003 }
0x46f2   :  { %v9006_v52 = vpop.eup %9005  ;;  %v6813_v53 = vadd.f32 %v7289_v39, %v6800_v31  ;;  %v6789_v54 = vmul.f32 %v9004_v50, %v10815_v10 }
0x46f3   :  { %v6790_v41 = vmul.f32 %v9006_v52, %v10817_v17 }
0x46f4   :  { %8354 = vmatmul.mubr.msk.f32.vlgmr.msra.gmra.mrb[22].mxu0 %vm4017_vm10, %v6813_v53  ;;  %v6802_v62 = vmul.f32 %v7288_v9, %v6789_v54 }
0x46f5   :  { %8356 = vmatprep.mubr.msk.f32.mxu0 %vm4017_vm10, %v6814_v59  ;;  %v6803_v0 = vmul.f32 %v7288_v9, %v6790_v41 }
0x46f6   :  { %v6815_v4 = vadd.f32 %v7289_v39, %v6802_v62 }
0x46f7   :  { %v6816_v2 = vadd.f32 %v7289_v39, %v6803_v0 }
0x46f8   :  { %8357 = vmatmul.mubr.msk.f32.gmra.mrb[24].mxu0 %vm4017_vm10, %v6815_v4 }
0x46f9   :  { %8359 = vmatprep.mubr.msk.f32.mxu0 %vm4017_vm10, %v6816_v2 }
0x4736   :  { %v6767_v5 = vpop.xlane.xlu0 %6766 }
0x4737   :  { %v6773_v63 = vmul.f32 0.03125, %v6767_v5 }
0x4739   :  { %v6779_v6 = vadd.f32 1e-05, %v6773_v63 }
0x473b   :  { %9007 = vrsqrt.f32 %v6779_v6 }
0x4745   :  { %v9008_v7 = vpop.eup %9007 }
0x4746   :  { %v6791_v8 = vmul.f32 %v9008_v7, %v6743_v11 }
0x4748   :  { %v6804_v10 = vmul.f32 %v7288_v9, %v6791_v8 }
0x474a   :  { %v6817_v22 = vadd.f32 %v7289_v39, %v6804_v10 }
0x474c   :  { %8360 = vmatmul.mubr.msk.f32.gmra.mrb[26].mxu0 %vm4017_vm10, %v6817_v22 }
0x474d   :  { %9175 = shalt.err (!%p9172_p4)
}
0x474e   :  { %s9176_s11 = scalar_lea.hbm %s10917_s25, 32 }
0x474f   :  { %p9177_p5 = scmp.ne.s32.totalorder %s10917_s25, %s9176_s11  ;;  %p9180_p6 = scmp.lt.u32.totalorder %s9176_s11, %s10917_s25 }
0x4751   :  { %p9182_p7 = pnand %p9180_p6, %p9177_p5 }
0x4753   :  { %9185 = shalt.err (!%p9182_p7)
}
0x4754   :  { %6960 = dma.vmem_to_hbm [thread:$0]  %s6958_s21, 32, %s10917_s25, [#allocation6]   ;;  %v7290_v57 = vld [vmem:[%s10915_s23] ss:$0 sm:$0xff]  ;;  %vm6947_vm9 = vcmask 128000  }
0x47c7   :  { %v8355_v24 = vpop.f32.mrb[22].mxu0 }
0x47c8   :  { %v6919_v56 = vadd.f32 %v8355_v24, %v7290_v57  ;;  %v6913_v17 = vpop.f32.mrb[23].mxu0 }
0x47c9   :  { %v6914_v28 = vadd.f32 %v7290_v57, %v6913_v17 }
0x47ca   :  { %6943 = vst.msk [vmem:[%s10916_s24 + $0x8] sm:$0xff] %vm236_vm3, %v6919_v56 }
0x47cb   :  { %6942 = vst.msk [vmem:[%s10916_s24] sm:$0xff] %vm236_vm3, %v6914_v28  ;;  %v8358_v27 = vpop.f32.mrb[24].mxu0 }
0x47cc   :  { %v6929_v15 = vadd.f32 %v8358_v27, %v7290_v57  ;;  %v6923_v33 = vpop.f32.mrb[25].mxu0 }
0x47cd   :  { %v6924_v21 = vadd.f32 %v7290_v57, %v6923_v33 }
0x47ce   :  { %6945 = vst.msk [vmem:[%s10916_s24 + $0x18] sm:$0xff] %vm236_vm3, %v6929_v15 }
0x47cf   :  { %6944 = vst.msk [vmem:[%s10916_s24 + $0x10] sm:$0xff] %vm236_vm3, %v6924_v21 }
0x481f   :  { %v8361_v20 = vpop.f32.mrb[26].mxu0 }
0x4820   :  { %v6939_v35 = vadd.f32 %v8361_v20, %v7290_v57  ;;  %v6933_v12 = vpop.f32.mrb[27].mxu0 }
0x4821   :  { %v6934_v29 = vadd.f32 %v7290_v57, %v6933_v12 }
0x4822   :  { %6948 = vst.msk [vmem:[%s10916_s24 + $0x28] sm:$0x3f] %vm6947_vm9, %v6939_v35 }
0x4823   :  { %6946 = vst.msk [vmem:[%s10916_s24 + $0x20] sm:$0xff] %vm236_vm3, %v6934_v29 }
0x4824   :  { %9194 = dma.done.wait [#allocation6], 32  }
0x4825   :  { %9195 = vsyncadd [#allocation6], 4294967264 }
0x4826   :  { %6970 = vsyncpa [#allocation5], 1 }
0x4827   :  { %6971 = vsyncpa [#allocation8], 1 }
0x4828   :  { %6972 = vsyncpa [#allocation11], 1 }
0x4829   :  { %6973 = vsyncpa [#allocation14], 1 }
0x482a   :  { %6974 = vsyncpa [#allocation6], 1 }

</bundles_post_ra>
